<compile_context>
chip_gen: v7x
topology: tpu7x:2x2x1
jax: 0.10.0
libtpu: 0.0.40
codegen_flags: <defaults>
</compile_context>

<pallas_src>
import functools

import jax
import jax.numpy as jnp
from jax.experimental import pallas as pl
from jax.experimental.pallas import tpu as pltpu


# -------------------- in-kernel helpers --------------------

def _store_padded(scr, val):
    """Store `val` (L, C) into `scr` (L+2, C) at rows 1..L and zero the halo rows."""
    L, C = val.shape
    zrow = jnp.zeros((1, C), jnp.float32)
    scr[pl.ds(0, 1), :] = zrow
    scr[pl.ds(L + 1, 1), :] = zrow
    scr[pl.ds(1, L), :] = val


def _tap(scr, off, l_out, stride):
    """Read rows off, off+stride, ..., off+stride*(l_out-1) from a padded scratch."""
    if stride == 1:
        return scr[pl.ds(off, l_out), :]
    return scr[pl.ds(off, l_out, stride=stride), :]


def _conv3_bn(scr, w_ref, shift_ref, l_out, stride, relu):
    """K=3 / pad=1 Conv1d (BN scale pre-folded into w) + shift (+ReLU), one im2col dot."""
    xl = _tap(scr, 0, l_out, stride)                       # x[stride*l - 1]
    xc = _tap(scr, 1, l_out, stride)                       # x[stride*l]
    xr = _tap(scr, 2, l_out, stride)                       # x[stride*l + 1]
    patches = jnp.concatenate([xl, xc, xr], axis=1)        # (l_out, 3*Cin)
    out = jnp.dot(patches, w_ref[...],
                  precision=jax.lax.Precision.HIGHEST,
                  preferred_element_type=jnp.float32) + shift_ref[...]
    if relu:
        out = jnp.maximum(out, 0.0)
    return out


# -------------------- fused Pallas kernel --------------------

def _resnet3_fused_kernel(*refs, n_blocks, strides, seq_len):
    # ref layout: x, w0, s0, [w1,s1,w2,s2,wsc,ssc]*n_blocks, out,
    #             then scratch: x_pad, h0_pad, t_pad*n_blocks, b_pad*(n_blocks-1)
    x_ref = refs[0]
    w0_ref, s0_ref = refs[1], refs[2]
    blk_refs = refs[3:3 + 6 * n_blocks]
    o_ref = refs[3 + 6 * n_blocks]
    scratch = refs[4 + 6 * n_blocks:]
    x_scr, h0_scr = scratch[0], scratch[1]
    t_scrs = scratch[2:2 + n_blocks]
    b_scrs = scratch[2 + n_blocks:]

    L = seq_len

    # ---- stem: Conv1d(1 -> in_planes, k=3, pad=1, bias=False) + BN + ReLU ----
    # Cin == 1: pure VPU broadcast FMA instead of degenerate depth-1 MXU dots.
    _store_padded(x_scr, x_ref[0])                         # (L, 1), zero halo
    xl = _tap(x_scr, 0, L, 1)
    xc = _tap(x_scr, 1, L, 1)
    xr = _tap(x_scr, 2, L, 1)
    w0 = w0_ref[...]                                       # (3, C0), BN scale folded
    h0 = xl * w0[0:1, :] + xc * w0[1:2, :] + xr * w0[2:3, :] + s0_ref[...]
    h0 = jnp.maximum(h0, 0.0)                              # (L, C0)
    _store_padded(h0_scr, h0)

    # ---- BasicBlocks (conv3+bn+relu -> conv3+bn -> +shortcut(conv1x1+bn) -> relu) ----
    in_scr = h0_scr
    l_in = L
    for i in range(n_blocks):
        w1, s1, w2, s2, wsc, ssc = blk_refs[6 * i:6 * i + 6]
        stride = strides[i]
        l_out = (l_in - 1) // stride + 1

        t = _conv3_bn(in_scr, w1, s1, l_out, stride, relu=True)
        _store_padded(t_scrs[i], t)
        h = _conv3_bn(t_scrs[i], w2, s2, l_out, 1, relu=False)

        # shortcut: 1x1 conv, stride = block stride -> strided gather BEFORE the dot
        sc_in = _tap(in_scr, 1, l_out, stride)             # (l_out, Cin)
        sc = jnp.dot(sc_in, wsc[...],
                     precision=jax.lax.Precision.HIGHEST,
                     preferred_element_type=jnp.float32) + ssc[...]

        bval = jnp.maximum(h + sc, 0.0)                    # (l_out, Cout)
        if i + 1 < n_blocks:
            _store_padded(b_scrs[i], bval)                 # stays in VMEM
            in_scr = b_scrs[i]
        else:
            o_ref[0] = bval.astype(o_ref.dtype)            # only HBM write (128 lanes)
        l_in = l_out


# -------------------- parameter preparation (BN folding) --------------------

def _fold(w_kic, bn):
    """Fold eval-mode BN scale into a (K, Cin, Cout) conv weight -> ((K*Cin, Cout), (1, Cout))."""
    scale, shift = bn
    k, cin, cout = w_kic.shape
    wf = (w_kic * scale[None, None, :]).reshape(k * cin, cout)
    return wf.astype(jnp.float32), shift.reshape(1, cout).astype(jnp.float32)


def prepare_fused_operands(params):
    """Flat operand list for the fused kernel + static per-block strides."""
    ops = []
    w0f, s0f = _fold(params["w0"], params["bn0"])
    ops += [w0f, s0f]
    strides = []
    for p in params["blocks"]:
        strides.append(int(p["stride"]))
        w1f, s1f = _fold(p["w1"], p["bn1"])
        w2f, s2f = _fold(p["w2"], p["bn2"])
        if "wsc" in p:
            wscf, sscf = _fold(p["wsc"], p["bnsc"])
        else:
            # identity shortcut (stride 1, Cin == Cout): exact identity 1x1 conv
            cin = p["w1"].shape[1]
            wscf = jnp.eye(cin, dtype=jnp.float32)
            sscf = jnp.zeros((1, cin), jnp.float32)
        ops += [w1f, s1f, w2f, s2f, wscf, sscf]
    return ops, tuple(strides)


# -------------------- pallas_call wrapper --------------------

def resnet3_forward(x_ncw, params):
    ops, strides = prepare_fused_operands(params)
    n_blocks = len(strides)

    x = jnp.transpose(x_ncw, (0, 2, 1)).astype(jnp.float32)   # NCW -> NLC
    N, L, Cin0 = x.shape

    # static channel / length bookkeeping
    c_stem = ops[0].shape[1]
    lens, chans = [], []
    l_in, c_in = L, c_stem
    for i in range(n_blocks):
        c_out = ops[2 + 6 * i].shape[1]                        # folded w1: (3*Cin, Cout)
        l_out = (l_in - 1) // strides[i] + 1
        lens.append((l_in, l_out))
        chans.append((c_in, c_out))
        l_in, c_in = l_out, c_out
    L_final, C_final = l_in, c_in

    kernel = functools.partial(_resnet3_fused_kernel,
                               n_blocks=n_blocks, strides=strides, seq_len=L)

    in_specs = [pl.BlockSpec((1, L, Cin0), lambda n: (n, 0, 0))]
    in_specs += [pl.BlockSpec(op.shape, lambda n: (0, 0)) for op in ops]

    scratch_shapes = [pltpu.VMEM((L + 2, Cin0), jnp.float32),      # padded input
                      pltpu.VMEM((L + 2, c_stem), jnp.float32)]    # padded stem output
    scratch_shapes += [pltpu.VMEM((lens[i][1] + 2, chans[i][1]), jnp.float32)
                       for i in range(n_blocks)]                   # per-block conv1 out
    scratch_shapes += [pltpu.VMEM((lens[i][1] + 2, chans[i][1]), jnp.float32)
                       for i in range(n_blocks - 1)]               # per-block output

    out_nlc = pl.pallas_call(
        kernel,
        out_shape=jax.ShapeDtypeStruct((N, L_final, C_final), jnp.float32),
        grid=(N,),
        in_specs=in_specs,
        out_specs=pl.BlockSpec((1, L_final, C_final), lambda n: (n, 0, 0)),
        scratch_shapes=scratch_shapes,
        compiler_params=pltpu.CompilerParams(dimension_semantics=("parallel",)),
    )(x, *ops)

    return jnp.transpose(out_nlc, (0, 2, 1))                   # NLC -> NCW


# -------------------- deterministic parameter init --------------------

def _init_conv(key, cout, cin, k):
    # PyTorch Conv1d weight layout is (Cout, Cin, K); store as (K, Cin, Cout).
    w = jax.random.normal(key, (cout, cin, k), jnp.float32) / jnp.sqrt(float(cin * k))
    return jnp.transpose(w, (2, 1, 0))


def _init_bn(key, c, eps=1e-5):
    k1, k2, k3, k4 = jax.random.split(key, 4)
    gamma = 1.0 + 0.1 * jax.random.normal(k1, (c,), jnp.float32)
    beta = 0.1 * jax.random.normal(k2, (c,), jnp.float32)
    mean = 0.1 * jax.random.normal(k3, (c,), jnp.float32)
    var = 0.5 + jax.random.uniform(k4, (c,), jnp.float32)
    scale = gamma / jnp.sqrt(var + eps)
    shift = beta - mean * scale
    return scale, shift


def make_resnet3_params(key, strides=(1, 2, 2), out_channels=128,
                        init_channels=1, in_planes=4):
    keys = jax.random.split(key, 5)
    params = {"w0": _init_conv(keys[0], in_planes, init_channels, 3),
              "bn0": _init_bn(keys[1], in_planes)}
    blocks = []
    cur = in_planes
    for i, (planes, stride) in enumerate(zip((16, 64, out_channels), strides)):
        bkeys = jax.random.split(keys[2 + i], 6)
        p = {"stride": stride,
             "w1": _init_conv(bkeys[0], planes, cur, 3),
             "bn1": _init_bn(bkeys[1], planes),
             "w2": _init_conv(bkeys[2], planes, planes, 3),
             "bn2": _init_bn(bkeys[3], planes)}
        if stride != 1 or cur != planes:   # BasicBlock.shortcut = conv1x1 + bn
            p["wsc"] = _init_conv(bkeys[4], planes, cur, 1)
            p["bnsc"] = _init_bn(bkeys[5], planes)
        blocks.append(p)
        cur = planes
    params["blocks"] = blocks
    return params


# -------------------- pure-JAX reference (sanity check) --------------------

def _ref_conv(x_ncw, w_kic, stride, pad):
    w_oiw = jnp.transpose(w_kic, (2, 1, 0))  # (Cout, Cin, K)
    return jax.lax.conv_general_dilated(
        x_ncw, w_oiw, window_strides=(stride,), padding=[(pad, pad)],
        dimension_numbers=("NCH", "OIH", "NCH"),
        precision=jax.lax.Precision.HIGHEST)


def _ref_bn(x_ncw, scale, shift):
    return x_ncw * scale[None, :, None] + shift[None, :, None]


def resnet3_ref(x_ncw, params):
    s0, b0 = params["bn0"]
    out = jax.nn.relu(_ref_bn(_ref_conv(x_ncw, params["w0"], 1, 1), s0, b0))
    for p in params["blocks"]:
        stride = p["stride"]
        s1, b1 = p["bn1"]
        s2, b2 = p["bn2"]
        h = jax.nn.relu(_ref_bn(_ref_conv(out, p["w1"], stride, 1), s1, b1))
        h = _ref_bn(_ref_conv(h, p["w2"], 1, 1), s2, b2)
        if "wsc" in p:
            ssc, bsc = p["bnsc"]
            sc = _ref_bn(_ref_conv(out, p["wsc"], stride, 0), ssc, bsc)
        else:
            sc = out
        out = jax.nn.relu(h + sc)
    return out


# -------------------- main --------------------

if __name__ == "__main__":
    key = jax.random.PRNGKey(0)
    pkey, xkey = jax.random.split(key)
    params = make_resnet3_params(pkey)

    # PyTorch NCW input: (batch=2, init_channels=1, seq_len=16)
    x = jax.random.normal(xkey, (2, 1, 16), jnp.float32)

    out = jax.block_until_ready(resnet3_forward(x, params))
    assert out.shape == (2, 128, 4), out.shape          # (N, out_channels, L/4)

    ref = jax.block_until_ready(resnet3_ref(x, params))
    max_err = float(jnp.max(jnp.abs(out - ref)))
    assert jnp.allclose(out, ref, atol=5e-4, rtol=5e-4), max_err

    print("KERNEL_OK")
</pallas_src>

<mosaic_0001>
module attributes {stable_mosaic.version = 11 : i64} {
  func.func @_resnet3_fused_kernel(%arg0: i32, %arg1: memref<1x16x1xf32, #tpu.memory_space<vmem>>, %arg2: memref<3x4xf32, #tpu.memory_space<vmem>>, %arg3: memref<1x4xf32, #tpu.memory_space<vmem>>, %arg4: memref<12x16xf32, #tpu.memory_space<vmem>>, %arg5: memref<1x16xf32, #tpu.memory_space<vmem>>, %arg6: memref<48x16xf32, #tpu.memory_space<vmem>>, %arg7: memref<1x16xf32, #tpu.memory_space<vmem>>, %arg8: memref<4x16xf32, #tpu.memory_space<vmem>>, %arg9: memref<1x16xf32, #tpu.memory_space<vmem>>, %arg10: memref<48x64xf32, #tpu.memory_space<vmem>>, %arg11: memref<1x64xf32, #tpu.memory_space<vmem>>, %arg12: memref<192x64xf32, #tpu.memory_space<vmem>>, %arg13: memref<1x64xf32, #tpu.memory_space<vmem>>, %arg14: memref<16x64xf32, #tpu.memory_space<vmem>>, %arg15: memref<1x64xf32, #tpu.memory_space<vmem>>, %arg16: memref<192x128xf32, #tpu.memory_space<vmem>>, %arg17: memref<1x128xf32, #tpu.memory_space<vmem>>, %arg18: memref<384x128xf32, #tpu.memory_space<vmem>>, %arg19: memref<1x128xf32, #tpu.memory_space<vmem>>, %arg20: memref<64x128xf32, #tpu.memory_space<vmem>>, %arg21: memref<1x128xf32, #tpu.memory_space<vmem>>, %arg22: memref<1x4x128xf32, #tpu.memory_space<vmem>>, %arg23: memref<18x1xf32, #tpu.memory_space<vmem>>, %arg24: memref<18x4xf32, #tpu.memory_space<vmem>>, %arg25: memref<18x16xf32, #tpu.memory_space<vmem>>, %arg26: memref<10x64xf32, #tpu.memory_space<vmem>>, %arg27: memref<6x128xf32, #tpu.memory_space<vmem>>, %arg28: memref<18x16xf32, #tpu.memory_space<vmem>>, %arg29: memref<10x64xf32, #tpu.memory_space<vmem>>) attributes {dimension_semantics = [#tpu.dimension_semantics<parallel>], iteration_bounds = array<i64: 2>, scalar_prefetch = 0 : i64, scratch_operands = 7 : i64, tpu.core_type = #tpu.core_type<tc>, window_params = [{transform_indices = @transform_0, window_bounds = array<i64: 1, 16, 1>}, {pipeline_mode = #tpu.pipeline_mode<synchronous>, transform_indices = @transform_1, window_bounds = array<i64: 3, 4>}, {pipeline_mode = #tpu.pipeline_mode<synchronous>, transform_indices = @transform_2, window_bounds = array<i64: 1, 4>}, {pipeline_mode = #tpu.pipeline_mode<synchronous>, transform_indices = @transform_3, window_bounds = array<i64: 12, 16>}, {pipeline_mode = #tpu.pipeline_mode<synchronous>, transform_indices = @transform_4, window_bounds = array<i64: 1, 16>}, {pipeline_mode = #tpu.pipeline_mode<synchronous>, transform_indices = @transform_5, window_bounds = array<i64: 48, 16>}, {pipeline_mode = #tpu.pipeline_mode<synchronous>, transform_indices = @transform_6, window_bounds = array<i64: 1, 16>}, {pipeline_mode = #tpu.pipeline_mode<synchronous>, transform_indices = @transform_7, window_bounds = array<i64: 4, 16>}, {pipeline_mode = #tpu.pipeline_mode<synchronous>, transform_indices = @transform_8, window_bounds = array<i64: 1, 16>}, {pipeline_mode = #tpu.pipeline_mode<synchronous>, transform_indices = @transform_9, window_bounds = array<i64: 48, 64>}, {pipeline_mode = #tpu.pipeline_mode<synchronous>, transform_indices = @transform_10, window_bounds = array<i64: 1, 64>}, {pipeline_mode = #tpu.pipeline_mode<synchronous>, transform_indices = @transform_11, window_bounds = array<i64: 192, 64>}, {pipeline_mode = #tpu.pipeline_mode<synchronous>, transform_indices = @transform_12, window_bounds = array<i64: 1, 64>}, {pipeline_mode = #tpu.pipeline_mode<synchronous>, transform_indices = @transform_13, window_bounds = array<i64: 16, 64>}, {pipeline_mode = #tpu.pipeline_mode<synchronous>, transform_indices = @transform_14, window_bounds = array<i64: 1, 64>}, {pipeline_mode = #tpu.pipeline_mode<synchronous>, transform_indices = @transform_15, window_bounds = array<i64: 192, 128>}, {pipeline_mode = #tpu.pipeline_mode<synchronous>, transform_indices = @transform_16, window_bounds = array<i64: 1, 128>}, {pipeline_mode = #tpu.pipeline_mode<synchronous>, transform_indices = @transform_17, window_bounds = array<i64: 384, 128>}, {pipeline_mode = #tpu.pipeline_mode<synchronous>, transform_indices = @transform_18, window_bounds = array<i64: 1, 128>}, {pipeline_mode = #tpu.pipeline_mode<synchronous>, transform_indices = @transform_19, window_bounds = array<i64: 64, 128>}, {pipeline_mode = #tpu.pipeline_mode<synchronous>, transform_indices = @transform_20, window_bounds = array<i64: 1, 128>}, {transform_indices = @transform_21, window_bounds = array<i64: 1, 4, 128>}]} {
    %c0 = arith.constant 0 : index
    %c0_0 = arith.constant 0 : index
    %c0_1 = arith.constant 0 : index
    %0 = vector.load %arg1[%c0, %c0_0, %c0_1] : memref<1x16x1xf32, #tpu.memory_space<vmem>>, vector<1x16x1xf32>
    %1 = vector.shape_cast %0 : vector<1x16x1xf32> to vector<16x1xf32>
    %cst = arith.constant 0.000000e+00 : f32
    %2 = vector.broadcast %cst : f32 to vector<1x1xf32>
    %c0_2 = arith.constant 0 : index
    %c0_3 = arith.constant 0 : index
    %3 = vector.load %arg23[%c0_2, %c0_3] : memref<18x1xf32, #tpu.memory_space<vmem>>, vector<1x1xf32>
    tpu.vector_store %arg23[%c0_2, %c0_3], %2 {strides = array<i32>} : memref<18x1xf32, #tpu.memory_space<vmem>>, vector<1x1xf32>,
    %c17 = arith.constant 17 : index
    %c0_4 = arith.constant 0 : index
    %4 = vector.load %arg23[%c17, %c0_4] : memref<18x1xf32, #tpu.memory_space<vmem>>, vector<1x1xf32>
    tpu.vector_store %arg23[%c17, %c0_4], %2 {strides = array<i32>} : memref<18x1xf32, #tpu.memory_space<vmem>>, vector<1x1xf32>,
    %c1 = arith.constant 1 : index
    %c0_5 = arith.constant 0 : index
    %5 = vector.load %arg23[%c1, %c0_5] : memref<18x1xf32, #tpu.memory_space<vmem>>, vector<16x1xf32>
    tpu.vector_store %arg23[%c1, %c0_5], %1 {strides = array<i32>} : memref<18x1xf32, #tpu.memory_space<vmem>>, vector<16x1xf32>,
    %c0_6 = arith.constant 0 : index
    %c0_7 = arith.constant 0 : index
    %6 = vector.load %arg23[%c0_6, %c0_7] : memref<18x1xf32, #tpu.memory_space<vmem>>, vector<16x1xf32>
    %c1_8 = arith.constant 1 : index
    %c0_9 = arith.constant 0 : index
    %7 = vector.load %arg23[%c1_8, %c0_9] : memref<18x1xf32, #tpu.memory_space<vmem>>, vector<16x1xf32>
    %c2 = arith.constant 2 : index
    %c0_10 = arith.constant 0 : index
    %8 = vector.load %arg23[%c2, %c0_10] : memref<18x1xf32, #tpu.memory_space<vmem>>, vector<16x1xf32>
    %c0_11 = arith.constant 0 : index
    %c0_12 = arith.constant 0 : index
    %9 = vector.load %arg2[%c0_11, %c0_12] : memref<3x4xf32, #tpu.memory_space<vmem>>, vector<3x4xf32>
    %10 = vector.extract_strided_slice %9 {offsets = [0, 0], sizes = [1, 4], strides = [1, 1]} : vector<3x4xf32> to vector<1x4xf32>
    %11 = vector.broadcast %6 : vector<16x1xf32> to vector<16x4xf32>
    %12 = vector.broadcast %10 : vector<1x4xf32> to vector<16x4xf32>
    %13 = arith.mulf %11, %12 : vector<16x4xf32>
    %14 = vector.extract_strided_slice %9 {offsets = [1, 0], sizes = [1, 4], strides = [1, 1]} : vector<3x4xf32> to vector<1x4xf32>
    %15 = vector.broadcast %7 : vector<16x1xf32> to vector<16x4xf32>
    %16 = vector.broadcast %14 : vector<1x4xf32> to vector<16x4xf32>
    %17 = arith.mulf %15, %16 : vector<16x4xf32>
    %18 = arith.addf %13, %17 : vector<16x4xf32>
    %19 = vector.extract_strided_slice %9 {offsets = [2, 0], sizes = [1, 4], strides = [1, 1]} : vector<3x4xf32> to vector<1x4xf32>
    %20 = vector.broadcast %8 : vector<16x1xf32> to vector<16x4xf32>
    %21 = vector.broadcast %19 : vector<1x4xf32> to vector<16x4xf32>
    %22 = arith.mulf %20, %21 : vector<16x4xf32>
    %23 = arith.addf %18, %22 : vector<16x4xf32>
    %c0_13 = arith.constant 0 : index
    %c0_14 = arith.constant 0 : index
    %24 = vector.load %arg3[%c0_13, %c0_14] : memref<1x4xf32, #tpu.memory_space<vmem>>, vector<1x4xf32>
    %25 = vector.broadcast %24 : vector<1x4xf32> to vector<16x4xf32>
    %26 = arith.addf %23, %25 : vector<16x4xf32>
    %cst_15 = arith.constant 0.000000e+00 : f32
    %27 = vector.broadcast %cst_15 : f32 to vector<16x4xf32>
    %28 = arith.maximumf %26, %27 : vector<16x4xf32>
    %cst_16 = arith.constant 0.000000e+00 : f32
    %29 = vector.broadcast %cst_16 : f32 to vector<1x4xf32>
    %c0_17 = arith.constant 0 : index
    %c0_18 = arith.constant 0 : index
    %30 = vector.load %arg24[%c0_17, %c0_18] : memref<18x4xf32, #tpu.memory_space<vmem>>, vector<1x4xf32>
    tpu.vector_store %arg24[%c0_17, %c0_18], %29 {strides = array<i32>} : memref<18x4xf32, #tpu.memory_space<vmem>>, vector<1x4xf32>,
    %c17_19 = arith.constant 17 : index
    %c0_20 = arith.constant 0 : index
    %31 = vector.load %arg24[%c17_19, %c0_20] : memref<18x4xf32, #tpu.memory_space<vmem>>, vector<1x4xf32>
    tpu.vector_store %arg24[%c17_19, %c0_20], %29 {strides = array<i32>} : memref<18x4xf32, #tpu.memory_space<vmem>>, vector<1x4xf32>,
    %c1_21 = arith.constant 1 : index
    %c0_22 = arith.constant 0 : index
    %32 = vector.load %arg24[%c1_21, %c0_22] : memref<18x4xf32, #tpu.memory_space<vmem>>, vector<16x4xf32>
    tpu.vector_store %arg24[%c1_21, %c0_22], %28 {strides = array<i32>} : memref<18x4xf32, #tpu.memory_space<vmem>>, vector<16x4xf32>,
    %c0_23 = arith.constant 0 : index
    %c0_24 = arith.constant 0 : index
    %33 = vector.load %arg24[%c0_23, %c0_24] : memref<18x4xf32, #tpu.memory_space<vmem>>, vector<16x4xf32>
    %c1_25 = arith.constant 1 : index
    %c0_26 = arith.constant 0 : index
    %34 = vector.load %arg24[%c1_25, %c0_26] : memref<18x4xf32, #tpu.memory_space<vmem>>, vector<16x4xf32>
    %c2_27 = arith.constant 2 : index
    %c0_28 = arith.constant 0 : index
    %35 = vector.load %arg24[%c2_27, %c0_28] : memref<18x4xf32, #tpu.memory_space<vmem>>, vector<16x4xf32>
    %36 = tpu.concatenate %33, %34, %35 in 1 : vector<16x4xf32>, vector<16x4xf32>, vector<16x4xf32> -> vector<16x12xf32>
    %c0_29 = arith.constant 0 : index
    %c0_30 = arith.constant 0 : index
    %37 = vector.load %arg4[%c0_29, %c0_30] : memref<12x16xf32, #tpu.memory_space<vmem>>, vector<12x16xf32>
    %cst_31 = arith.constant dense<0.000000e+00> : vector<16x16xf32>
    %38 = tpu.matmul %36, %37, %cst_31 {dimension_numbers = #tpu.dot_dimension_numbers<[1], [0], [0], [1], [0, 0, 1, 1], [], []>, precision = #tpu.contract_precision<fp32>} : vector<16x12xf32>, vector<12x16xf32>, vector<16x16xf32> -> vector<16x16xf32>
    %c0_32 = arith.constant 0 : index
    %c0_33 = arith.constant 0 : index
    %39 = vector.load %arg5[%c0_32, %c0_33] : memref<1x16xf32, #tpu.memory_space<vmem>>, vector<1x16xf32>
    %40 = vector.broadcast %39 : vector<1x16xf32> to vector<16x16xf32>
    %41 = arith.addf %38, %40 : vector<16x16xf32>
    %cst_34 = arith.constant 0.000000e+00 : f32
    %42 = vector.broadcast %cst_34 : f32 to vector<16x16xf32>
    %43 = arith.maximumf %41, %42 : vector<16x16xf32>
    %cst_35 = arith.constant 0.000000e+00 : f32
    %44 = vector.broadcast %cst_35 : f32 to vector<1x16xf32>
    %c0_36 = arith.constant 0 : index
    %c0_37 = arith.constant 0 : index
    %45 = vector.load %arg25[%c0_36, %c0_37] : memref<18x16xf32, #tpu.memory_space<vmem>>, vector<1x16xf32>
    tpu.vector_store %arg25[%c0_36, %c0_37], %44 {strides = array<i32>} : memref<18x16xf32, #tpu.memory_space<vmem>>, vector<1x16xf32>,
    %c17_38 = arith.constant 17 : index
    %c0_39 = arith.constant 0 : index
    %46 = vector.load %arg25[%c17_38, %c0_39] : memref<18x16xf32, #tpu.memory_space<vmem>>, vector<1x16xf32>
    tpu.vector_store %arg25[%c17_38, %c0_39], %44 {strides = array<i32>} : memref<18x16xf32, #tpu.memory_space<vmem>>, vector<1x16xf32>,
    %c1_40 = arith.constant 1 : index
    %c0_41 = arith.constant 0 : index
    %47 = vector.load %arg25[%c1_40, %c0_41] : memref<18x16xf32, #tpu.memory_space<vmem>>, vector<16x16xf32>
    tpu.vector_store %arg25[%c1_40, %c0_41], %43 {strides = array<i32>} : memref<18x16xf32, #tpu.memory_space<vmem>>, vector<16x16xf32>,
    %c0_42 = arith.constant 0 : index
    %c0_43 = arith.constant 0 : index
    %48 = vector.load %arg25[%c0_42, %c0_43] : memref<18x16xf32, #tpu.memory_space<vmem>>, vector<16x16xf32>
    %c1_44 = arith.constant 1 : index
    %c0_45 = arith.constant 0 : index
    %49 = vector.load %arg25[%c1_44, %c0_45] : memref<18x16xf32, #tpu.memory_space<vmem>>, vector<16x16xf32>
    %c2_46 = arith.constant 2 : index
    %c0_47 = arith.constant 0 : index
    %50 = vector.load %arg25[%c2_46, %c0_47] : memref<18x16xf32, #tpu.memory_space<vmem>>, vector<16x16xf32>
    %51 = tpu.concatenate %48, %49, %50 in 1 : vector<16x16xf32>, vector<16x16xf32>, vector<16x16xf32> -> vector<16x48xf32>
    %c0_48 = arith.constant 0 : index
    %c0_49 = arith.constant 0 : index
    %52 = vector.load %arg6[%c0_48, %c0_49] : memref<48x16xf32, #tpu.memory_space<vmem>>, vector<48x16xf32>
    %cst_50 = arith.constant dense<0.000000e+00> : vector<16x16xf32>
    %53 = tpu.matmul %51, %52, %cst_50 {dimension_numbers = #tpu.dot_dimension_numbers<[1], [0], [0], [1], [0, 0, 1, 1], [], []>, precision = #tpu.contract_precision<fp32>} : vector<16x48xf32>, vector<48x16xf32>, vector<16x16xf32> -> vector<16x16xf32>
    %c0_51 = arith.constant 0 : index
    %c0_52 = arith.constant 0 : index
    %54 = vector.load %arg7[%c0_51, %c0_52] : memref<1x16xf32, #tpu.memory_space<vmem>>, vector<1x16xf32>
    %55 = vector.broadcast %54 : vector<1x16xf32> to vector<16x16xf32>
    %56 = arith.addf %53, %55 : vector<16x16xf32>
    %c1_53 = arith.constant 1 : index
    %c0_54 = arith.constant 0 : index
    %57 = vector.load %arg24[%c1_53, %c0_54] : memref<18x4xf32, #tpu.memory_space<vmem>>, vector<16x4xf32>
    %c0_55 = arith.constant 0 : index
    %c0_56 = arith.constant 0 : index
    %58 = vector.load %arg8[%c0_55, %c0_56] : memref<4x16xf32, #tpu.memory_space<vmem>>, vector<4x16xf32>
    %cst_57 = arith.constant dense<0.000000e+00> : vector<16x16xf32>
    %59 = tpu.matmul %57, %58, %cst_57 {dimension_numbers = #tpu.dot_dimension_numbers<[1], [0], [0], [1], [0, 0, 1, 1], [], []>, precision = #tpu.contract_precision<fp32>} : vector<16x4xf32>, vector<4x16xf32>, vector<16x16xf32> -> vector<16x16xf32>
    %c0_58 = arith.constant 0 : index
    %c0_59 = arith.constant 0 : index
    %60 = vector.load %arg9[%c0_58, %c0_59] : memref<1x16xf32, #tpu.memory_space<vmem>>, vector<1x16xf32>
    %61 = vector.broadcast %60 : vector<1x16xf32> to vector<16x16xf32>
    %62 = arith.addf %59, %61 : vector<16x16xf32>
    %63 = arith.addf %56, %62 : vector<16x16xf32>
    %cst_60 = arith.constant 0.000000e+00 : f32
    %64 = vector.broadcast %cst_60 : f32 to vector<16x16xf32>
    %65 = arith.maximumf %63, %64 : vector<16x16xf32>
    %cst_61 = arith.constant 0.000000e+00 : f32
    %66 = vector.broadcast %cst_61 : f32 to vector<1x16xf32>
    %c0_62 = arith.constant 0 : index
    %c0_63 = arith.constant 0 : index
    %67 = vector.load %arg28[%c0_62, %c0_63] : memref<18x16xf32, #tpu.memory_space<vmem>>, vector<1x16xf32>
    tpu.vector_store %arg28[%c0_62, %c0_63], %66 {strides = array<i32>} : memref<18x16xf32, #tpu.memory_space<vmem>>, vector<1x16xf32>,
    %c17_64 = arith.constant 17 : index
    %c0_65 = arith.constant 0 : index
    %68 = vector.load %arg28[%c17_64, %c0_65] : memref<18x16xf32, #tpu.memory_space<vmem>>, vector<1x16xf32>
    tpu.vector_store %arg28[%c17_64, %c0_65], %66 {strides = array<i32>} : memref<18x16xf32, #tpu.memory_space<vmem>>, vector<1x16xf32>,
    %c1_66 = arith.constant 1 : index
    %c0_67 = arith.constant 0 : index
    %69 = vector.load %arg28[%c1_66, %c0_67] : memref<18x16xf32, #tpu.memory_space<vmem>>, vector<16x16xf32>
    tpu.vector_store %arg28[%c1_66, %c0_67], %65 {strides = array<i32>} : memref<18x16xf32, #tpu.memory_space<vmem>>, vector<16x16xf32>,
    %c0_68 = arith.constant 0 : index
    %c0_69 = arith.constant 0 : index
    %70 = tpu.strided_load %arg28[%c0_68, %c0_69] {strides = array<i32: 2, 1>} : memref<18x16xf32, #tpu.memory_space<vmem>>, vector<8x16xf32>
    %c1_70 = arith.constant 1 : index
    %c0_71 = arith.constant 0 : index
    %71 = tpu.strided_load %arg28[%c1_70, %c0_71] {strides = array<i32: 2, 1>} : memref<18x16xf32, #tpu.memory_space<vmem>>, vector<8x16xf32>
    %c2_72 = arith.constant 2 : index
    %c0_73 = arith.constant 0 : index
    %72 = tpu.strided_load %arg28[%c2_72, %c0_73] {strides = array<i32: 2, 1>} : memref<18x16xf32, #tpu.memory_space<vmem>>, vector<8x16xf32>
    %73 = tpu.concatenate %70, %71, %72 in 1 : vector<8x16xf32>, vector<8x16xf32>, vector<8x16xf32> -> vector<8x48xf32>
    %c0_74 = arith.constant 0 : index
    %c0_75 = arith.constant 0 : index
    %74 = vector.load %arg10[%c0_74, %c0_75] : memref<48x64xf32, #tpu.memory_space<vmem>>, vector<48x64xf32>
    %cst_76 = arith.constant dense<0.000000e+00> : vector<8x64xf32>
    %75 = tpu.matmul %73, %74, %cst_76 {dimension_numbers = #tpu.dot_dimension_numbers<[1], [0], [0], [1], [0, 0, 1, 1], [], []>, precision = #tpu.contract_precision<fp32>} : vector<8x48xf32>, vector<48x64xf32>, vector<8x64xf32> -> vector<8x64xf32>
    %c0_77 = arith.constant 0 : index
    %c0_78 = arith.constant 0 : index
    %76 = vector.load %arg11[%c0_77, %c0_78] : memref<1x64xf32, #tpu.memory_space<vmem>>, vector<1x64xf32>
    %77 = vector.broadcast %76 : vector<1x64xf32> to vector<8x64xf32>
    %78 = arith.addf %75, %77 : vector<8x64xf32>
    %cst_79 = arith.constant 0.000000e+00 : f32
    %79 = vector.broadcast %cst_79 : f32 to vector<8x64xf32>
    %80 = arith.maximumf %78, %79 : vector<8x64xf32>
    %cst_80 = arith.constant 0.000000e+00 : f32
    %81 = vector.broadcast %cst_80 : f32 to vector<1x64xf32>
    %c0_81 = arith.constant 0 : index
    %c0_82 = arith.constant 0 : index
    %82 = vector.load %arg26[%c0_81, %c0_82] : memref<10x64xf32, #tpu.memory_space<vmem>>, vector<1x64xf32>
    tpu.vector_store %arg26[%c0_81, %c0_82], %81 {strides = array<i32>} : memref<10x64xf32, #tpu.memory_space<vmem>>, vector<1x64xf32>,
    %c9 = arith.constant 9 : index
    %c0_83 = arith.constant 0 : index
    %83 = vector.load %arg26[%c9, %c0_83] : memref<10x64xf32, #tpu.memory_space<vmem>>, vector<1x64xf32>
    tpu.vector_store %arg26[%c9, %c0_83], %81 {strides = array<i32>} : memref<10x64xf32, #tpu.memory_space<vmem>>, vector<1x64xf32>,
    %c1_84 = arith.constant 1 : index
    %c0_85 = arith.constant 0 : index
    %84 = vector.load %arg26[%c1_84, %c0_85] : memref<10x64xf32, #tpu.memory_space<vmem>>, vector<8x64xf32>
    tpu.vector_store %arg26[%c1_84, %c0_85], %80 {strides = array<i32>} : memref<10x64xf32, #tpu.memory_space<vmem>>, vector<8x64xf32>,
    %c0_86 = arith.constant 0 : index
    %c0_87 = arith.constant 0 : index
    %85 = vector.load %arg26[%c0_86, %c0_87] : memref<10x64xf32, #tpu.memory_space<vmem>>, vector<8x64xf32>
    %c1_88 = arith.constant 1 : index
    %c0_89 = arith.constant 0 : index
    %86 = vector.load %arg26[%c1_88, %c0_89] : memref<10x64xf32, #tpu.memory_space<vmem>>, vector<8x64xf32>
    %c2_90 = arith.constant 2 : index
    %c0_91 = arith.constant 0 : index
    %87 = vector.load %arg26[%c2_90, %c0_91] : memref<10x64xf32, #tpu.memory_space<vmem>>, vector<8x64xf32>
    %88 = tpu.concatenate %85, %86, %87 in 1 : vector<8x64xf32>, vector<8x64xf32>, vector<8x64xf32> -> vector<8x192xf32>
    %c0_92 = arith.constant 0 : index
    %c0_93 = arith.constant 0 : index
    %89 = vector.load %arg12[%c0_92, %c0_93] : memref<192x64xf32, #tpu.memory_space<vmem>>, vector<192x64xf32>
    %cst_94 = arith.constant dense<0.000000e+00> : vector<8x64xf32>
    %90 = tpu.matmul %88, %89, %cst_94 {dimension_numbers = #tpu.dot_dimension_numbers<[1], [0], [0], [1], [0, 0, 1, 1], [], []>, precision = #tpu.contract_precision<fp32>} : vector<8x192xf32>, vector<192x64xf32>, vector<8x64xf32> -> vector<8x64xf32>
    %c0_95 = arith.constant 0 : index
    %c0_96 = arith.constant 0 : index
    %91 = vector.load %arg13[%c0_95, %c0_96] : memref<1x64xf32, #tpu.memory_space<vmem>>, vector<1x64xf32>
    %92 = vector.broadcast %91 : vector<1x64xf32> to vector<8x64xf32>
    %93 = arith.addf %90, %92 : vector<8x64xf32>
    %c1_97 = arith.constant 1 : index
    %c0_98 = arith.constant 0 : index
    %94 = tpu.strided_load %arg28[%c1_97, %c0_98] {strides = array<i32: 2, 1>} : memref<18x16xf32, #tpu.memory_space<vmem>>, vector<8x16xf32>
    %c0_99 = arith.constant 0 : index
    %c0_100 = arith.constant 0 : index
    %95 = vector.load %arg14[%c0_99, %c0_100] : memref<16x64xf32, #tpu.memory_space<vmem>>, vector<16x64xf32>
    %cst_101 = arith.constant dense<0.000000e+00> : vector<8x64xf32>
    %96 = tpu.matmul %94, %95, %cst_101 {dimension_numbers = #tpu.dot_dimension_numbers<[1], [0], [0], [1], [0, 0, 1, 1], [], []>, precision = #tpu.contract_precision<fp32>} : vector<8x16xf32>, vector<16x64xf32>, vector<8x64xf32> -> vector<8x64xf32>
    %c0_102 = arith.constant 0 : index
    %c0_103 = arith.constant 0 : index
    %97 = vector.load %arg15[%c0_102, %c0_103] : memref<1x64xf32, #tpu.memory_space<vmem>>, vector<1x64xf32>
    %98 = vector.broadcast %97 : vector<1x64xf32> to vector<8x64xf32>
    %99 = arith.addf %96, %98 : vector<8x64xf32>
    %100 = arith.addf %93, %99 : vector<8x64xf32>
    %cst_104 = arith.constant 0.000000e+00 : f32
    %101 = vector.broadcast %cst_104 : f32 to vector<8x64xf32>
    %102 = arith.maximumf %100, %101 : vector<8x64xf32>
    %cst_105 = arith.constant 0.000000e+00 : f32
    %103 = vector.broadcast %cst_105 : f32 to vector<1x64xf32>
    %c0_106 = arith.constant 0 : index
    %c0_107 = arith.constant 0 : index
    %104 = vector.load %arg29[%c0_106, %c0_107] : memref<10x64xf32, #tpu.memory_space<vmem>>, vector<1x64xf32>
    tpu.vector_store %arg29[%c0_106, %c0_107], %103 {strides = array<i32>} : memref<10x64xf32, #tpu.memory_space<vmem>>, vector<1x64xf32>,
    %c9_108 = arith.constant 9 : index
    %c0_109 = arith.constant 0 : index
    %105 = vector.load %arg29[%c9_108, %c0_109] : memref<10x64xf32, #tpu.memory_space<vmem>>, vector<1x64xf32>
    tpu.vector_store %arg29[%c9_108, %c0_109], %103 {strides = array<i32>} : memref<10x64xf32, #tpu.memory_space<vmem>>, vector<1x64xf32>,
    %c1_110 = arith.constant 1 : index
    %c0_111 = arith.constant 0 : index
    %106 = vector.load %arg29[%c1_110, %c0_111] : memref<10x64xf32, #tpu.memory_space<vmem>>, vector<8x64xf32>
    tpu.vector_store %arg29[%c1_110, %c0_111], %102 {strides = array<i32>} : memref<10x64xf32, #tpu.memory_space<vmem>>, vector<8x64xf32>,
    %c0_112 = arith.constant 0 : index
    %c0_113 = arith.constant 0 : index
    %107 = tpu.strided_load %arg29[%c0_112, %c0_113] {strides = array<i32: 2, 1>} : memref<10x64xf32, #tpu.memory_space<vmem>>, vector<4x64xf32>
    %c1_114 = arith.constant 1 : index
    %c0_115 = arith.constant 0 : index
    %108 = tpu.strided_load %arg29[%c1_114, %c0_115] {strides = array<i32: 2, 1>} : memref<10x64xf32, #tpu.memory_space<vmem>>, vector<4x64xf32>
    %c2_116 = arith.constant 2 : index
    %c0_117 = arith.constant 0 : index
    %109 = tpu.strided_load %arg29[%c2_116, %c0_117] {strides = array<i32: 2, 1>} : memref<10x64xf32, #tpu.memory_space<vmem>>, vector<4x64xf32>
    %110 = tpu.concatenate %107, %108, %109 in 1 : vector<4x64xf32>, vector<4x64xf32>, vector<4x64xf32> -> vector<4x192xf32>
    %c0_118 = arith.constant 0 : index
    %c0_119 = arith.constant 0 : index
    %111 = vector.load %arg16[%c0_118, %c0_119] : memref<192x128xf32, #tpu.memory_space<vmem>>, vector<192x128xf32>
    %cst_120 = arith.constant dense<0.000000e+00> : vector<4x128xf32>
    %112 = tpu.matmul %110, %111, %cst_120 {dimension_numbers = #tpu.dot_dimension_numbers<[1], [0], [0], [1], [0, 0, 1, 1], [], []>, precision = #tpu.contract_precision<fp32>} : vector<4x192xf32>, vector<192x128xf32>, vector<4x128xf32> -> vector<4x128xf32>
    %c0_121 = arith.constant 0 : index
    %c0_122 = arith.constant 0 : index
    %113 = vector.load %arg17[%c0_121, %c0_122] : memref<1x128xf32, #tpu.memory_space<vmem>>, vector<1x128xf32>
    %114 = vector.broadcast %113 : vector<1x128xf32> to vector<4x128xf32>
    %115 = arith.addf %112, %114 : vector<4x128xf32>
    %cst_123 = arith.constant 0.000000e+00 : f32
    %116 = vector.broadcast %cst_123 : f32 to vector<4x128xf32>
    %117 = arith.maximumf %115, %116 : vector<4x128xf32>
    %cst_124 = arith.constant 0.000000e+00 : f32
    %118 = vector.broadcast %cst_124 : f32 to vector<1x128xf32>
    %c0_125 = arith.constant 0 : index
    %c0_126 = arith.constant 0 : index
    %119 = vector.load %arg27[%c0_125, %c0_126] : memref<6x128xf32, #tpu.memory_space<vmem>>, vector<1x128xf32>
    tpu.vector_store %arg27[%c0_125, %c0_126], %118 {strides = array<i32>} : memref<6x128xf32, #tpu.memory_space<vmem>>, vector<1x128xf32>,
    %c5 = arith.constant 5 : index
    %c0_127 = arith.constant 0 : index
    %120 = vector.load %arg27[%c5, %c0_127] : memref<6x128xf32, #tpu.memory_space<vmem>>, vector<1x128xf32>
    tpu.vector_store %arg27[%c5, %c0_127], %118 {strides = array<i32>} : memref<6x128xf32, #tpu.memory_space<vmem>>, vector<1x128xf32>,
    %c1_128 = arith.constant 1 : index
    %c0_129 = arith.constant 0 : index
    %121 = vector.load %arg27[%c1_128, %c0_129] : memref<6x128xf32, #tpu.memory_space<vmem>>, vector<4x128xf32>
    tpu.vector_store %arg27[%c1_128, %c0_129], %117 {strides = array<i32>} : memref<6x128xf32, #tpu.memory_space<vmem>>, vector<4x128xf32>,
    %c0_130 = arith.constant 0 : index
    %c0_131 = arith.constant 0 : index
    %122 = vector.load %arg27[%c0_130, %c0_131] : memref<6x128xf32, #tpu.memory_space<vmem>>, vector<4x128xf32>
    %c1_132 = arith.constant 1 : index
    %c0_133 = arith.constant 0 : index
    %123 = vector.load %arg27[%c1_132, %c0_133] : memref<6x128xf32, #tpu.memory_space<vmem>>, vector<4x128xf32>
    %c2_134 = arith.constant 2 : index
    %c0_135 = arith.constant 0 : index
    %124 = vector.load %arg27[%c2_134, %c0_135] : memref<6x128xf32, #tpu.memory_space<vmem>>, vector<4x128xf32>
    %125 = tpu.concatenate %122, %123, %124 in 1 : vector<4x128xf32>, vector<4x128xf32>, vector<4x128xf32> -> vector<4x384xf32>
    %c0_136 = arith.constant 0 : index
    %c0_137 = arith.constant 0 : index
    %126 = vector.load %arg18[%c0_136, %c0_137] : memref<384x128xf32, #tpu.memory_space<vmem>>, vector<384x128xf32>
    %cst_138 = arith.constant dense<0.000000e+00> : vector<4x128xf32>
    %127 = tpu.matmul %125, %126, %cst_138 {dimension_numbers = #tpu.dot_dimension_numbers<[1], [0], [0], [1], [0, 0, 1, 1], [], []>, precision = #tpu.contract_precision<fp32>} : vector<4x384xf32>, vector<384x128xf32>, vector<4x128xf32> -> vector<4x128xf32>
    %c0_139 = arith.constant 0 : index
    %c0_140 = arith.constant 0 : index
    %128 = vector.load %arg19[%c0_139, %c0_140] : memref<1x128xf32, #tpu.memory_space<vmem>>, vector<1x128xf32>
    %129 = vector.broadcast %128 : vector<1x128xf32> to vector<4x128xf32>
    %130 = arith.addf %127, %129 : vector<4x128xf32>
    %c1_141 = arith.constant 1 : index
    %c0_142 = arith.constant 0 : index
    %131 = tpu.strided_load %arg29[%c1_141, %c0_142] {strides = array<i32: 2, 1>} : memref<10x64xf32, #tpu.memory_space<vmem>>, vector<4x64xf32>
    %c0_143 = arith.constant 0 : index
    %c0_144 = arith.constant 0 : index
    %132 = vector.load %arg20[%c0_143, %c0_144] : memref<64x128xf32, #tpu.memory_space<vmem>>, vector<64x128xf32>
    %cst_145 = arith.constant dense<0.000000e+00> : vector<4x128xf32>
    %133 = tpu.matmul %131, %132, %cst_145 {dimension_numbers = #tpu.dot_dimension_numbers<[1], [0], [0], [1], [0, 0, 1, 1], [], []>, precision = #tpu.contract_precision<fp32>} : vector<4x64xf32>, vector<64x128xf32>, vector<4x128xf32> -> vector<4x128xf32>
    %c0_146 = arith.constant 0 : index
    %c0_147 = arith.constant 0 : index
    %134 = vector.load %arg21[%c0_146, %c0_147] : memref<1x128xf32, #tpu.memory_space<vmem>>, vector<1x128xf32>
    %135 = vector.broadcast %134 : vector<1x128xf32> to vector<4x128xf32>
    %136 = arith.addf %133, %135 : vector<4x128xf32>
    %137 = arith.addf %130, %136 : vector<4x128xf32>
    %cst_148 = arith.constant 0.000000e+00 : f32
    %138 = vector.broadcast %cst_148 : f32 to vector<4x128xf32>
    %139 = arith.maximumf %137, %138 : vector<4x128xf32>
    %c0_149 = arith.constant 0 : index
    %c0_150 = arith.constant 0 : index
    %c0_151 = arith.constant 0 : index
    %140 = vector.load %arg22[%c0_149, %c0_150, %c0_151] : memref<1x4x128xf32, #tpu.memory_space<vmem>>, vector<1x4x128xf32>
    %141 = vector.shape_cast %140 : vector<1x4x128xf32> to vector<4x128xf32>
    %142 = vector.shape_cast %139 : vector<4x128xf32> to vector<1x4x128xf32>
    tpu.vector_store %arg22[%c0_149, %c0_150, %c0_151], %142 {strides = array<i32>} : memref<1x4x128xf32, #tpu.memory_space<vmem>>, vector<1x4x128xf32>,
    return
  }
  func.func @transform_0(%arg0: i32) -> (i32, i32, i32) {
    %c0_i32 = arith.constant 0 : i32
    %c0_i32_0 = arith.constant 0 : i32
    %c0_i32_1 = arith.constant 0 : i32
    return %arg0, %c0_i32, %c0_i32_0 : i32, i32, i32
  }
  func.func @transform_1(%arg0: i32) -> (i32, i32) {
    %c0_i32 = arith.constant 0 : i32
    %c0_i32_0 = arith.constant 0 : i32
    %c0_i32_1 = arith.constant 0 : i32
    return %c0_i32, %c0_i32_0 : i32, i32
  }
  func.func @transform_2(%arg0: i32) -> (i32, i32) {
    %c0_i32 = arith.constant 0 : i32
    %c0_i32_0 = arith.constant 0 : i32
    %c0_i32_1 = arith.constant 0 : i32
    return %c0_i32, %c0_i32_0 : i32, i32
  }
  func.func @transform_3(%arg0: i32) -> (i32, i32) {
    %c0_i32 = arith.constant 0 : i32
    %c0_i32_0 = arith.constant 0 : i32
    %c0_i32_1 = arith.constant 0 : i32
    return %c0_i32, %c0_i32_0 : i32, i32
  }
  func.func @transform_4(%arg0: i32) -> (i32, i32) {
    %c0_i32 = arith.constant 0 : i32
    %c0_i32_0 = arith.constant 0 : i32
    %c0_i32_1 = arith.constant 0 : i32
    return %c0_i32, %c0_i32_0 : i32, i32
  }
  func.func @transform_5(%arg0: i32) -> (i32, i32) {
    %c0_i32 = arith.constant 0 : i32
    %c0_i32_0 = arith.constant 0 : i32
    %c0_i32_1 = arith.constant 0 : i32
    return %c0_i32, %c0_i32_0 : i32, i32
  }
  func.func @transform_6(%arg0: i32) -> (i32, i32) {
    %c0_i32 = arith.constant 0 : i32
    %c0_i32_0 = arith.constant 0 : i32
    %c0_i32_1 = arith.constant 0 : i32
    return %c0_i32, %c0_i32_0 : i32, i32
  }
  func.func @transform_7(%arg0: i32) -> (i32, i32) {
    %c0_i32 = arith.constant 0 : i32
    %c0_i32_0 = arith.constant 0 : i32
    %c0_i32_1 = arith.constant 0 : i32
    return %c0_i32, %c0_i32_0 : i32, i32
  }
  func.func @transform_8(%arg0: i32) -> (i32, i32) {
    %c0_i32 = arith.constant 0 : i32
    %c0_i32_0 = arith.constant 0 : i32
    %c0_i32_1 = arith.constant 0 : i32
    return %c0_i32, %c0_i32_0 : i32, i32
  }
  func.func @transform_9(%arg0: i32) -> (i32, i32) {
    %c0_i32 = arith.constant 0 : i32
    %c0_i32_0 = arith.constant 0 : i32
    %c0_i32_1 = arith.constant 0 : i32
    return %c0_i32, %c0_i32_0 : i32, i32
  }
  func.func @transform_10(%arg0: i32) -> (i32, i32) {
    %c0_i32 = arith.constant 0 : i32
    %c0_i32_0 = arith.constant 0 : i32
    %c0_i32_1 = arith.constant 0 : i32
    return %c0_i32, %c0_i32_0 : i32, i32
  }
  func.func @transform_11(%arg0: i32) -> (i32, i32) {
    %c0_i32 = arith.constant 0 : i32
    %c0_i32_0 = arith.constant 0 : i32
    %c0_i32_1 = arith.constant 0 : i32
    return %c0_i32, %c0_i32_0 : i32, i32
  }
  func.func @transform_12(%arg0: i32) -> (i32, i32) {
    %c0_i32 = arith.constant 0 : i32
    %c0_i32_0 = arith.constant 0 : i32
    %c0_i32_1 = arith.constant 0 : i32
    return %c0_i32, %c0_i32_0 : i32, i32
  }
  func.func @transform_13(%arg0: i32) -> (i32, i32) {
    %c0_i32 = arith.constant 0 : i32
    %c0_i32_0 = arith.constant 0 : i32
    %c0_i32_1 = arith.constant 0 : i32
    return %c0_i32, %c0_i32_0 : i32, i32
  }
  func.func @transform_14(%arg0: i32) -> (i32, i32) {
    %c0_i32 = arith.constant 0 : i32
    %c0_i32_0 = arith.constant 0 : i32
    %c0_i32_1 = arith.constant 0 : i32
    return %c0_i32, %c0_i32_0 : i32, i32
  }
  func.func @transform_15(%arg0: i32) -> (i32, i32) {
    %c0_i32 = arith.constant 0 : i32
    %c0_i32_0 = arith.constant 0 : i32
    %c0_i32_1 = arith.constant 0 : i32
    return %c0_i32, %c0_i32_0 : i32, i32
  }
  func.func @transform_16(%arg0: i32) -> (i32, i32) {
    %c0_i32 = arith.constant 0 : i32
    %c0_i32_0 = arith.constant 0 : i32
    %c0_i32_1 = arith.constant 0 : i32
    return %c0_i32, %c0_i32_0 : i32, i32
  }
  func.func @transform_17(%arg0: i32) -> (i32, i32) {
    %c0_i32 = arith.constant 0 : i32
    %c0_i32_0 = arith.constant 0 : i32
    %c0_i32_1 = arith.constant 0 : i32
    return %c0_i32, %c0_i32_0 : i32, i32
  }
  func.func @transform_18(%arg0: i32) -> (i32, i32) {
    %c0_i32 = arith.constant 0 : i32
    %c0_i32_0 = arith.constant 0 : i32
    %c0_i32_1 = arith.constant 0 : i32
    return %c0_i32, %c0_i32_0 : i32, i32
  }
  func.func @transform_19(%arg0: i32) -> (i32, i32) {
    %c0_i32 = arith.constant 0 : i32
    %c0_i32_0 = arith.constant 0 : i32
    %c0_i32_1 = arith.constant 0 : i32
    return %c0_i32, %c0_i32_0 : i32, i32
  }
  func.func @transform_20(%arg0: i32) -> (i32, i32) {
    %c0_i32 = arith.constant 0 : i32
    %c0_i32_0 = arith.constant 0 : i32
    %c0_i32_1 = arith.constant 0 : i32
    return %c0_i32, %c0_i32_0 : i32, i32
  }
  func.func @transform_21(%arg0: i32) -> (i32, i32, i32) {
    %c0_i32 = arith.constant 0 : i32
    %c0_i32_0 = arith.constant 0 : i32
    %c0_i32_1 = arith.constant 0 : i32
    return %arg0, %c0_i32, %c0_i32_0 : i32, i32, i32
  }
}

</mosaic_0001>

<bundles_post_ra>
// kernel: tpu_custom_call.1
= control target key start
LH: loop header
LB: loop body
LE: loop exit
PB: predicated region body
PF: predicated region fallthrough
CT: control target
= control target key end

     0   :  { %s12801_s0 = inlined_call_operand.vmem [shape: f32[2,16,1], index: 0, kind: input, shape index: {}]   ;;  %s12802_s1 = inlined_call_operand.hbm [shape: f32[3,4], index: 1, kind: input, shape index: {}]   ;;  %s12803_s2 = inlined_call_operand.vmem [shape: f32[1,4], index: 2, kind: input, shape index: {}]   ;;  %s12804_s3 = inlined_call_operand.vmem [shape: f32[12,16], index: 3, kind: input, shape index: {}]   ;;  %s12805_s4 = inlined_call_operand.vmem [shape: f32[1,16], index: 4, kind: input, shape index: {}]   ;;  %s12806_s5 = inlined_call_operand.vmem [shape: f32[48,16], index: 5, kind: input, shape index: {}]   ;;  %s12807_s6 = inlined_call_operand.hbm [shape: f32[1,16], index: 6, kind: input, shape index: {}]   ;;  %s12808_s7 = inlined_call_operand.hbm [shape: f32[4,16], index: 7, kind: input, shape index: {}]   ;;  %s12809_s8 = inlined_call_operand.hbm [shape: f32[1,16], index: 8, kind: input, shape index: {}]   ;;  %s12810_s9 = inlined_call_operand.hbm [shape: f32[48,64], index: 9, kind: input, shape index: {}]   ;;  %s12811_s10 = inlined_call_operand.hbm [shape: f32[1,64], index: 10, kind: input, shape index: {}]   ;;  %s12812_s11 = inlined_call_operand.vmem [shape: f32[192,64], index: 11, kind: input, shape index: {}]   ;;  %s12813_s12 = inlined_call_operand.hbm [shape: f32[1,64], index: 12, kind: input, shape index: {}]   ;;  %s12814_s13 = inlined_call_operand.vmem [shape: f32[16,64], index: 13, kind: input, shape index: {}]   ;;  %s12815_s14 = inlined_call_operand.hbm [shape: f32[1,64], index: 14, kind: input, shape index: {}]   ;;  %s12816_s15 = inlined_call_operand.hbm [shape: f32[192,128], index: 15, kind: input, shape index: {}]   ;;  %s12817_s16 = inlined_call_operand.hbm [shape: f32[1,128], index: 16, kind: input, shape index: {}]   ;;  %s12818_s17 = inlined_call_operand.vmem [shape: f32[384,128], index: 17, kind: input, shape index: {}]   ;;  %s12819_s18 = inlined_call_operand.vmem [shape: f32[1,128], index: 18, kind: input, shape index: {}]   ;;  %s12820_s19 = inlined_call_operand.vmem [shape: f32[64,128], index: 19, kind: input, shape index: {}]   ;;  %s12821_s20 = inlined_call_operand.vmem [shape: f32[1,128], index: 20, kind: input, shape index: {}]   ;;  %s12822_s21 = inlined_call_operand.hbm [shape: f32[2,4,128], index: 21, kind: output, shape index: {}]  }
   0x1   :  { %12921 = sst [smem:[#allocation51_spill]] %s12801_s0 }
   0x2   :  { %12922 = sst [smem:[#allocation52_spill]] %s12802_s1 }
   0x3   :  { %12923 = sst [smem:[#allocation53_spill]] %s12803_s2 }
   0x4   :  { %12924 = sst [smem:[#allocation54_spill]] %s12804_s3 }
   0x5   :  { %12925 = sst [smem:[#allocation55_spill]] %s12805_s4 }
   0x6   :  { %12926 = sst [smem:[#allocation56_spill]] %s12806_s5 }
   0x7   :  { %12927 = sst [smem:[#allocation57_spill]] %s12807_s6 }
   0x8   :  { %12928 = sst [smem:[#allocation58_spill]] %s12808_s7 }
   0x9   :  { %12929 = sst [smem:[#allocation59_spill]] %s12809_s8 }
   0xa   :  { %12930 = sst [smem:[#allocation60_spill]] %s12811_s10 }
   0xb   :  { %12931 = sst [smem:[#allocation61_spill]] %s12815_s14 }
   0xc   :  { %12932 = sst [smem:[#allocation62_spill]] %s12821_s20 }
   0xd   :  { %12933 = sst [smem:[#allocation63_spill]] %s12822_s21 }
   0xe   :  { %26 = vsyncpa [#allocation10], 0 }
   0xf   :  { %27 = vsyncpa [#allocation13], 0 }
  0x10   :  { %28 = vsyncpa [#allocation16], 0 }
  0x11   :  { %29 = vsyncpa [#allocation19], 0 }
  0x12   :  { %30 = vsyncpa [#allocation22], 0 }
  0x13   :  { %31 = vsyncpa [#allocation25], 0 }
  0x14   :  { %32 = vsyncpa [#allocation11], 0 }
  0x15   :  { %34 = vsyncpa [#allocation11 + $0x1], 0  ;;  %s10409_s2 = smov 0   ;;  %s10411_s25 = smov 0  }
  0x16   :  { %s10413_s26 = smov 0   ;;  %s10415_s27 = smov 0  }
  0x17 LB: > { %12934 = sst [smem:[#allocation34_spill]] %s10263_s2  ;;  %s10430_s3 = sadd.s32 4294967295, %s10275_s27   ;;  %s10275_s27 = sphi %s10415_s27, %s13067_s27   ;;  %s10271_s26 = sphi %s10413_s26, %s13069_s26   ;;  %s10267_s25 = sphi %s10411_s25, %s13071_s25   ;;  %s10263_s2 = sphi %s10409_s2, %s13070_s2  }
  0x18   : > { %12935 = sst [smem:[#allocation35_spill]] %s10271_s26  ;;  %s7465_s28 = sadd.s32 4294967294, %s10275_s27  }
  0x19   : > { %12936 = sst [smem:[#allocation36_spill]] %s10275_s27  ;;  %s10434_s29 = sadd.s32 1, %s10275_s27  }
  0x1a   : > { %12937 = sst [smem:[#allocation37_spill]] %s10434_s29  ;;  %s493_s0 = sadd.s32 1, %s10271_s26 }
  0x1b   : > { %s490_s4 = ssub.s32 %s10275_s27, %s10434_s29  ;;  %p503_p0 = scmp.ne.s32.totalorder %s10271_s26, %s10267_s25 }
  0x1c   : > { %p491_p1 = scmp.eq.s32.totalorder %s490_s4, 0  ;;  %p504_p2 = scmp.eq.s32.totalorder %s10430_s3, 1 }
  0x1d   : > { %p509_p3 = scmp.ne.s32.totalorder %s10267_s25, %s10263_s2  ;;  %p510_p4 = scmp.eq.s32.totalorder %s7465_s28, 1 }
  0x1e   : > { %s10445_s30 = scalar_select %p491_p1, %s10271_s26, %s493_s0  }
  0x1f   : > { %p10447_p5 = por %p504_p2, %p503_p0  ;;  %p10451_p6 = por %p510_p4, %p509_p3 }
  0x20   : > { %12938 = sst [smem:[#allocation38_spill]] %s10445_s30  ;;  %p7466_p7 = scmp.ge.s32.totalorder %s10275_s27, 1 }
  0x21   : > { %s12939_s5 = scalar_select %p10447_p5, 1, 0 }
  0x22   : > { %s12941_s22 = scalar_select %p10451_p6, 1, 0 }
  0x23   : > { %12940 = sst [smem:[#allocation39_spill]] %s12939_s5  ;;  %p517_p8 = scmp.lt.s32.totalorder %s10275_s27, 3 }
  0x24   : > { %12942 = sst [smem:[#allocation40_spill]] %s12941_s22  ;;  %p12833_p9 = scmp.eq.s32.totalorder %s10430_s3, 0 }
  0x25   : > { %p10458_p10 = pnand %p7466_p7, %p517_p8  ;;  %s10277_s1 = smov [#allocation12]  }
  0x26   : > { %s553_s24 = sshll.u32 %s10277_s1, 4  ;;  %s10278_s28 = smov [#allocation15]   ;;  %s554_s24 = int_to_ptr.vmem [resolvable:$true] %s553_s24 }
  0x27   : > { %s12943_s23 = scalar_select %p10458_p10, 1, 0 }
  0x28   : > { %p9798_p11 = pneg %p10458_p10  ;;  %s575_s0 = sshll.u32 %s10278_s28, 4  ;;  %s10470_s0 = int_to_ptr.vmem [resolvable:$true] %s575_s0 }
  0x29   : > { %s10279_s30 = smov [#allocation18]   ;;  %s12945_s6 = sld [smem:[#allocation57_spill]] }
  0x2a   : > { %p10466_p12 = pnand %p12833_p9, %p9798_p11  ;;  %s599_s26 = sshll.u32 %s10279_s30, 4  ;;  %s10472_s26 = int_to_ptr.vmem [resolvable:$true] %s599_s26 }
  0x2c   : > { %p10482_p0 = pneg %p10466_p12 }
  0x2f   : > { %s9909_s1 = scalar_lea.hbm %s12945_s6, 16 }
  0x30   : > { %p9910_p13 = scmp.ne.s32.totalorder %s12945_s6, %s9909_s1  ;;  %p9916_p3 = scmp.lt.u32.totalorder %s9909_s1, %s12945_s6 }
  0x32   : > { %p9912_p1 = pnand %p10482_p0, %p9910_p13 }
  0x34   : > { %p9913_p2 = pneg %p9912_p1 }
  0x36   : > { %p9918_p4 = pnand %p9916_p3, %p9913_p2 }
  0x38   : > { %9921 = shalt.err (!%p9918_p4)
}
  0x39   : > { %s9922_s29 = scalar_lea.vmem %s554_s24, 16  ;;  %s9929_s2 = scalar_lea.vmem %s554_s24, 32 }
  0x3a   : > { %p9923_p7 = scmp.ne.s32.totalorder %s554_s24, %s9922_s29  ;;  %p9930_p9 = scmp.lt.s32.totalorder %s554_s24, %s554_s24 }
  0x3b   : > { %p9931_p6 = scmp.lt.s32.totalorder %s9929_s2, %s9922_s29 }
  0x3c   : > { %p9925_p8 = pnand %p9923_p7, %p10482_p0 }
  0x3d   : > { %p9932_p5 = por %p9931_p6, %p9930_p9 }
  0x3e   : > { %p9926_p11 = pneg %p9925_p8 }
  0x40   : > { %p9933_p10 = pnand %p9932_p5, %p9926_p11 }
  0x42   : > { %9936 = shalt.err (!%p9933_p10)
}
  0x43   : > { %9804 = dma.hbm_to_vmem [thread:$0]  (!%p10466_p12), %s12945_s6, 16, %s554_s24, [#allocation13]  }
  0x44   : > { %s12947_s8 = sld [smem:[#allocation59_spill]] }
  0x4a   : > { %s9937_s30 = scalar_lea.hbm %s12947_s8, 16 }
  0x4b   : > { %p9938_p13 = scmp.ne.s32.totalorder %s12947_s8, %s9937_s30  ;;  %p9944_p5 = scmp.lt.u32.totalorder %s9937_s30, %s12947_s8 }
  0x4d   : > { %p9940_p1 = pnand %p9938_p13, %p10482_p0 }
  0x4f   : > { %p9941_p6 = pneg %p9940_p1 }
  0x51   : > { %p9946_p9 = pnand %p9944_p5, %p9941_p6 }
  0x53   : > { %9949 = shalt.err (!%p9946_p9)
}
  0x54   : > { %s9950_s24 = scalar_lea.vmem %s10470_s0, 16  ;;  %s9957_s20 = scalar_lea.vmem %s10470_s0, 32 }
  0x55   : > { %p9951_p10 = scmp.ne.s32.totalorder %s10470_s0, %s9950_s24  ;;  %p9958_p4 = scmp.lt.s32.totalorder %s10470_s0, %s10470_s0 }
  0x56   : > { %p9959_p7 = scmp.lt.s32.totalorder %s9957_s20, %s9950_s24 }
  0x57   : > { %p9953_p2 = pnand %p9951_p10, %p10482_p0 }
  0x58   : > { %p9960_p8 = por %p9959_p7, %p9958_p4 }
  0x59   : > { %p9954_p3 = pneg %p9953_p2 }
  0x5b   : > { %p9961_p11 = pnand %p9960_p8, %p9954_p3 }
  0x5d   : > { %9964 = shalt.err (!%p9961_p11)
}
  0x5e   : > { %9810 = dma.hbm_to_vmem [thread:$0]  (!%p10466_p12), %s12947_s8, 16, %s10470_s0, [#allocation16]  }
  0x5f   : > { %s12948_s10 = sld [smem:[#allocation60_spill]] }
  0x65   : > { %s9965_s1 = scalar_lea.hbm %s12948_s10, 16 }
  0x66   : > { %p9966_p13 = scmp.ne.s32.totalorder %s12948_s10, %s9965_s1  ;;  %p9972_p5 = scmp.lt.u32.totalorder %s9965_s1, %s12948_s10 }
  0x68   : > { %p9968_p1 = pnand %p9966_p13, %p10482_p0 }
  0x6a   : > { %p9969_p6 = pneg %p9968_p1 }
  0x6c   : > { %p9974_p9 = pnand %p9972_p5, %p9969_p6 }
  0x6e   : > { %9977 = shalt.err (!%p9974_p9)
}
  0x6f   : > { %s9978_s0 = scalar_lea.vmem %s10472_s26, 16  ;;  %s9985_s20 = scalar_lea.vmem %s10472_s26, 32 }
  0x70   : > { %p9979_p10 = scmp.ne.s32.totalorder %s10472_s26, %s9978_s0  ;;  %p9986_p4 = scmp.lt.s32.totalorder %s10472_s26, %s10472_s26 }
  0x71   : > { %p9987_p7 = scmp.lt.s32.totalorder %s9985_s20, %s9978_s0 }
  0x72   : > { %p9981_p2 = pnand %p9979_p10, %p10482_p0 }
  0x73   : > { %p9988_p8 = por %p9987_p7, %p9986_p4 }
  0x74   : > { %p9982_p3 = pneg %p9981_p2 }
  0x76   : > { %p9989_p11 = pnand %p9988_p8, %p9982_p3 }
  0x78   : > { %9992 = shalt.err (!%p9989_p11)
}
  0x79   : > { %9816 = dma.hbm_to_vmem [thread:$0]  (!%p10466_p12), %s12948_s10, 16, %s10472_s26, [#allocation19]  }
  0x7a   : > { %s10280_s22 = smov [#allocation21]   ;;  %s10281_s1 = smov [#allocation9]  }
  0x7b   : > { %s627_s21 = sshll.u32 %s10280_s22, 4  ;;  %s530_s30 = sshll.u32 %s10281_s1, 4  ;;  %s628_s21 = int_to_ptr.vmem [resolvable:$true] %s627_s21  ;;  %s531_s30 = int_to_ptr.vmem [resolvable:$true] %s530_s30 }
  0x7c   : > { %s12949_s14 = sld [smem:[#allocation61_spill]] }
  0x82   : > { %s9993_s24 = scalar_lea.hbm %s12949_s14, 16 }
  0x83   : > { %p9994_p13 = scmp.ne.s32.totalorder %s12949_s14, %s9993_s24  ;;  %p10000_p5 = scmp.lt.u32.totalorder %s9993_s24, %s12949_s14 }
  0x85   : > { %p9996_p1 = pnand %p9994_p13, %p10482_p0 }
  0x87   : > { %p9997_p6 = pneg %p9996_p1 }
  0x89   : > { %p10002_p9 = pnand %p10000_p5, %p9997_p6 }
  0x8b   : > { %10005 = shalt.err (!%p10002_p9)
}
  0x8c   : > { %s10006_s26 = scalar_lea.vmem %s628_s21, 16  ;;  %s10013_s27 = scalar_lea.vmem %s628_s21, 32 }
  0x8d   : > { %p10007_p10 = scmp.ne.s32.totalorder %s628_s21, %s10006_s26  ;;  %p10014_p4 = scmp.lt.s32.totalorder %s628_s21, %s628_s21 }
  0x8e   : > { %p10015_p7 = scmp.lt.s32.totalorder %s10013_s27, %s10006_s26 }
  0x8f   : > { %p10009_p2 = pnand %p10007_p10, %p10482_p0 }
  0x90   : > { %p10016_p8 = por %p10015_p7, %p10014_p4 }
  0x91   : > { %p10010_p3 = pneg %p10009_p2 }
  0x93   : > { %p10017_p11 = pnand %p10016_p8, %p10010_p3 }
  0x95   : > { %10020 = shalt.err (!%p10017_p11)
}
  0x96   : > { %9822 = dma.hbm_to_vmem [thread:$0]  (!%p10466_p12), %s12949_s14, 16, %s628_s21, [#allocation22]  }
  0x97   : > { %s12950_s2 = sld [smem:[#allocation52_spill]] }
  0x9d   : > { %s12951_s24 = smov %s12950_s2  ;;  %s10021_s0 = scalar_lea.hbm %s12950_s2, 64 }
  0x9e   : > { %p10022_p13 = scmp.ne.s32.totalorder %s12951_s24, %s10021_s0  ;;  %p10028_p5 = scmp.lt.u32.totalorder %s10021_s0, %s12951_s24 }
  0xa0   : > { %p10024_p1 = pnand %p10022_p13, %p10482_p0 }
  0xa2   : > { %p10025_p6 = pneg %p10024_p1 }
  0xa4   : > { %p10030_p9 = pnand %p10028_p5, %p10025_p6 }
  0xa6   : > { %10033 = shalt.err (!%p10030_p9)
}
  0xa7   : > { %s10034_s22 = scalar_lea.vmem %s531_s30, 64  ;;  %p10042_p4 = scmp.lt.s32.totalorder %s531_s30, %s531_s30 }
  0xa8   : > { %p10035_p10 = scmp.ne.s32.totalorder %s531_s30, %s10034_s22  ;;  %p10043_p7 = scmp.lt.s32.totalorder %s10034_s22, %s10034_s22 }
  0xaa   : > { %p10037_p2 = pnand %p10035_p10, %p10482_p0  ;;  %p10044_p8 = por %p10043_p7, %p10042_p4 }
  0xac   : > { %p10038_p3 = pneg %p10037_p2 }
  0xae   : > { %p10045_p11 = pnand %p10044_p8, %p10038_p3 }
  0xb0   : > { %10048 = shalt.err (!%p10045_p11)
}
  0xb1   : > { %9801 = dma.hbm_to_vmem [thread:$0]  (!%p10466_p12), %s12951_s24, 64, %s531_s30, [#allocation10]  }
  0xb2   : > { %s10282_s6 = smov [#allocation14]   ;;  %s10283_s2 = smov [#allocation17]  }
  0xb3   : > { %s564_s29 = sshll.u32 %s10282_s6, 4  ;;  %s585_s0 = sshll.u32 %s10283_s2, 4  ;;  %s565_s29 = int_to_ptr.vmem [resolvable:$true] %s564_s29  ;;  %s586_s0 = int_to_ptr.vmem [resolvable:$true] %s585_s0 }
  0xb4   : > { %s12952_s7 = sld [smem:[#allocation58_spill]] }
  0xba   : > { %s10049_s26 = scalar_lea.hbm %s12952_s7, 64 }
  0xbb   : > { %p10050_p13 = scmp.ne.s32.totalorder %s12952_s7, %s10049_s26  ;;  %p10056_p5 = scmp.lt.u32.totalorder %s10049_s26, %s12952_s7 }
  0xbd   : > { %p10052_p1 = pnand %p10050_p13, %p10482_p0 }
  0xbf   : > { %p10053_p6 = pneg %p10052_p1 }
  0xc1   : > { %p10058_p9 = pnand %p10056_p5, %p10053_p6 }
  0xc3   : > { %10061 = shalt.err (!%p10058_p9)
}
  0xc4   : > { %s10062_s30 = scalar_lea.vmem %s565_s29, 64  ;;  %p10070_p4 = scmp.lt.s32.totalorder %s565_s29, %s565_s29 }
  0xc5   : > { %p10063_p10 = scmp.ne.s32.totalorder %s565_s29, %s10062_s30  ;;  %p10071_p7 = scmp.lt.s32.totalorder %s10062_s30, %s10062_s30 }
  0xc7   : > { %p10065_p2 = pnand %p10063_p10, %p10482_p0  ;;  %p10072_p8 = por %p10071_p7, %p10070_p4 }
  0xc9   : > { %p10066_p3 = pneg %p10065_p2 }
  0xcb   : > { %p10073_p11 = pnand %p10072_p8, %p10066_p3 }
  0xcd   : > { %10076 = shalt.err (!%p10073_p11)
}
  0xce   : > { %9807 = dma.hbm_to_vmem [thread:$0]  (!%p10466_p12), %s12952_s7, 64, %s565_s29, [#allocation13]  }
  0xcf   : > { %s10077_s20 = scalar_lea.hbm %s12810_s9, 768 }
  0xd0   : > { %p10078_p13 = scmp.ne.s32.totalorder %s12810_s9, %s10077_s20  ;;  %p10084_p5 = scmp.lt.u32.totalorder %s10077_s20, %s12810_s9 }
  0xd2   : > { %p10080_p1 = pnand %p10078_p13, %p10482_p0 }
  0xd4   : > { %p10081_p6 = pneg %p10080_p1 }
  0xd6   : > { %p10086_p9 = pnand %p10084_p5, %p10081_p6 }
  0xd8   : > { %10089 = shalt.err (!%p10086_p9)
}
  0xd9   : > { %s10090_s21 = scalar_lea.vmem %s586_s0, 768  ;;  %p10098_p4 = scmp.lt.s32.totalorder %s586_s0, %s586_s0 }
  0xda   : > { %p10091_p10 = scmp.ne.s32.totalorder %s586_s0, %s10090_s21  ;;  %p10099_p7 = scmp.lt.s32.totalorder %s10090_s21, %s10090_s21 }
  0xdc   : > { %p10093_p2 = pnand %p10091_p10, %p10482_p0  ;;  %p10100_p8 = por %p10099_p7, %p10098_p4 }
  0xde   : > { %p10094_p3 = pneg %p10093_p2 }
  0xe0   : > { %p10101_p11 = pnand %p10100_p8, %p10094_p3 }
  0xe2   : > { %10104 = shalt.err (!%p10101_p11)
}
  0xe3   : > { %s10284_s29 = smov 128   ;;  %s10285_s30 = smov 8  }
  0xe4   : > { %9813 = dma.hbm_to_vmem [thread:$0]  (!%p10466_p12), %s12810_s9, 768, %s586_s0, [#allocation16], %s10284_s29, %s10284_s29, %s10285_s30  }
  0xe5   : > { %s10286_s8 = smov [#allocation20]   ;;  %s10287_s20 = smov [#allocation23]  }
  0xe6   : > { %s613_s2 = sshll.u32 %s10286_s8, 4  ;;  %s637_s5 = sshll.u32 %s10287_s20, 4  ;;  %s614_s2 = int_to_ptr.vmem [resolvable:$true] %s613_s2  ;;  %s638_s5 = int_to_ptr.vmem [resolvable:$true] %s637_s5 }
  0xe7   : > { %s10105_s22 = scalar_lea.hbm %s12813_s12, 16 }
  0xe8   : > { %p10106_p13 = scmp.ne.s32.totalorder %s12813_s12, %s10105_s22  ;;  %p10112_p5 = scmp.lt.u32.totalorder %s10105_s22, %s12813_s12 }
  0xea   : > { %p10108_p1 = pnand %p10106_p13, %p10482_p0 }
  0xec   : > { %p10109_p6 = pneg %p10108_p1 }
  0xee   : > { %p10114_p9 = pnand %p10112_p5, %p10109_p6 }
  0xf0   : > { %10117 = shalt.err (!%p10114_p9)
}
  0xf1   : > { %s10118_s0 = scalar_lea.vmem %s614_s2, 16  ;;  %s10125_s1 = scalar_lea.vmem %s614_s2, 32 }
  0xf2   : > { %p10119_p10 = scmp.ne.s32.totalorder %s614_s2, %s10118_s0  ;;  %p10126_p4 = scmp.lt.s32.totalorder %s614_s2, %s614_s2 }
  0xf3   : > { %p10127_p7 = scmp.lt.s32.totalorder %s10125_s1, %s10118_s0 }
  0xf4   : > { %p10121_p2 = pnand %p10119_p10, %p10482_p0 }
  0xf5   : > { %p10128_p8 = por %p10127_p7, %p10126_p4 }
  0xf6   : > { %p10122_p3 = pneg %p10121_p2 }
  0xf8   : > { %p10129_p11 = pnand %p10128_p8, %p10122_p3 }
  0xfa   : > { %10132 = shalt.err (!%p10129_p11)
}
  0xfb   : > { %9819 = dma.hbm_to_vmem [thread:$0]  (!%p10466_p12), %s12813_s12, 16, %s614_s2, [#allocation19]  }
  0xfc   : > { %s10133_s8 = scalar_lea.hbm %s12816_s15, 3072 }
  0xfd   : > { %p10134_p13 = scmp.ne.s32.totalorder %s12816_s15, %s10133_s8  ;;  %p10140_p5 = scmp.lt.u32.totalorder %s10133_s8, %s12816_s15 }
  0xff   : > { %p10136_p1 = pnand %p10134_p13, %p10482_p0 }
 0x101   : > { %p10137_p6 = pneg %p10136_p1 }
 0x103   : > { %p10142_p9 = pnand %p10140_p5, %p10137_p6 }
 0x105   : > { %10145 = shalt.err (!%p10142_p9)
}
 0x106   : > { %s10146_s21 = scalar_lea.vmem %s638_s5, 3072  ;;  %p10154_p4 = scmp.lt.s32.totalorder %s638_s5, %s638_s5 }
 0x107   : > { %p10147_p10 = scmp.ne.s32.totalorder %s638_s5, %s10146_s21  ;;  %p10155_p7 = scmp.lt.s32.totalorder %s10146_s21, %s10146_s21 }
 0x109   : > { %p10149_p2 = pnand %p10147_p10, %p10482_p0  ;;  %p10156_p8 = por %p10155_p7, %p10154_p4 }
 0x10b   : > { %p10150_p3 = pneg %p10149_p2 }
 0x10d   : > { %p10157_p11 = pnand %p10156_p8, %p10150_p3 }
 0x10f   : > { %10160 = shalt.err (!%p10157_p11)
}
 0x110   : > { %9825 = dma.hbm_to_vmem [thread:$0]  (!%p10466_p12), %s12816_s15, 3072, %s638_s5, [#allocation22], %s10284_s29, %s10284_s29, %s10285_s30  }
 0x111   : > { %s10288_s1 = smov [#allocation24]   ;;  %s10161_s14 = scalar_lea.hbm %s12817_s16, 16 }
 0x112   : > { %s651_s7 = sshll.u32 %s10288_s1, 4  ;;  %p10162_p13 = scmp.ne.s32.totalorder %s12817_s16, %s10161_s14  ;;  %s652_s7 = int_to_ptr.vmem [resolvable:$true] %s651_s7 }
 0x113   : > { %p10168_p5 = scmp.lt.u32.totalorder %s10161_s14, %s12817_s16 }
 0x114   : > { %p10164_p1 = pnand %p10162_p13, %p10482_p0 }
 0x116   : > { %p10165_p6 = pneg %p10164_p1 }
 0x118   : > { %p10170_p9 = pnand %p10168_p5, %p10165_p6 }
 0x11a   : > { %10173 = shalt.err (!%p10170_p9)
}
 0x11b   : > { %s10174_s29 = scalar_lea.vmem %s652_s7, 16  ;;  %s10181_s30 = scalar_lea.vmem %s652_s7, 32 }
 0x11c   : > { %p10175_p10 = scmp.ne.s32.totalorder %s652_s7, %s10174_s29  ;;  %p10182_p4 = scmp.lt.s32.totalorder %s652_s7, %s652_s7 }
 0x11d   : > { %p10183_p7 = scmp.lt.s32.totalorder %s10181_s30, %s10174_s29 }
 0x11e   : > { %p10177_p2 = pnand %p10175_p10, %p10482_p0 }
 0x11f   : > { %p10184_p8 = por %p10183_p7, %p10182_p4 }
 0x120   : > { %p10178_p3 = pneg %p10177_p2 }
 0x122   : > { %p10185_p11 = pnand %p10184_p8, %p10178_p3 }
 0x124   : > { %10188 = shalt.err (!%p10185_p11)
}
 0x125   : > { %9828 = dma.hbm_to_vmem [thread:$0]  (!%p10466_p12), %s12817_s16, 16, %s652_s7, [#allocation25]  }
 0x126   : > { %p12953_p13 = scmp.ne.s32.totalorder %s12943_s23, 0 }
 0x128   : > { %684 = sbr.rel (%p12953_p13) target bundleno = 3434 (0xd6a), region = 104 }
 0x12f   : > { %p12954_p1 = scmp.eq.s32.totalorder %s10430_s3, 0 }
 0x131   : > { %10234 = dma.done.wait (%p12954_p1), [#allocation10], 64   ;;  %p12955_p0 = pmov %p12954_p1 }
 0x133   : > { %10236 = vsyncadd (%p12955_p0), [#allocation10], 4294967232  ;;  %p12956_p6 = pmov %p12955_p0 }
 0x134   : > { %p12957_p5 = pmov %p12955_p0 }
 0x135   : > { %10238 = dma.done.wait (%p12956_p6), [#allocation13], 80  }
 0x136   : > { %10240 = vsyncadd (%p12957_p5), [#allocation13], 4294967216  ;;  %p12958_p9 = pmov %p12955_p0 }
 0x137   : > { %p12959_p12 = pmov %p12955_p0 }
 0x138   : > { %10242 = dma.done.wait (%p12958_p9), [#allocation16], 784  }
 0x139   : > { %10244 = vsyncadd (%p12959_p12), [#allocation16], 4294966512  ;;  %p12960_p10 = pmov %p12955_p0 }
 0x13a   : > { %p12961_p2 = pmov %p12955_p0 }
 0x13b   : > { %10246 = dma.done.wait (%p12960_p10), [#allocation19], 32  }
 0x13c   : > { %10248 = vsyncadd (%p12961_p2), [#allocation19], 4294967264  ;;  %p12962_p3 = pmov %p12955_p0 }
 0x13d   : > { %p12963_p4 = pmov %p12955_p0 }
 0x13e   : > { %10250 = dma.done.wait (%p12962_p3), [#allocation22], 3088  }
 0x13f   : > { %10252 = vsyncadd (%p12963_p4), [#allocation22], 4294964208  ;;  %p12964_p7 = pmov %p12955_p0 }
 0x140   : > { %p12965_p8 = pmov %p12955_p0 }
 0x141   : > { %10254 = dma.done.wait (%p12964_p7), [#allocation25], 16  }
 0x142   : > { %10256 = vsyncadd (%p12965_p8), [#allocation25], 4294967280  ;;  %p780_p11 = scmp.lt.s32.totalorder %s10430_s3, 1  ;;  %vm787_vm0 = vcmask 0   ;;  %v10289_v0 = vmov 0   ;;  %v12838_v1 = vmov 0.0   ;;  %v810_v10 = vlaneseq }
 0x143   : > { %9908 = vset.pattern.permute.xlu1 %v10289_v0  ;;  %9907 = vset.pattern.permute.xlu0 %v10289_v0  ;;  %788 = vst.msk [vmem:[#allocation2] sm:$0x1] %vm787_vm0, %v12838_v1  ;;  %789 = vst.msk [vmem:[#allocation2 + $0x11] sm:$0x1] %vm787_vm0, %v12838_v1  ;;  %s12966_s2 = sld [smem:[#allocation51_spill]]  ;;  %vm790_vm1 = vcmask 7168  }
 0x144   : > { %s781_s23 = scalar_select %p780_p11, %s10430_s3, 1  ;;  %5171 = vst [vmem:[#allocation6] sm:$0x1] %v12838_v1  ;;  %5172 = vst [vmem:[#allocation6 + $0x5] sm:$0x1] %v12838_v1  ;;  %vm863_vm2 = vcmask 24576  }
 0x145   : > { %865 = vst.msk [vmem:[#allocation3 + $0x11] sm:$0x1] %vm863_vm2, %v12838_v1  ;;  %864 = vst.msk [vmem:[#allocation3] sm:$0x1] %vm863_vm2, %v12838_v1  ;;  %v811_v11 = vshrl.u32 %v810_v10, 7  ;;  %s12967_s6 = sld [smem:[#allocation53_spill]] }
 0x146   : > { %s7506_s4 = sshll.u32 %s781_s23, 4  ;;  %v799_v14 = vld [vmem:[#allocation9] sm:$0x7]  ;;  %vm866_vm3 = vcmask 31744   ;;  %s12968_s8 = sld [smem:[#allocation54_spill]]  ;;  %vm912_vm4 = vcmask 1043456  }
 0x147   : > { %v828_v12 = vsub.s32 1, %v811_v11  ;;  %v812_v13 = vsub.s32 0, %v811_v11  ;;  %v846_v18 = vsub.s32 2, %v811_v11  ;;  %s10291_s27 = smov 4   ;;  %s10292_s29 = smov 8   ;;  %vm893_vm5 = vcmask 64512  }
 0x148   : > { %vm905_vm6 = vcmask 97280   ;;  %vm1420_vm7 = vcmask 122880   ;;  %s12969_s22 = sld [smem:[#allocation55_spill]]  ;;  %s12970_s28 = sld [smem:[#allocation56_spill]]  ;;  %vm1423_vm8 = vcmask 130048   ;;  %vm1450_vm9 = vcmask 261120  }
 0x149   : > { %s784_s0 = scalar_lea.vmem %s12966_s2, %s7506_s4  ;;  %v829_v17 = vrot.slane %v799_v14, %v828_v12  ;;  %v813_v19 = vrot.slane %v799_v14, %v812_v13  ;;  %v847_v24 = vrot.slane %v799_v14, %v846_v18  ;;  %1422 = vst.msk [vmem:[#allocation4 + $0x11] sm:$0x1] %vm1420_vm7, %v12838_v1  ;;  %1421 = vst.msk [vmem:[#allocation4] sm:$0x1] %vm1420_vm7, %v12838_v1  ;;  %vm1466_vm10 = vcmask 392192   ;;  %s10297_s26 = smov 64  }
 0x14a   : > { %v785_v2 = vld [vmem:[%s784_s0] sm:$0xff]  ;;  %v786_v3 = vld [vmem:[%s784_s0 + $0x8] sm:$0xff]  ;;  %2539 = vst.msk [vmem:[#allocation7] sm:$0x1] %vm1420_vm7, %v12838_v1  ;;  %vm10296_vm11 = vmmov 0   ;;  %vm3086_vm12 = vcmask 516096  }
 0x14b   : > { %791 = vst.msk [vmem:[#allocation2 + $0x1] sm:$0xff] %vm790_vm1, %v785_v2  ;;  %792 = vst.msk [vmem:[#allocation2 + $0x9] sm:$0xff] %vm790_vm1, %v786_v3  ;;  %v7492_v33 = vld [vmem:[%s12967_s6] ss:$0 sm:$0xff]  ;;  %vm3089_vm13 = vcmask 523264   ;;  %s13059_s5 = sld [smem:[#allocation62_spill]] }
 0x14c   : > { %v896_v40 = vld [vmem:[%s12968_s8] sm:$0xff]  ;;  %v897_v41 = vld [vmem:[%s12968_s8 + $0x8] sm:$0xf]  ;;  %3088 = vst.msk [vmem:[#allocation5 + $0x9] sm:$0x1] %vm3086_vm12, %v12838_v1  ;;  %s7503_s23 = sshll.u32 %s10430_s3, 6 }
 0x14d   : > { %v914_v42 = vsel %vm912_vm4, %v897_v41, 0  ;;  %v917_v43 = vand.u32 4294901760, %v896_v40  ;;  %3087 = vst.msk [vmem:[#allocation5] sm:$0x1] %vm3086_vm12, %v12838_v1  ;;  %4365 = vst.msk [vmem:[#allocation8] sm:$0x1] %vm3086_vm12, %v12838_v1 }
 0x14e   : > { %v920_v44 = vand.u32 4294901760, %v914_v42  ;;  %s13061_s1 = sld [smem:[#allocation63_spill]]  ;;  %s10298_s3 = smov [#allocation26]  }
 0x14f   : > { %v1005_v48 = vsub.f32 %v896_v40, %v917_v43  ;;  %v1454_v40 = vld [vmem:[%s12970_s28 + $0x8] sm:$0xff]  ;;  %s10193_s14 = sshll.u32 %s10298_s3, 4  ;;  %s10194_s14 = int_to_ptr.vmem [resolvable:$false] %s10193_s14 }
 0x150   : > { %v10729_v47 = vpack.c.bf16 %v920_v44, %v917_v43  ;;  %v1012_v49 = vsub.f32 %v914_v42, %v920_v44  ;;  %v1477_v43 = vand.u32 4294901760, %v1454_v40  ;;  %s10195_s20 = scalar_lea.vmem %s10194_s14, 128 }
 0x151   : > { %v1006_v50 = vand.u32 4294901760, %v1005_v48 }
 0x152   : > { %v794_v4 = vld [vmem:[#allocation2 + $0x8] sm:$0xff]  ;;  %v793_v5 = vld [vmem:[#allocation2] sm:$0xff]  ;;  %8642 = vmatprep.subr.bf16.mxu0 %v10729_v47  ;;  %v1013_v51 = vand.u32 4294901760, %v1012_v49  ;;  %v8649_v59 = vpack.c.bf16 %v1012_v49, %v1005_v48 }
 0x153   : > { %807 = vperm.xlu1 %9908, %v794_v4   ;;  %802 = vperm.xlu0 %9907, %v793_v5   ;;  %v796_v6 = vld [vmem:[#allocation2 + $0x9] sm:$0xff]  ;;  %v795_v7 = vld [vmem:[#allocation2 + $0x1] sm:$0xff]  ;;  %v1007_v54 = vsub.f32 %v1005_v48, %v1006_v50 }
 0x154   : > { %v798_v8 = vld [vmem:[#allocation2 + $0xa] sm:$0xff]  ;;  %v797_v9 = vld [vmem:[#allocation2 + $0x2] sm:$0xff]  ;;  %8644 = vmatpush3.bf16.msra.mxu0 %v10729_v47  ;;  %v1014_v55 = vsub.f32 %v1012_v49, %v1013_v51  ;;  %v8657_v60 = vpack.c.bf16 %v1013_v51, %v1006_v50  ;;  %v1456_v50 = vld [vmem:[%s12970_s28 + $0x18] sm:$0xff]  ;;  %s12759_s7 = scalar_lea.hbm %s13061_s1, %s7503_s23 }
 0x155   : > { %v1008_v56 = vand.u32 4294901760, %v1007_v54  ;;  %v1455_v49 = vld [vmem:[%s12970_s28 + $0x10] sm:$0xff] }
 0x156   : > { %v1015_v57 = vand.u32 4294901760, %v1014_v55  ;;  %v1480_v51 = vand.u32 4294901760, %v1455_v49  ;;  %v1573_v55 = vsub.f32 %v1454_v40, %v1477_v43 }
 0x157   : > { %823 = vperm.xlu1 %9908, %v796_v6   ;;  %818 = vperm.xlu0 %9907, %v795_v7  }
 0x158   : > { %v8645_v58 = vpack.c.bf16 %v1015_v57, %v1008_v56  ;;  %v1457_v56 = vld [vmem:[%s12970_s28 + $0x20] sm:$0xff]  ;;  %v1458_v57 = vld [vmem:[%s12970_s28 + $0x28] sm:$0xff] }
 0x15a   : > { %8646 = vmatprep.subr.bf16.mxu0 %v8645_v58 }
 0x15b   : > { %841 = vperm.xlu1 %9908, %v798_v8   ;;  %836 = vperm.xlu0 %9907, %v797_v9  }
 0x1d2   : > { %v808_v15 = vpop.permute.xlu1 %807  ;;  %v803_v16 = vpop.permute.xlu0 %802 }
 0x1d3   : > { %v815_v25 = vmul.f32 %v813_v19, %v808_v15  ;;  %v814_v26 = vmul.f32 %v813_v19, %v803_v16 }
 0x1d6   : > { %v824_v20 = vpop.permute.xlu1 %823  ;;  %v819_v21 = vpop.permute.xlu0 %818 }
 0x1d7   : > { %v831_v22 = vmul.f32 %v829_v17, %v824_v20  ;;  %v830_v23 = vmul.f32 %v829_v17, %v819_v21 }
 0x1d9   : > { %v833_v29 = vadd.f32 %v831_v22, %v815_v25  ;;  %v832_v30 = vadd.f32 %v830_v23, %v814_v26  ;;  %v2029_v23 = vld [vmem:[#allocation14] sm:$0xf] }
 0x1da   : > { %v842_v27 = vpop.permute.xlu1 %841  ;;  %v837_v28 = vpop.permute.xlu0 %836  ;;  %v10747_v25 = vsel %vm912_vm4, %v2029_v23, 0 }
 0x1db   : > { %v849_v31 = vmul.f32 %v847_v24, %v842_v27  ;;  %v848_v32 = vmul.f32 %v847_v24, %v837_v28  ;;  %v10753_v27 = vand.u32 4294901760, %v10747_v25 }
 0x1dd   : > { %v851_v34 = vadd.f32 %v849_v31, %v833_v29  ;;  %v850_v35 = vadd.f32 %v848_v32, %v832_v30 }
 0x1df   : > { %v860_v36 = vadd.f32 %v7492_v33, %v851_v34  ;;  %v859_v37 = vadd.f32 %v7492_v33, %v850_v35  ;;  %v7493_v35 = vld [vmem:[%s12969_s22] ss:$0 sm:$0xff]  ;;  %s13060_s22 = sld [smem:[#allocation39_spill]] }
 0x1e1   : > { %v862_v38 = vmax.f32 %v860_v36, 0.0  ;;  %v861_v39 = vmax.f32 %v859_v37, 0.0 }
 0x1e3   : > { %868 = vst.msk [vmem:[#allocation3 + $0x9] sm:$0xff] %vm866_vm3, %v862_v38  ;;  %867 = vst.msk [vmem:[#allocation3 + $0x1] sm:$0xff] %vm866_vm3, %v861_v39  ;;  %v1453_v39 = vld [vmem:[%s12970_s28] sm:$0xff] }
 0x1e4   : > { %v1474_v42 = vand.u32 4294901760, %v1453_v39 }
 0x1e5   : > { %p13062_p1 = scmp.ne.s32.totalorder %s13060_s22, 0 }
 0x1e6   : > { %v1566_v54 = vsub.f32 %v1453_v39, %v1474_v42 }
 0x1ea   : > { %v10727_v45 = vld [vmem:[#allocation3 + $0x9] sm:$0xff]  ;;  %v871_v46 = vld [vmem:[#allocation3 + $0x1] sm:$0xff] }
 0x1eb   : > { %879 = vrot.lane.b32.xlu1 %v10727_v45, %s10291_s27  ;;  %877 = vrot.lane.b32.xlu0 %v871_v46, %s10291_s27  ;;  %v874_v52 = vld [vmem:[#allocation3 + $0xa] sm:$0xff]  ;;  %v873_v53 = vld [vmem:[#allocation3 + $0x2] sm:$0xff]  ;;  %v2038_v20 = vsel %vm866_vm3, %v871_v46, 0  ;;  %v2041_v22 = vsel %vm866_vm3, %v10727_v45, 0  ;;  %s10293_s27 = smov 16  }
 0x1ec   : > { %v870_v63 = vld [vmem:[#allocation3 + $0x8] sm:$0xff]  ;;  %v869_v0 = vld [vmem:[#allocation3] sm:$0xff]  ;;  %v10739_v21 = vand.u32 4294901760, %v2038_v20  ;;  %v10744_v24 = vand.u32 4294901760, %v2041_v22 }
 0x1ee   : > { %v10750_v26 = vsub.f32 %v2038_v20, %v10739_v21  ;;  %v10756_v28 = vsub.f32 %v2041_v22, %v10744_v24 }
 0x1ef   : > { %887 = vrot.lane.b32.xlu1 %v874_v52, %s10292_s29  ;;  %885 = vrot.lane.b32.xlu0 %v873_v53, %s10292_s29  ;;  %v1483_v52 = vand.u32 4294901760, %v1456_v50  ;;  %s10294_s29 = smov 32  }
 0x1f0   : > { %v2114_v29 = vand.u32 4294901760, %v10750_v26  ;;  %v2124_v30 = vand.u32 4294901760, %v10756_v28 }
 0x1f1   : > { %v10797_v53 = vpack.c.bf16 %v1483_v52, %v1480_v51 }
 0x1f2   : > { %v2115_v31 = vsub.f32 %v10750_v26, %v2114_v29  ;;  %v2125_v32 = vsub.f32 %v10756_v28, %v2124_v30 }
 0x1f4   : > { %v2116_v33 = vand.u32 4294901760, %v2115_v31  ;;  %v2126_v34 = vand.u32 4294901760, %v2125_v32 }
 0x25d   : > { %v880_v61 = vpop.permute.xlu1 %879  ;;  %v878_v62 = vpop.permute.xlu0 %877 }
 0x25e   : > { %v892_v2 = vsel %vm866_vm3, %v870_v63, %v880_v61  ;;  %v891_v3 = vsel %vm866_vm3, %v869_v0, %v878_v62  ;;  %v1574_v61 = vand.u32 4294901760, %v1573_v55 }
 0x261   : > { %v888_v4 = vpop.permute.xlu1 %887  ;;  %v886_v5 = vpop.permute.xlu0 %885 }
 0x262   : > { %v895_v6 = vsel %vm893_vm5, %v892_v2, %v888_v4  ;;  %v894_v7 = vsel %vm893_vm5, %v891_v3, %v886_v5  ;;  %v1575_v2 = vsub.f32 %v1573_v55, %v1574_v61  ;;  %v1580_v3 = vsub.f32 %v1455_v49, %v1480_v51 }
 0x263   : > { %v910_v8 = vsel %vm905_vm6, %v895_v6, 0  ;;  %v907_v9 = vsel %vm905_vm6, %v894_v7, 0  ;;  %v1587_v5 = vsub.f32 %v1456_v50, %v1483_v52 }
 0x264   : > { %v993_v10 = vand.u32 4294901760, %v910_v8  ;;  %v983_v11 = vand.u32 4294901760, %v907_v9  ;;  %v1576_v7 = vand.u32 4294901760, %v1575_v2 }
 0x266   : > { %v994_v12 = vsub.f32 %v910_v8, %v993_v10  ;;  %v984_v13 = vsub.f32 %v907_v9, %v983_v11  ;;  %v1581_v8 = vand.u32 4294901760, %v1580_v3  ;;  %v1588_v9 = vand.u32 4294901760, %v1587_v5 }
 0x268   : > { %v985_v14 = vand.u32 4294901760, %v984_v13  ;;  %v995_v15 = vand.u32 4294901760, %v994_v12  ;;  %v8717_v39 = vpack.c.bf16 %v1588_v9, %v1581_v8 }
 0x26a   : > { %v986_v16 = vsub.f32 %v984_v13, %v985_v14  ;;  %v996_v17 = vsub.f32 %v994_v12, %v995_v15 }
 0x26c   : > { %v987_v18 = vand.u32 4294901760, %v986_v16  ;;  %v997_v19 = vand.u32 4294901760, %v996_v17  ;;  %v1589_v16 = vsub.f32 %v1587_v5, %v1588_v9  ;;  %v2558_v9 = vld [vmem:[#allocation17] sm:$0xff] }
 0x26e   : > { %8027 = vmatprep.mubr.f32.mxu0 %v987_v18  ;;  %v1590_v20 = vand.u32 4294901760, %v1589_v16  ;;  %v12865_v16 = vmov 0.0|0.0  }
 0x26f   : > { %8028 = vmatmul.mubr.f32.vlgmr.msra.gmra.mrb[0].mxu0 %v997_v19 }
 0x270   : > { %8648 = vmatpush3.bf16.msra.mxu0 %v8645_v58  ;;  %8034 = vmatprep.mubr.f32.mxu0 %v983_v11  ;;  %v1486_v58 = vand.u32 4294901760, %v1457_v56 }
 0x271   : > { %8650 = vmatprep.subr.bf16.mxu0 %v8649_v59 }
 0x277   : > { %8035 = vmatmul.mubr.f32.vlgmr.msra.gmra.mrb[0].mxu0 %v993_v10 }
 0x278   : > { %8652 = vmatpush3.bf16.msra.mxu0 %v8649_v59  ;;  %8041 = vmatprep.mubr.f32.mxu0 %v984_v13  ;;  %v1489_v59 = vand.u32 4294901760, %v1458_v57  ;;  %v1594_v13 = vsub.f32 %v1457_v56, %v1486_v58 }
 0x279   : > { %8654 = vmatprep.subr.bf16.mxu0 %v10729_v47 }
 0x27a   : > { %v10807_v63 = vpack.c.bf16 %v1489_v59, %v1486_v58  ;;  %v1595_v18 = vand.u32 4294901760, %v1594_v13 }
 0x27c   : > { %v1596_v22 = vsub.f32 %v1594_v13, %v1595_v18 }
 0x27e   : > { %v1597_v32 = vand.u32 4294901760, %v1596_v22 }
 0x27f   : > { %8042 = vmatmul.mubr.f32.vlgmr.msra.gmra.mrb[0].mxu0 %v994_v12  ;;  %v1582_v12 = vsub.f32 %v1580_v3, %v1581_v8 }
 0x280   : > { %8656 = vmatpush3.bf16.msra.mxu0 %v10729_v47  ;;  %8048 = vmatprep.mubr.f32.mxu0 %v985_v14  ;;  %v1601_v14 = vsub.f32 %v1458_v57, %v1489_v59 }
 0x281   : > { %8658 = vmatprep.subr.bf16.mxu0 %v8657_v60  ;;  %v1583_v17 = vand.u32 4294901760, %v1582_v12 }
 0x282   : > { %v1602_v19 = vand.u32 4294901760, %v1601_v14 }
 0x283   : > { %v8681_v31 = vpack.c.bf16 %v1590_v20, %v1583_v17  ;;  %v2560_v17 = vld [vmem:[#allocation17 + $0x10] sm:$0xff] }
 0x284   : > { %v1603_v23 = vsub.f32 %v1601_v14, %v1602_v19  ;;  %v8721_v40 = vpack.c.bf16 %v1602_v19, %v1595_v18  ;;  %v2561_v18 = vld [vmem:[#allocation17 + $0x18] sm:$0xff] }
 0x285   : > { %v2584_v19 = vand.u32 4294901760, %v2561_v18 }
 0x287   : > { %8049 = vmatmul.mubr.f32.vlgmr.msra.gmra.mrb[0].mxu0 %v995_v15 }
 0x288   : > { %8660 = vmatpush3.bf16.msra.mxu0 %v8657_v60  ;;  %8055 = vmatprep.mubr.f32.mxu0 %v983_v11  ;;  %v1567_v60 = vand.u32 4294901760, %v1566_v54 }
 0x289   : > { %8662 = vmatprep.subr.bf16.mxu0 %v10729_v47 }
 0x28a   : > { %v1568_v0 = vsub.f32 %v1566_v54, %v1567_v60 }
 0x28c   : > { %v1569_v6 = vand.u32 4294901760, %v1568_v0 }
 0x28f   : > { %8056 = vmatmul.mubr.f32.vlgmr.msra.gmra.mrb[0].mxu0 %v993_v10 }
 0x290   : > { %8664 = vmatpush3.bf16.msra.mxu0 %v10729_v47  ;;  %8062 = vmatprep.mubr.f32.mxu0 %v983_v11  ;;  %v10783_v47 = vpack.c.bf16 %v1477_v43, %v1474_v42  ;;  %v8677_v11 = vpack.c.bf16 %v1576_v7, %v1569_v6 }
 0x291   : > { %8155 = vmatprep.subr.mxu0 %v10753_v27 }
 0x292   : > { %8666 = vmatprep.subr.bf16.mxu1 %v10783_v47 }
 0x293   : > { %8668 = vmatpush3.bf16.msra.mxu1 %v10783_v47 }
 0x294   : > { %8670 = vmatprep.subr.bf16.mxu1 %v10797_v53 }
 0x297   : > { %8063 = vmatmul.mubr.f32.vlgmr.msra.gmra.mrb[0].mxu0 %v993_v10  ;;  %8672 = vmatpush3.bf16.msra.mxu1 %v10797_v53 }
 0x298   : > { %8157 = vmatprep.mubr.f32.mxu0 %v2116_v33  ;;  %8156 = vmatpush3.msra.mxu0 %v10753_v27  ;;  %v1604_v33 = vand.u32 4294901760, %v1603_v23 }
 0x299   : > { %8674 = vmatprep.subr.bf16.mxu1 %v10807_v63  ;;  %8737 = vmatprep.subr.bf16.mxu0 %v12865_v16 }
 0x29b   : > { %8158 = vmatmul.mubr.f32.vlgmr.msra.gmra.mrb[2].mxu0 %v2126_v34  ;;  %8676 = vmatpush3.bf16.msra.mxu1 %v10807_v63  ;;  %v8685_v34 = vpack.c.bf16 %v1604_v33, %v1597_v32  ;;  %v2562_v33 = vld [vmem:[#allocation17 + $0x20] sm:$0xff] }
 0x29c   : > { %8678 = vmatprep.subr.bf16.mxu1 %v8677_v11  ;;  %8197 = vmatprep.mubr.msk.f32.mxu0 %vm10296_vm11, %v12838_v1 }
 0x36a   : > { %v8064_v36 = vpop.f32.mrb[0].mxu0 }
 0x36b   : > { %v9649_v37 = vadd.f32 %v8064_v36, %v7493_v35  ;;  %v1408_v38 = vpop.f32.mrb[1].mxu0  ;;  %v8693_v36 = vpack.c.bf16 %v1587_v5, %v1580_v3  ;;  %v2134_v5 = vsub.f32 %v10747_v25, %v10753_v27  ;;  %v7494_v25 = vld [vmem:[#allocation12] ss:$0 sm:$0xff] }
 0x36c   : > { %v9650_v41 = vadd.f32 %v7493_v35, %v1408_v38  ;;  %v8689_v35 = vpack.c.bf16 %v1573_v55, %v1566_v54  ;;  %v8713_v38 = vpack.c.bf16 %v1574_v61, %v1567_v60 }
 0x36d   : > { %v1419_v44 = vmax.f32 %v9649_v37, 0.0  ;;  %v8697_v37 = vpack.c.bf16 %v1601_v14, %v1594_v13  ;;  %v2135_v6 = vand.u32 4294901760, %v2134_v5 }
 0x36e   : > { %v1418_v45 = vmax.f32 %v9650_v41, 0.0  ;;  %v10781_v46 = vpop.f32.mrb[2].mxu0 }
 0x36f   : > { %1425 = vst.msk [vmem:[#allocation4 + $0x9] sm:$0xff] %vm1423_vm8, %v1419_v44  ;;  %v10786_v48 = vpop.f32.mrb[3].mxu0  ;;  %v2136_v7 = vsub.f32 %v2134_v5, %v2135_v6 }
 0x370   : > { %1424 = vst.msk [vmem:[#allocation4 + $0x1] sm:$0xff] %vm1423_vm8, %v1418_v45 }
 0x371   : > { %v2137_v8 = vand.u32 4294901760, %v2136_v7 }
 0x376   : > { %v1429_v62 = vld [vmem:[#allocation4 + $0x9] sm:$0xff] }
 0x377   : > { %1436 = vrot.lane.b32.xlu1 %v1429_v62, %s10293_s27  ;;  %v1428_v4 = vld [vmem:[#allocation4 + $0x1] sm:$0xff]  ;;  %v1431_v10 = vld [vmem:[#allocation4 + $0xa] sm:$0xff] }
 0x378   : > { %1434 = vrot.lane.b32.xlu0 %v1428_v4, %s10293_s27  ;;  %v1430_v15 = vld [vmem:[#allocation4 + $0x2] sm:$0xff] }
 0x379   : > { %v1427_v43 = vld [vmem:[#allocation4 + $0x8] sm:$0xff]  ;;  %v1426_v45 = vld [vmem:[#allocation4] sm:$0xff] }
 0x37b   : > { %1444 = vrot.lane.b32.xlu1 %v1431_v10, %s10294_s29  ;;  %v2559_v10 = vld [vmem:[#allocation17 + $0x8] sm:$0xff] }
 0x37c   : > { %1442 = vrot.lane.b32.xlu0 %v1430_v15, %s10294_s29  ;;  %v2578_v12 = vand.u32 4294901760, %v2559_v10 }
 0x3e9   : > { %v1437_v41 = vpop.permute.xlu1 %1436 }
 0x3ea   : > { %v1435_v42 = vpop.permute.xlu0 %1434  ;;  %v1449_v44 = vsel %vm1423_vm8, %v1427_v43, %v1437_v41 }
 0x3eb   : > { %v1448_v50 = vsel %vm1423_vm8, %v1426_v45, %v1435_v42 }
 0x3ed   : > { %v1445_v49 = vpop.permute.xlu1 %1444 }
 0x3ee   : > { %v1452_v51 = vsel %vm1450_vm9, %v1449_v44, %v1445_v49  ;;  %v1443_v52 = vpop.permute.xlu0 %1442 }
 0x3ef   : > { %v1471_v54 = vsel %vm1466_vm10, %v1452_v51, 0  ;;  %v1451_v55 = vsel %vm1450_vm9, %v1448_v50, %v1443_v52 }
 0x3f0   : > { %v1554_v56 = vand.u32 4294901760, %v1471_v54  ;;  %v1468_v57 = vsel %vm1466_vm10, %v1451_v55, 0 }
 0x3f1   : > { %v1544_v58 = vand.u32 4294901760, %v1468_v57 }
 0x3f2   : > { %v1555_v59 = vsub.f32 %v1471_v54, %v1554_v56 }
 0x3f3   : > { %v1545_v60 = vsub.f32 %v1468_v57, %v1544_v58 }
 0x3f4   : > { %v1556_v61 = vand.u32 4294901760, %v1555_v59 }
 0x3f5   : > { %v1546_v62 = vand.u32 4294901760, %v1545_v60 }
 0x3f6   : > { %v1557_v0 = vsub.f32 %v1555_v59, %v1556_v61 }
 0x3f7   : > { %v1547_v2 = vsub.f32 %v1545_v60, %v1546_v62 }
 0x3f8   : > { %v1558_v4 = vand.u32 4294901760, %v1557_v0 }
 0x3f9   : > { %v1548_v3 = vand.u32 4294901760, %v1547_v2 }
 0x3fb   : > { %8077 = vmatprep.mubr.f32.mxu1 %v1548_v3 }
 0x3fc   : > { %8078 = vmatmul.mubr.f32.vlgmr.msra.gmra.mrb[0].mxu1 %v1558_v4 }
 0x3fd   : > { %8680 = vmatpush3.bf16.msra.mxu1 %v8677_v11  ;;  %8092 = vmatprep.mubr.f32.mxu1 %v1544_v58  ;;  %v2575_v11 = vand.u32 4294901760, %v2558_v9 }
 0x3fe   : > { %8682 = vmatprep.subr.bf16.mxu1 %v8681_v31 }
 0x3ff   : > { %v10859_v23 = vsub.f32 %v2558_v9, %v2575_v11 }
 0x401   : > { %8684 = vmatpush3.bf16.msra.mxu1 %v8681_v31  ;;  %v10861_v31 = vsub.f32 %v2559_v10, %v2578_v12 }
 0x402   : > { %8686 = vmatprep.subr.bf16.mxu1 %v8685_v34 }
 0x403   : > { %v8756_v7 = vpack.c.bf16 %v10861_v31, %v10859_v23 }
 0x405   : > { %8688 = vmatpush3.bf16.msra.mxu1 %v8685_v34  ;;  %v2563_v34 = vld [vmem:[#allocation17 + $0x28] sm:$0xff] }
 0x406   : > { %8690 = vmatprep.subr.bf16.mxu1 %v8689_v35 }
 0x408   : > { %8093 = vmatmul.mubr.f32.vlgmr.msra.gmra.mrb[0].mxu1 %v1554_v56 }
 0x409   : > { %8692 = vmatpush3.bf16.msra.mxu1 %v8689_v35  ;;  %8107 = vmatprep.mubr.f32.mxu1 %v1545_v60 }
 0x40a   : > { %8694 = vmatprep.subr.bf16.mxu1 %v8693_v36 }
 0x40d   : > { %8696 = vmatpush3.bf16.msra.mxu1 %v8693_v36  ;;  %v10870_v36 = vsub.f32 %v2561_v18, %v2584_v19 }
 0x40e   : > { %8698 = vmatprep.subr.bf16.mxu1 %v8697_v37 }
 0x40f   : > { %v2679_v52 = vand.u32 4294901760, %v10870_v36 }
 0x411   : > { %8700 = vmatpush3.bf16.msra.mxu1 %v8697_v37  ;;  %v2587_v37 = vand.u32 4294901760, %v2562_v33 }
 0x412   : > { %8702 = vmatprep.subr.bf16.mxu1 %v10783_v47 }
 0x413   : > { %v2685_v42 = vsub.f32 %v2562_v33, %v2587_v37  ;;  %v3106_v33 = vld [vmem:[%s12812_s11 + $0x38] sm:$0xff] }
 0x414   : > { %8108 = vmatmul.mubr.f32.vlgmr.msra.gmra.mrb[0].mxu1 %v1555_v59 }
 0x415   : > { %8704 = vmatpush3.bf16.msra.mxu1 %v10783_v47  ;;  %8122 = vmatprep.mubr.f32.mxu1 %v1546_v62 }
 0x416   : > { %8706 = vmatprep.subr.bf16.mxu1 %v10797_v53 }
 0x419   : > { %8708 = vmatpush3.bf16.msra.mxu1 %v10797_v53 }
 0x41a   : > { %8710 = vmatprep.subr.bf16.mxu1 %v10807_v63 }
 0x41d   : > { %8712 = vmatpush3.bf16.msra.mxu1 %v10807_v63 }
 0x41e   : > { %8714 = vmatprep.subr.bf16.mxu1 %v8713_v38 }
 0x420   : > { %8123 = vmatmul.mubr.f32.vlgmr.msra.gmra.mrb[0].mxu1 %v1556_v61  ;;  %v2686_v61 = vand.u32 4294901760, %v2685_v42 }
 0x421   : > { %8716 = vmatpush3.bf16.msra.mxu1 %v8713_v38  ;;  %8137 = vmatprep.mubr.f32.mxu1 %v1544_v58  ;;  %v2590_v38 = vand.u32 4294901760, %v2563_v34 }
 0x422   : > { %8718 = vmatprep.subr.bf16.mxu1 %v8717_v39  ;;  %v2687_v2 = vsub.f32 %v2685_v42, %v2686_v61 }
 0x423   : > { %v10875_v41 = vpack.c.bf16 %v2590_v38, %v2587_v37  ;;  %v2692_v43 = vsub.f32 %v2563_v34, %v2590_v38  ;;  %v3107_v34 = vld [vmem:[%s12812_s11 + $0x40] sm:$0xff] }
 0x424   : > { %v2688_v4 = vand.u32 4294901760, %v2687_v2  ;;  %v3115_v2 = vld [vmem:[%s12812_s11 + $0x80] sm:$0xff] }
 0x425   : > { %8720 = vmatpush3.bf16.msra.mxu1 %v8717_v39  ;;  %v2658_v39 = vand.u32 4294901760, %v10859_v23  ;;  %v2693_v62 = vand.u32 4294901760, %v2692_v43 }
 0x426   : > { %8722 = vmatprep.subr.bf16.mxu1 %v8721_v40 }
 0x427   : > { %v2659_v44 = vsub.f32 %v10859_v23, %v2658_v39  ;;  %v2694_v3 = vsub.f32 %v2692_v43, %v2693_v62 }
 0x429   : > { %8724 = vmatpush3.bf16.msra.mxu1 %v8721_v40  ;;  %v2665_v40 = vand.u32 4294901760, %v10861_v31  ;;  %v2660_v49 = vand.u32 4294901760, %v2659_v44 }
 0x42a   : > { %8726 = vmatprep.subr.bf16.mxu1 %v10783_v47 }
 0x42b   : > { %v2666_v45 = vsub.f32 %v10861_v31, %v2665_v40 }
 0x42c   : > { %8138 = vmatmul.mubr.f32.vlgmr.msra.gmra.mrb[0].mxu1 %v1554_v56 }
 0x42d   : > { %8728 = vmatpush3.bf16.msra.mxu1 %v10783_v47  ;;  %8152 = vmatprep.mubr.f32.mxu1 %v1544_v58  ;;  %v2667_v50 = vand.u32 4294901760, %v2666_v45  ;;  %v2680_v58 = vsub.f32 %v10870_v36, %v2679_v52  ;;  %v3111_v45 = vld [vmem:[%s12812_s11 + $0x60] sm:$0xff] }
 0x42e   : > { %8730 = vmatprep.subr.bf16.mxu1 %v10797_v53 }
 0x42f   : > { %v2681_v60 = vand.u32 4294901760, %v2680_v58  ;;  %v3113_v58 = vld [vmem:[%s12812_s11 + $0x70] sm:$0xff] }
 0x431   : > { %8732 = vmatpush3.bf16.msra.mxu1 %v10797_v53 }
 0x432   : > { %8734 = vmatprep.subr.bf16.mxu1 %v10807_v63 }
 0x435   : > { %8736 = vmatpush3.bf16.msra.mxu1 %v10807_v63  ;;  %v7495_v63 = vld [vmem:[#allocation15] ss:$0 sm:$0xff] }
 0x436   : > { %8160 = vmatprep.subr.mxu1 %v2137_v8 }
 0x438   : > { %8153 = vmatmul.mubr.f32.vlgmr.msra.gmra.mrb[0].mxu1 %v1554_v56  ;;  %v8747_v56 = vpack.c.bf16 %v2667_v50, %v2660_v49 }
 0x439   : > { %8161 = vmatpush3.msra.mxu1 %v2137_v8  ;;  %8162 = vmatprep.mubr.f32.mxu1 %v10739_v21 }
 0x43a   : > { %8165 = vmatprep.subr.mxu1 %v2134_v5 }
 0x43c   : > { %8163 = vmatmul.mubr.f32.vlgmr.msra.gmra.mrb[2].mxu1 %v10744_v24 }
 0x43d   : > { %8166 = vmatpush3.msra.mxu1 %v2134_v5  ;;  %8167 = vmatprep.mubr.f32.mxu1 %v10750_v26  ;;  %v2695_v5 = vand.u32 4294901760, %v2694_v3  ;;  %v3116_v3 = vld [vmem:[%s12812_s11 + $0x88] sm:$0xff] }
 0x43e   : > { %8170 = vmatprep.subr.mxu1 %v10753_v27 }
 0x444   : > { %8168 = vmatmul.mubr.f32.vlgmr.msra.gmra.mrb[2].mxu1 %v10756_v28 }
 0x445   : > { %8171 = vmatpush3.msra.mxu1 %v10753_v27  ;;  %8172 = vmatprep.mubr.f32.mxu1 %v2114_v29 }
 0x446   : > { %8175 = vmatprep.subr.mxu1 %v2135_v6 }
 0x44c   : > { %8173 = vmatmul.mubr.f32.vlgmr.msra.gmra.mrb[2].mxu1 %v2124_v30 }
 0x44d   : > { %8176 = vmatpush3.msra.mxu1 %v2135_v6  ;;  %8177 = vmatprep.mubr.f32.mxu1 %v10739_v21  ;;  %v8753_v6 = vpack.c.bf16 %v2695_v5, %v2688_v4 }
 0x44e   : > { %8180 = vmatprep.subr.mxu1 %v10753_v27 }
 0x454   : > { %8178 = vmatmul.mubr.f32.vlgmr.msra.gmra.mrb[2].mxu1 %v10744_v24 }
 0x455   : > { %8181 = vmatpush3.msra.mxu1 %v10753_v27  ;;  %8182 = vmatprep.mubr.f32.mxu1 %v10739_v21  ;;  %v10853_v21 = vpack.c.bf16 %v2578_v12, %v2575_v11 }
 0x456   : > { %9097 = vmatprep.subr.bf16.mxu1 %v12865_v16 }
 0x457   : > { %8739 = vmatpush3.bf16.msra.mxu0 %v10853_v21 }
 0x458   : > { %8740 = vmatprep.subr.bf16.mxu0 %v12865_v16 }
 0x45c   : > { %8183 = vmatmul.mubr.f32.vlgmr.msra.gmra.mrb[2].mxu1 %v10744_v24 }
 0x50b   : > { %v8154_v26 = vpop.f32.mrb[0].mxu1 }
 0x50c   : > { %v9651_v29 = vadd.f32 %v8154_v26, %v7494_v25  ;;  %v2017_v47 = vpop.f32.mrb[1].mxu1  ;;  %v8774_v26 = vpack.c.bf16 %v2665_v40, %v2658_v39  ;;  %v3108_v39 = vld [vmem:[%s12812_s11 + $0x48] sm:$0xff]  ;;  %v3109_v40 = vld [vmem:[%s12812_s11 + $0x50] sm:$0xff] }
 0x50d   : > { %v9655_v53 = vadd.f32 %v7494_v25, %v2017_v47  ;;  %v8762_v25 = vpack.c.bf16 %v2692_v43, %v2685_v42  ;;  %v8780_v47 = vpack.c.bf16 %v2693_v62, %v2686_v61  ;;  %v3170_v62 = vand.u32 4294901760, %v3111_v45 }
 0x50e   : > { %v9652_v28 = vadd.f32 %v9651_v29, %v10781_v46 }
 0x50f   : > { %v9656_v30 = vadd.f32 %v9655_v53, %v10786_v48  ;;  %v2581_v48 = vand.u32 4294901760, %v2560_v17 }
 0x510   : > { %v9653_v13 = vadd.f32 %v9652_v28, %v7495_v63 }
 0x511   : > { %v9657_v14 = vadd.f32 %v9656_v30, %v7495_v63  ;;  %v10863_v32 = vpack.c.bf16 %v2584_v19, %v2581_v48  ;;  %v10868_v35 = vsub.f32 %v2560_v17, %v2581_v48  ;;  %v3103_v19 = vld [vmem:[%s12812_s11 + $0x20] sm:$0xff] }
 0x512   : > { %v3146_v23 = vand.u32 4294901760, %v3103_v19 }
 0x513   : > { %8742 = vmatpush3.bf16.msra.mxu0 %v10863_v32  ;;  %v2672_v51 = vand.u32 4294901760, %v10868_v35  ;;  %v8759_v8 = vpack.c.bf16 %v10870_v36, %v10868_v35 }
 0x514   : > { %8743 = vmatprep.subr.bf16.mxu0 %v12865_v16  ;;  %v10978_v44 = vsub.f32 %v3103_v19, %v3146_v23 }
 0x515   : > { %v2673_v57 = vsub.f32 %v10868_v35, %v2672_v51  ;;  %v8777_v29 = vpack.c.bf16 %v2679_v52, %v2672_v51  ;;  %v3155_v51 = vand.u32 4294901760, %v3106_v33  ;;  %v3158_v52 = vand.u32 4294901760, %v3107_v34 }
 0x517   : > { %8745 = vmatpush3.bf16.msra.mxu0 %v10875_v41  ;;  %v2674_v59 = vand.u32 4294901760, %v2673_v57  ;;  %v3112_v57 = vld [vmem:[%s12812_s11 + $0x68] sm:$0xff]  ;;  %v10997_v61 = vsub.f32 %v3107_v34, %v3158_v52 }
 0x518   : > { %8746 = vmatprep.subr.bf16.mxu0 %v12865_v16 }
 0x519   : > { %v8750_v0 = vpack.c.bf16 %v2681_v60, %v2674_v59  ;;  %v10995_v60 = vsub.f32 %v3106_v33, %v3155_v51 }
 0x52f   : > { %v8184_v27 = vpop.f32.mrb[2].mxu1 }
 0x530   : > { %v9654_v24 = vadd.f32 %v9653_v13, %v8184_v27  ;;  %v2525_v15 = vpop.f32.mrb[3].mxu1 }
 0x531   : > { %v9658_v46 = vadd.f32 %v9657_v14, %v2525_v15  ;;  %v3101_v15 = vld [vmem:[%s12812_s11 + $0x10] sm:$0xff] }
 0x532   : > { %v2538_v20 = vmax.f32 %v9654_v24, 0.0  ;;  %v3100_v24 = vld [vmem:[%s12812_s11 + $0x8] sm:$0xff]  ;;  %v3140_v48 = vand.u32 4294901760, %v3101_v15 }
 0x533   : > { %v2537_v22 = vmax.f32 %v9658_v46, 0.0  ;;  %v3137_v18 = vand.u32 4294901760, %v3100_v24  ;;  %v3102_v46 = vld [vmem:[%s12812_s11 + $0x18] sm:$0xff] }
 0x534   : > { %2542 = vst.msk [vmem:[#allocation7 + $0x9] sm:$0xff] %vm1423_vm8, %v2538_v20  ;;  %v3104_v20 = vld [vmem:[%s12812_s11 + $0x28] sm:$0xff]  ;;  %v10963_v38 = vsub.f32 %v3101_v15, %v3140_v48 }
 0x535   : > { %2541 = vst.msk [vmem:[#allocation7 + $0x1] sm:$0xff] %vm1423_vm8, %v2537_v22  ;;  %v3143_v22 = vand.u32 4294901760, %v3102_v46  ;;  %v3149_v31 = vand.u32 4294901760, %v3104_v20  ;;  %v10961_v37 = vsub.f32 %v3100_v24, %v3137_v18 }
 0x537   : > { %v10974_v42 = vpack.c.bf16 %v3143_v22, %v3140_v48  ;;  %v10976_v43 = vsub.f32 %v3102_v46, %v3143_v22  ;;  %v10984_v49 = vsub.f32 %v3104_v20, %v3149_v31  ;;  %v11008_v4 = vpack.c.bf16 %v3149_v31, %v3146_v23  ;;  %v7496_v20 = vld [vmem:[#allocation18] ss:$0 sm:$0xff]  ;;  %v3120_v23 = vld [vmem:[%s12812_s11 + $0xa8] sm:$0xff] }
 0x538   : > { %v3119_v22 = vld [vmem:[%s12812_s11 + $0xa0] sm:$0xff] }
 0x539   : > { %v3194_v31 = vand.u32 4294901760, %v3119_v22 }
 0x53c   : > { %v2547_v54 = vld [vmem:[#allocation7 + $0x2] ss:$2 sm:$0xff]  ;;  %v2545_v55 = vld [vmem:[#allocation7 + $0x1] ss:$2 sm:$0xff] }
 0x53d   : > { %2553 = vrot.lane.b32.xlu1 %v2547_v54, %s10294_s29  ;;  %2549 = vrot.lane.b32.xlu0 %v2545_v55, %s10293_s27  ;;  %v2543_v30 = vld [vmem:[#allocation7] ss:$2 sm:$0xff]  ;;  %v3161_v54 = vand.u32 4294901760, %v3108_v39  ;;  %v3164_v55 = vand.u32 4294901760, %v3109_v40 }
 0x53f   : > { %v11010_v5 = vsub.f32 %v3108_v39, %v3161_v54  ;;  %v11045_v15 = vpack.c.bf16 %v3161_v54, %v3158_v52 }
 0x5af   : > { %v2554_v53 = vpop.permute.xlu1 %2553  ;;  %v2550_v28 = vpop.permute.xlu0 %2549 }
 0x5b0   : > { %v2556_v63 = vsel %vm1423_vm8, %v2543_v30, %v2550_v28  ;;  %v3182_v28 = vand.u32 4294901760, %v3115_v2  ;;  %v3185_v30 = vand.u32 4294901760, %v3116_v3 }
 0x5b1   : > { %v2557_v9 = vsel %vm1450_vm9, %v2556_v63, %v2554_v53 }
 0x5b2   : > { %v2572_v10 = vsel %vm1466_vm10, %v2557_v9, 0  ;;  %v11061_v48 = vpack.c.bf16 %v3185_v30, %v3182_v28 }
 0x5b3   : > { %v2645_v11 = vand.u32 4294901760, %v2572_v10 }
 0x5b5   : > { %v2646_v12 = vsub.f32 %v2572_v10, %v2645_v11 }
 0x5b7   : > { %v2647_v13 = vand.u32 4294901760, %v2646_v12 }
 0x5b9   : > { %v2648_v27 = vsub.f32 %v2646_v12, %v2647_v13 }
 0x5bb   : > { %v2649_v14 = vand.u32 4294901760, %v2648_v27 }
 0x5bd   : > { %8198 = vmatmul.mubr.f32.vlgmr.msra.gmra.mrb[4].mxu0 %v2649_v14  ;;  %v11037_v14 = vsub.f32 %v3116_v3, %v3185_v30 }
 0x5be   : > { %8748 = vmatpush3.bf16.msra.mxu0 %v8747_v56  ;;  %8212 = vmatprep.mubr.msk.f32.mxu0 %vm10296_vm11, %v12838_v1 }
 0x5bf   : > { %8749 = vmatprep.subr.bf16.mxu0 %v12865_v16  ;;  %12974 = vst [vmem:[#allocation44_spill] sm:$0xff] %v11037_v14 }
 0x5c2   : > { %8751 = vmatpush3.bf16.msra.mxu0 %v8750_v0  ;;  %v3114_v0 = vld [vmem:[%s12812_s11 + $0x78] sm:$0xff] }
 0x5c3   : > { %8752 = vmatprep.subr.bf16.mxu0 %v12865_v16  ;;  %v3179_v53 = vand.u32 4294901760, %v3114_v0 }
 0x5c6   : > { %8754 = vmatpush3.bf16.msra.mxu0 %v8753_v6  ;;  %v11012_v6 = vsub.f32 %v3109_v40, %v3164_v55 }
 0x5c7   : > { %8755 = vmatprep.subr.bf16.mxu0 %v12865_v16 }
 0x5c9   : > { %8213 = vmatmul.mubr.f32.vlgmr.msra.gmra.mrb[4].mxu0 %v2645_v11 }
 0x5ca   : > { %8757 = vmatpush3.bf16.msra.mxu0 %v8756_v7  ;;  %8227 = vmatprep.mubr.msk.f32.mxu0 %vm10296_vm11, %v12838_v1  ;;  %v3117_v7 = vld [vmem:[%s12812_s11 + $0x90] sm:$0xff] }
 0x5cb   : > { %8758 = vmatprep.subr.bf16.mxu0 %v12865_v16  ;;  %v3188_v10 = vand.u32 4294901760, %v3117_v7 }
 0x5ce   : > { %8760 = vmatpush3.bf16.msra.mxu0 %v8759_v8  ;;  %v3118_v8 = vld [vmem:[%s12812_s11 + $0x98] sm:$0xff] }
 0x5cf   : > { %8761 = vmatprep.subr.bf16.mxu0 %v12865_v16 }
 0x5d2   : > { %8763 = vmatpush3.bf16.msra.mxu0 %v8762_v25 }
 0x5d3   : > { %8764 = vmatprep.subr.bf16.mxu0 %v12865_v16 }
 0x5d5   : > { %8228 = vmatmul.mubr.f32.vlgmr.msra.gmra.mrb[4].mxu0 %v2646_v12  ;;  %v11030_v12 = vsub.f32 %v3114_v0, %v3179_v53 }
 0x5d6   : > { %8766 = vmatpush3.bf16.msra.mxu0 %v10853_v21  ;;  %8242 = vmatprep.mubr.msk.f32.mxu0 %vm10296_vm11, %v12838_v1 }
 0x5d7   : > { %8767 = vmatprep.subr.bf16.mxu0 %v12865_v16  ;;  %12973 = vst [vmem:[#allocation43_spill] sm:$0xff] %v11030_v12 }
 0x5da   : > { %8769 = vmatpush3.bf16.msra.mxu0 %v10863_v32 }
 0x5db   : > { %8770 = vmatprep.subr.bf16.mxu0 %v12865_v16 }
 0x5de   : > { %8772 = vmatpush3.bf16.msra.mxu0 %v10875_v41 }
 0x5df   : > { %8773 = vmatprep.subr.bf16.mxu0 %v12865_v16 }
 0x5e1   : > { %8243 = vmatmul.mubr.f32.vlgmr.msra.gmra.mrb[4].mxu0 %v2647_v13  ;;  %v11032_v13 = vsub.f32 %v3115_v2, %v3182_v28 }
 0x5e2   : > { %8775 = vmatpush3.bf16.msra.mxu0 %v8774_v26  ;;  %8257 = vmatprep.mubr.msk.f32.mxu0 %vm10296_vm11, %v12838_v1  ;;  %v3173_v26 = vand.u32 4294901760, %v3112_v57 }
 0x5e3   : > { %8776 = vmatprep.subr.bf16.mxu0 %v12865_v16 }
 0x5e4   : > { %v11026_v63 = vsub.f32 %v3112_v57, %v3173_v26 }
 0x5e6   : > { %8778 = vmatpush3.bf16.msra.mxu0 %v8777_v29  ;;  %v11023_v29 = vsub.f32 %v3111_v45, %v3170_v62  ;;  %12972 = vst [vmem:[#allocation42_spill] sm:$0xff] %v11026_v63  ;;  %v3122_v45 = vld [vmem:[%s12812_s11 + $0xb8] sm:$0xff] }
 0x5e7   : > { %8779 = vmatprep.subr.bf16.mxu0 %v12865_v16  ;;  %v3203_v52 = vand.u32 4294901760, %v3122_v45 }
 0x5e9   : > { %v11104_v3 = vsub.f32 %v3122_v45, %v3203_v52 }
 0x5ea   : > { %8781 = vmatpush3.bf16.msra.mxu0 %v8780_v47  ;;  %v3176_v47 = vand.u32 4294901760, %v3113_v58 }
 0x5eb   : > { %8782 = vmatprep.subr.bf16.mxu0 %v12865_v16  ;;  %12977 = vst [vmem:[#allocation47_spill] sm:$0xff] %v11104_v3 }
 0x5ec   : > { %v11028_v9 = vsub.f32 %v3113_v58, %v3176_v47  ;;  %v11057_v46 = vpack.c.bf16 %v3179_v53, %v3176_v47  ;;  %v12853_v47 = vand.u32 4294901760, %v10976_v43 }
 0x5ed   : > { %8258 = vmatmul.mubr.f32.vlgmr.msra.gmra.mrb[4].mxu0 %v2645_v11 }
 0x5ee   : > { %8784 = vmatpush3.bf16.msra.mxu0 %v10853_v21  ;;  %8272 = vmatprep.mubr.msk.f32.mxu0 %vm10296_vm11, %v12838_v1  ;;  %v3099_v21 = vld [vmem:[%s12812_s11] sm:$0xff]  ;;  %v3262_v30 = vsub.f32 %v10976_v43, %v12853_v47 }
 0x5ef   : > { %8785 = vmatprep.subr.bf16.mxu0 %v12865_v16  ;;  %v3134_v17 = vand.u32 4294901760, %v3099_v21 }
 0x5f1   : > { %v10957_v35 = vpack.c.bf16 %v3137_v18, %v3134_v17  ;;  %v10959_v36 = vsub.f32 %v3099_v21, %v3134_v17  ;;  %v11039_v21 = vsub.f32 %v3117_v7, %v3188_v10  ;;  %v11053_v18 = vpack.c.bf16 %v3173_v26, %v3170_v62 }
 0x5f2   : > { %8787 = vmatpush3.bf16.msra.mxu0 %v10863_v32  ;;  %v3105_v32 = vld [vmem:[%s12812_s11 + $0x30] sm:$0xff]  ;;  %v11097_v62 = vsub.f32 %v3119_v22, %v3194_v31  ;;  %v12856_v26 = vand.u32 4294901760, %v10963_v38  ;;  %v3263_v22 = vand.u32 4294901760, %v3262_v30 }
 0x5f3   : > { %8788 = vmatprep.subr.bf16.mxu0 %v12865_v16  ;;  %v3152_v50 = vand.u32 4294901760, %v3105_v32  ;;  %12975 = vst [vmem:[#allocation45_spill] sm:$0xff] %v11039_v21  ;;  %v12863_v54 = vand.u32 4294901760, %v10959_v36 }
 0x5f4   : > { %v3255_v28 = vsub.f32 %v10963_v38, %v12856_v26  ;;  %v12858_v47 = vand.u32 4294901760, %v11097_v62 }
 0x5f5   : > { %v10993_v59 = vsub.f32 %v3105_v32, %v3152_v50  ;;  %v11035_v27 = vpack.c.bf16 %v3155_v51, %v3152_v50  ;;  %v3197_v32 = vand.u32 4294901760, %v3120_v23  ;;  %v3241_v57 = vsub.f32 %v10959_v36, %v12863_v54 }
 0x5f6   : > { %8790 = vmatpush3.bf16.msra.mxu0 %v10875_v41  ;;  %v3110_v41 = vld [vmem:[%s12812_s11 + $0x58] sm:$0xff] }
 0x5f7   : > { %8791 = vmatprep.subr.bf16.mxu0 %v12865_v16  ;;  %v3167_v56 = vand.u32 4294901760, %v3110_v41  ;;  %v11076_v40 = vpack.c.bf16 %v3197_v32, %v3194_v31  ;;  %v11099_v0 = vsub.f32 %v3120_v23, %v3197_v32  ;;  %v3242_v7 = vand.u32 4294901760, %v3241_v57 }
 0x5f8   : > { %v12850_v23 = vand.u32 4294901760, %v10978_v44  ;;  %v12849_v32 = vand.u32 4294901760, %v10984_v49 }
 0x5f9   : > { %8273 = vmatmul.mubr.f32.vlgmr.msra.gmra.mrb[4].mxu0 %v2645_v11  ;;  %v11021_v25 = vsub.f32 %v3110_v41, %v3167_v56  ;;  %v3191_v11 = vand.u32 4294901760, %v3118_v8  ;;  %v11049_v17 = vpack.c.bf16 %v3167_v56, %v3164_v55  ;;  %v3121_v41 = vld [vmem:[%s12812_s11 + $0xb0] sm:$0xff]  ;;  %v12859_v55 = vand.u32 4294901760, %v10961_v37 }
 0x5fa   : > { %8793 = vmatpush1.bf16.msra.mxu0 %v10957_v35  ;;  %v3200_v51 = vand.u32 4294901760, %v3121_v41 }
 0x5fb   : > { %8794 = vmatprep.subr.bf16.mxu0 %v12865_v16  ;;  %12971 = vst [vmem:[#allocation41_spill] sm:$0xff] %v11021_v25  ;;  %v11041_v24 = vsub.f32 %v3118_v8, %v3191_v11  ;;  %v11065_v19 = vpack.c.bf16 %v3191_v11, %v3188_v10  ;;  %v3248_v58 = vsub.f32 %v10961_v37, %v12859_v55 }
 0x5fc   : > { %v11089_v56 = vpack.c.bf16 %v3203_v52, %v3200_v51  ;;  %v11102_v2 = vsub.f32 %v3121_v41, %v3200_v51  ;;  %v3276_v41 = vsub.f32 %v10984_v49, %v12849_v32  ;;  %v12844_v51 = vand.u32 4294901760, %v10993_v59 }
 0x5fd   : > { %12976 = vst [vmem:[#allocation46_spill] sm:$0xff] %v11041_v24  ;;  %v3249_v8 = vand.u32 4294901760, %v3248_v58  ;;  %v12841_v52 = vand.u32 4294901760, %v10995_v60 }
 0x5fe   : > { %8796 = vmatpush1.bf16.msra.mxu0 %v10974_v42  ;;  %v3277_v57 = vand.u32 4294901760, %v3276_v41  ;;  %v12860_v26 = vand.u32 4294901760, %v11102_v2  ;;  %v8897_v54 = vpack.c.bf16 %v11104_v3, %v11102_v2 }
 0x5ff   : > { %8797 = vmatprep.subr.bf16.mxu0 %v12865_v16  ;;  %v11109_v53 = vpack.c.bf16 %v3249_v8, %v3242_v7  ;;  %v3283_v7 = vsub.f32 %v10993_v59, %v12844_v51  ;;  %v3290_v8 = vsub.f32 %v10995_v60, %v12841_v52 }
 0x602   : > { %8799 = vmatpush1.bf16.msra.mxu0 %v11008_v4 }
 0x603   : > { %8800 = vmatprep.subr.bf16.mxu0 %v12865_v16 }
 0x606   : > { %8802 = vmatpush1.bf16.msra.mxu0 %v11035_v27 }
 0x607   : > { %8803 = vmatprep.subr.bf16.mxu0 %v12865_v16 }
 0x60a   : > { %8805 = vmatpush1.bf16.msra.mxu0 %v11045_v15 }
 0x60b   : > { %8806 = vmatprep.subr.bf16.mxu0 %v12865_v16 }
 0x60e   : > { %8808 = vmatpush1.bf16.msra.mxu0 %v11049_v17 }
 0x60f   : > { %8809 = vmatprep.subr.bf16.mxu0 %v12865_v16 }
 0x612   : > { %8811 = vmatpush1.bf16.msra.mxu0 %v11053_v18 }
 0x613   : > { %8812 = vmatprep.subr.bf16.mxu0 %v12865_v16 }
 0x616   : > { %8814 = vmatpush1.bf16.msra.mxu0 %v11057_v46 }
 0x617   : > { %8815 = vmatprep.subr.bf16.mxu0 %v12865_v16 }
 0x61a   : > { %8817 = vmatpush1.bf16.msra.mxu0 %v11061_v48 }
 0x61b   : > { %8818 = vmatprep.subr.bf16.mxu0 %v12865_v16 }
 0x61e   : > { %8820 = vmatpush1.bf16.msra.mxu0 %v11065_v19 }
 0x61f   : > { %8821 = vmatprep.subr.bf16.mxu0 %v12865_v16 }
 0x622   : > { %8823 = vmatpush1.bf16.msra.mxu0 %v11076_v40 }
 0x623   : > { %8824 = vmatprep.subr.bf16.mxu0 %v12865_v16 }
 0x626   : > { %8826 = vmatpush1.bf16.msra.mxu0 %v11089_v56 }
 0x627   : > { %8827 = vmatprep.subr.bf16.mxu0 %v12865_v16 }
 0x6cc   : > { %v3081_v33 = vpop.f32.mrb[4].mxu0 }
 0x6cd   : > { %v9659_v34 = vadd.f32 %v7496_v20, %v3081_v33  ;;  %v8274_v39 = vpop.f32.mrb[5].mxu0  ;;  %v3256_v20 = vand.u32 4294901760, %v3255_v28 }
 0x6ce   : > { %v3269_v39 = vsub.f32 %v10978_v44, %v12850_v23  ;;  %v12855_v23 = vand.u32 4294901760, %v11039_v21 }
 0x6cf   : > { %v3085_v50 = vmax.f32 %v9659_v34, 0.0  ;;  %v11123_v34 = vpack.c.bf16 %v3263_v22, %v3256_v20  ;;  %v12840_v20 = vand.u32 4294901760, %v10997_v61  ;;  %v12842_v22 = vand.u32 4294901760, %v11010_v5 }
 0x6d1   : > { %3090 = vst.msk [vmem:[#allocation5 + $0x1] sm:$0xff] %vm3089_vm13, %v3085_v50  ;;  %v3270_v50 = vand.u32 4294901760, %v3269_v39  ;;  %v3297_v41 = vsub.f32 %v10997_v61, %v12840_v20 }
 0x6d3   : > { %v11143_v28 = vpack.c.bf16 %v3277_v57, %v3270_v50  ;;  %v3304_v50 = vsub.f32 %v11010_v5, %v12842_v22  ;;  %v3298_v57 = vand.u32 4294901760, %v3297_v41  ;;  %v12847_v41 = vand.u32 4294901760, %v11026_v63 }
 0x6d5   : > { %v3305_v1 = vand.u32 4294901760, %v3304_v50 }
 0x6d8   : > { %v3092_v10 = vld [vmem:[#allocation5 + $0x1] sm:$0xff] }
 0x6d9   : > { %v3093_v11 = vld [vmem:[#allocation5 + $0x2] sm:$0xff]  ;;  %3095 = vrot.lane.b32.xlu0 %v3092_v10, %s10297_s26  ;;  %v3284_v10 = vand.u32 4294901760, %v3283_v7  ;;  %v12843_v7 = vand.u32 4294901760, %v11012_v6 }
 0x6da   : > { %v3131_v31 = vsel %vm3089_vm13, %v3093_v11, 0  ;;  %v3291_v11 = vand.u32 4294901760, %v3290_v8  ;;  %v12845_v8 = vand.u32 4294901760, %v11021_v25  ;;  %v3091_v16 = vld [vmem:[#allocation5] sm:$0xff] }
 0x6db   : > { %v11121_v33 = vand.u32 4294901760, %v3131_v31 }
 0x6dc   : > { %v11150_v39 = vpack.c.bf16 %v3291_v11, %v3284_v10  ;;  %v3318_v10 = vsub.f32 %v11021_v25, %v12845_v8  ;;  %v11166_v11 = vpack.c.bf16 %v3305_v1, %v3298_v57  ;;  %v12848_v1 = vand.u32 4294901760, %v11028_v9 }
 0x6dd   : > { %v11132_v45 = vsub.f32 %v3131_v31, %v11121_v33  ;;  %v12851_v57 = vand.u32 4294901760, %v11030_v12 }
 0x6de   : > { %v3319_v52 = vand.u32 4294901760, %v3318_v10 }
 0x6df   : > { %v12864_v58 = vand.u32 4294901760, %v11132_v45 }
 0x6e1   : > { %v3224_v30 = vsub.f32 %v11132_v45, %v12864_v58 }
 0x6e3   : > { %v3225_v31 = vand.u32 4294901760, %v3224_v30  ;;  %v3311_v30 = vsub.f32 %v11012_v6, %v12843_v7  ;;  %v3332_v7 = vsub.f32 %v11026_v63, %v12847_v41  ;;  %v12852_v41 = vand.u32 4294901760, %v11032_v13 }
 0x6e5   : > { %3226 = vmatprep.mubr.f32.mxu0 %v3225_v31  ;;  %v3312_v20 = vand.u32 4294901760, %v3311_v30  ;;  %v12846_v31 = vand.u32 4294901760, %v11023_v29  ;;  %v3333_v8 = vand.u32 4294901760, %v3332_v7  ;;  %v12854_v7 = vand.u32 4294901760, %v11037_v14 }
 0x6e7   : > { %v11170_v22 = vpack.c.bf16 %v3319_v52, %v3312_v20  ;;  %v3325_v50 = vsub.f32 %v11023_v29, %v12846_v31  ;;  %v3339_v52 = vsub.f32 %v11028_v9, %v12848_v1  ;;  %v3346_v20 = vsub.f32 %v11030_v12, %v12851_v57 }
 0x6e8   : > { %v3367_v57 = vsub.f32 %v11039_v21, %v12855_v23 }
 0x6e9   : > { %v3326_v51 = vand.u32 4294901760, %v3325_v50  ;;  %v3340_v10 = vand.u32 4294901760, %v3339_v52  ;;  %v3347_v31 = vand.u32 4294901760, %v3346_v20  ;;  %v12857_v52 = vand.u32 4294901760, %v11041_v24 }
 0x6eb   : > { %v11180_v30 = vpack.c.bf16 %v3333_v8, %v3326_v51  ;;  %v8849_v50 = vpack.c.bf16 %v3347_v31, %v3340_v10  ;;  %v3353_v51 = vsub.f32 %v11032_v13, %v12852_v41  ;;  %v3360_v8 = vsub.f32 %v11037_v14, %v12854_v7 }
 0x6ec   : > { %v3374_v31 = vsub.f32 %v11041_v24, %v12857_v52  ;;  %v3368_v10 = vand.u32 4294901760, %v3367_v57  ;;  %v3381_v7 = vsub.f32 %v11097_v62, %v12858_v47  ;;  %v12861_v57 = vand.u32 4294901760, %v11104_v3 }
 0x6ed   : > { %v3354_v1 = vand.u32 4294901760, %v3353_v51  ;;  %v3361_v32 = vand.u32 4294901760, %v3360_v8  ;;  %v12862_v51 = vand.u32 4294901760, %v11099_v0  ;;  %v3395_v52 = vsub.f32 %v11102_v2, %v12860_v26 }
 0x6ee   : > { %v3375_v41 = vand.u32 4294901760, %v3374_v31  ;;  %v8876_v26 = vpack.c.bf16 %v11010_v5, %v10997_v61 }
 0x6ef   : > { %v8852_v20 = vpack.c.bf16 %v3361_v32, %v3354_v1  ;;  %v3388_v32 = vsub.f32 %v11099_v0, %v12862_v51  ;;  %v3382_v1 = vand.u32 4294901760, %v3381_v7  ;;  %v8864_v7 = vpack.c.bf16 %v10961_v37, %v10959_v36 }
 0x6f0   : > { %v8855_v8 = vpack.c.bf16 %v3375_v41, %v3368_v10  ;;  %v3402_v41 = vsub.f32 %v11104_v3, %v12861_v57  ;;  %v3396_v10 = vand.u32 4294901760, %v3395_v52  ;;  %v8879_v52 = vpack.c.bf16 %v11021_v25, %v11012_v6 }
 0x6f1   : > { %v3389_v23 = vand.u32 4294901760, %v3388_v32  ;;  %v8867_v32 = vpack.c.bf16 %v10976_v43, %v10963_v38  ;;  %v8891_v57 = vpack.c.bf16 %v11041_v24, %v11039_v21  ;;  %v8894_v51 = vpack.c.bf16 %v11099_v0, %v11097_v62 }
 0x6f2   : > { %v3403_v47 = vand.u32 4294901760, %v3402_v41  ;;  %v8885_v41 = vpack.c.bf16 %v11030_v12, %v11028_v9  ;;  %v12978_v3 = vmov 0.0|0.0  }
 0x6f3   : > { %v8858_v31 = vpack.c.bf16 %v3389_v23, %v3382_v1  ;;  %v8870_v23 = vpack.c.bf16 %v10984_v49, %v10978_v44  ;;  %v8873_v1 = vpack.c.bf16 %v10995_v60, %v10993_v59 }
 0x6f4   : > { %v8861_v55 = vpack.c.bf16 %v3403_v47, %v3396_v10  ;;  %v8882_v47 = vpack.c.bf16 %v11026_v63, %v11023_v29  ;;  %v8888_v10 = vpack.c.bf16 %v11037_v14, %v11032_v13 }
 0x74b   : > { %v3096_v58 = vpop.permute.xlu0 %3095 }
 0x74c   : > { %v3098_v25 = vsel %vm3089_vm13, %v3091_v16, %v3096_v58  ;;  %v12979_v16 = vand.u32 4294901760, %v11132_v45 }
 0x74d   : > { %v11245_v63 = vand.u32 4294901760, %v3098_v25 }
 0x74f   : > { %v11248_v12 = vsub.f32 %v3098_v25, %v11245_v63  ;;  %v12980_v25 = vand.u32 4294901760, %v10959_v36  ;;  %v12984_v36 = vand.u32 4294901760, %v10978_v44  ;;  %v12990_v44 = vand.u32 4294901760, %v11012_v6 }
 0x750   : > { %v12999_v6 = vand.u32 4294901760, %v11032_v13  ;;  %v13008_v13 = vand.u32 4294901760, %v11102_v2 }
 0x751   : > { %v3229_v14 = vand.u32 4294901760, %v11248_v12 }
 0x753   : > { %v3230_v24 = vsub.f32 %v11248_v12, %v3229_v14 }
 0x755   : > { %v3231_v21 = vand.u32 4294901760, %v3230_v24 }
 0x757   : > { %3232 = vmatmul.mubr.f32.vlgmr.msra.gmra.mrb[6].mxu0 %v3231_v21  ;;  %v12981_v21 = vand.u32 4294901760, %v10961_v37  ;;  %v12985_v37 = vand.u32 4294901760, %v10984_v49  ;;  %v12991_v49 = vld [vmem:[#allocation41_spill] sm:$0xff] }
 0x758   : > { %8829 = vmatpush1.bf16.msra.mxu0 %v11109_v53  ;;  %3422 = vmatprep.mubr.f32.mxu0 %v11121_v33  ;;  %v12992_v58 = vand.u32 4294901760, %v12991_v49 }
 0x759   : > { %8830 = vmatprep.subr.bf16.mxu0 %v12978_v3  ;;  %v8936_v24 = vpack.c.bf16 %v12981_v21, %v12980_v25  ;;  %v8942_v53 = vpack.c.bf16 %v12985_v37, %v12984_v36  ;;  %v4380_v36 = vld [vmem:[#allocation23 + $0x10] sm:$0xff] }
 0x75c   : > { %8832 = vmatpush1.bf16.msra.mxu0 %v11123_v34 }
 0x75d   : > { %8833 = vmatprep.subr.bf16.mxu0 %v12978_v3 }
 0x760   : > { %8835 = vmatpush1.bf16.msra.mxu0 %v11143_v28  ;;  %v8951_v28 = vpack.c.bf16 %v12992_v58, %v12990_v44 }
 0x761   : > { %8836 = vmatprep.subr.bf16.mxu0 %v12978_v3 }
 0x764   : > { %8838 = vmatpush1.bf16.msra.mxu0 %v11150_v39 }
 0x765   : > { %8839 = vmatprep.subr.bf16.mxu0 %v12978_v3 }
 0x768   : > { %8841 = vmatpush1.bf16.msra.mxu0 %v11166_v11 }
 0x769   : > { %8842 = vmatprep.subr.bf16.mxu0 %v12978_v3 }
 0x76c   : > { %8844 = vmatpush1.bf16.msra.mxu0 %v11170_v22 }
 0x76d   : > { %8845 = vmatprep.subr.bf16.mxu0 %v12978_v3 }
 0x770   : > { %8847 = vmatpush1.bf16.msra.mxu0 %v11180_v30 }
 0x771   : > { %8848 = vmatprep.subr.bf16.mxu0 %v12978_v3 }
 0x774   : > { %8850 = vmatpush1.bf16.msra.mxu0 %v8849_v50  ;;  %v13000_v50 = vld [vmem:[#allocation44_spill] sm:$0xff] }
 0x775   : > { %8851 = vmatprep.subr.bf16.mxu0 %v12978_v3 }
 0x778   : > { %8853 = vmatpush1.bf16.msra.mxu0 %v8852_v20  ;;  %v13001_v20 = vand.u32 4294901760, %v13000_v50 }
 0x779   : > { %8854 = vmatprep.subr.bf16.mxu0 %v12978_v3 }
 0x77c   : > { %8856 = vmatpush1.bf16.msra.mxu0 %v8855_v8 }
 0x77d   : > { %8857 = vmatprep.subr.bf16.mxu0 %v12978_v3 }
 0x780   : > { %8859 = vmatpush1.bf16.msra.mxu0 %v8858_v31 }
 0x781   : > { %8860 = vmatprep.subr.bf16.mxu0 %v12978_v3 }
 0x784   : > { %8862 = vmatpush1.bf16.msra.mxu0 %v8861_v55  ;;  %v12983_v55 = vand.u32 4294901760, %v10976_v43  ;;  %v12989_v43 = vand.u32 4294901760, %v11010_v5  ;;  %v12997_v5 = vld [vmem:[#allocation43_spill] sm:$0xff] }
 0x785   : > { %8863 = vmatprep.subr.bf16.mxu0 %v12978_v3  ;;  %v12998_v11 = vand.u32 4294901760, %v12997_v5 }
 0x787   : > { %3424 = vmatmul.mubr.f32.vlgmr.msra.gmra.mrb[6].mxu0 %v11245_v63 }
 0x788   : > { %8865 = vmatpush1.bf16.msra.mxu0 %v8864_v7  ;;  %3543 = vmatprep.mubr.f32.mxu0 %v11132_v45 }
 0x789   : > { %8866 = vmatprep.subr.bf16.mxu0 %v12978_v3 }
 0x78c   : > { %8868 = vmatpush1.bf16.msra.mxu0 %v8867_v32  ;;  %v13007_v32 = vand.u32 4294901760, %v11099_v0 }
 0x78d   : > { %8869 = vmatprep.subr.bf16.mxu0 %v12978_v3 }
 0x790   : > { %8871 = vmatpush1.bf16.msra.mxu0 %v8870_v23 }
 0x791   : > { %8872 = vmatprep.subr.bf16.mxu0 %v12978_v3 }
 0x794   : > { %8874 = vmatpush1.bf16.msra.mxu0 %v8873_v1  ;;  %v13009_v1 = vld [vmem:[#allocation47_spill] sm:$0xff] }
 0x795   : > { %8875 = vmatprep.subr.bf16.mxu0 %v12978_v3 }
 0x798   : > { %8877 = vmatpush1.bf16.msra.mxu0 %v8876_v26 }
 0x799   : > { %8878 = vmatprep.subr.bf16.mxu0 %v12978_v3 }
 0x79c   : > { %8880 = vmatpush1.bf16.msra.mxu0 %v8879_v52  ;;  %v13010_v52 = vand.u32 4294901760, %v13009_v1 }
 0x79d   : > { %8881 = vmatprep.subr.bf16.mxu0 %v12978_v3 }
 0x7a0   : > { %8883 = vmatpush1.bf16.msra.mxu0 %v8882_v47  ;;  %v8969_v47 = vpack.c.bf16 %v13010_v52, %v13008_v13  ;;  %v4389_v13 = vld [vmem:[#allocation23 + $0x58] sm:$0xff] }
 0x7a1   : > { %8884 = vmatprep.subr.bf16.mxu0 %v12978_v3 }
 0x7a4   : > { %8886 = vmatpush1.bf16.msra.mxu0 %v8885_v41 }
 0x7a5   : > { %8887 = vmatprep.subr.bf16.mxu0 %v12978_v3 }
 0x7a8   : > { %8889 = vmatpush1.bf16.msra.mxu0 %v8888_v10 }
 0x7a9   : > { %8890 = vmatprep.subr.bf16.mxu0 %v12978_v3 }
 0x7ac   : > { %8892 = vmatpush1.bf16.msra.mxu0 %v8891_v57  ;;  %v13004_v57 = vld [vmem:[#allocation46_spill] sm:$0xff] }
 0x7ad   : > { %8893 = vmatprep.subr.bf16.mxu0 %v12978_v3  ;;  %v13005_v31 = vand.u32 4294901760, %v13004_v57 }
 0x7b0   : > { %8895 = vmatpush1.bf16.msra.mxu0 %v8894_v51  ;;  %v8960_v51 = vpack.c.bf16 %v13001_v20, %v12999_v6 }
 0x7b1   : > { %8896 = vmatprep.subr.bf16.mxu0 %v12978_v3 }
 0x7b4   : > { %8898 = vmatpush1.bf16.msra.mxu0 %v8897_v54  ;;  %v12982_v54 = vand.u32 4294901760, %v10963_v38  ;;  %v12988_v38 = vand.u32 4294901760, %v10997_v61  ;;  %v12996_v61 = vand.u32 4294901760, %v11028_v9  ;;  %v13006_v9 = vand.u32 4294901760, %v11097_v62 }
 0x7b5   : > { %8899 = vmatprep.subr.bf16.mxu0 %v12978_v3 }
 0x7b6   : > { %v8939_v26 = vpack.c.bf16 %v12983_v55, %v12982_v54  ;;  %v8948_v45 = vpack.c.bf16 %v12989_v43, %v12988_v38  ;;  %v8957_v30 = vpack.c.bf16 %v12998_v11, %v12996_v61  ;;  %v8966_v23 = vpack.c.bf16 %v13007_v32, %v13006_v9  ;;  %v4378_v55 = vld [vmem:[#allocation23] sm:$0xff]  ;;  %v4383_v38 = vld [vmem:[#allocation23 + $0x28] sm:$0xff] }
 0x7b7   : > { %3546 = vmatmul.mubr.f32.vlgmr.msra.gmra.mrb[6].mxu0 %v11248_v12  ;;  %v12986_v12 = vand.u32 4294901760, %v10993_v59  ;;  %v12993_v59 = vand.u32 4294901760, %v11023_v29  ;;  %v13002_v29 = vld [vmem:[#allocation45_spill] sm:$0xff]  ;;  %v4413_v37 = vand.u32 4294901760, %v4378_v55  ;;  %v4428_v44 = vand.u32 4294901760, %v4383_v38 }
 0x7b8   : > { %8901 = vmatpush1.bf16.msra.mxu0 %v10957_v35  ;;  %3642 = vmatprep.mubr.f32.mxu0 %v12979_v16  ;;  %v13003_v8 = vand.u32 4294901760, %v13002_v29  ;;  %v13011_v16 = vmov 0.0   ;;  %v4387_v29 = vld [vmem:[#allocation23 + $0x48] sm:$0xff] }
 0x7b9   : > { %8902 = vmatprep.subr.bf16.mxu0 %v12978_v3  ;;  %v11430_v49 = vsub.f32 %v4378_v55, %v4413_v37  ;;  %v4440_v32 = vand.u32 4294901760, %v4387_v29 }
 0x7ba   : > { %v8963_v7 = vpack.c.bf16 %v13005_v31, %v13003_v8 }
 0x7bc   : > { %8904 = vmatpush1.bf16.msra.mxu0 %v10974_v42 }
 0x7bd   : > { %8905 = vmatprep.subr.bf16.mxu0 %v12978_v3 }
 0x7c0   : > { %8907 = vmatpush1.bf16.msra.mxu0 %v11008_v4 }
 0x7c1   : > { %8908 = vmatprep.subr.bf16.mxu0 %v12978_v3 }
 0x7c4   : > { %8910 = vmatpush1.bf16.msra.mxu0 %v11035_v27 }
 0x7c5   : > { %8911 = vmatprep.subr.bf16.mxu0 %v12978_v3 }
 0x7c8   : > { %8913 = vmatpush1.bf16.msra.mxu0 %v11045_v15 }
 0x7c9   : > { %8914 = vmatprep.subr.bf16.mxu0 %v12978_v3 }
 0x7cc   : > { %8916 = vmatpush1.bf16.msra.mxu0 %v11049_v17 }
 0x7cd   : > { %8917 = vmatprep.subr.bf16.mxu0 %v12978_v3 }
 0x7d0   : > { %8919 = vmatpush1.bf16.msra.mxu0 %v11053_v18 }
 0x7d1   : > { %8920 = vmatprep.subr.bf16.mxu0 %v12978_v3 }
 0x7d4   : > { %8922 = vmatpush1.bf16.msra.mxu0 %v11057_v46 }
 0x7d5   : > { %8923 = vmatprep.subr.bf16.mxu0 %v12978_v3 }
 0x7d8   : > { %8925 = vmatpush1.bf16.msra.mxu0 %v11061_v48 }
 0x7d9   : > { %8926 = vmatprep.subr.bf16.mxu0 %v12978_v3 }
 0x7dc   : > { %8928 = vmatpush1.bf16.msra.mxu0 %v11065_v19 }
 0x7dd   : > { %8929 = vmatprep.subr.bf16.mxu0 %v12978_v3 }
 0x7e0   : > { %8931 = vmatpush1.bf16.msra.mxu0 %v11076_v40 }
 0x7e1   : > { %8932 = vmatprep.subr.bf16.mxu0 %v12978_v3 }
 0x7e4   : > { %8934 = vmatpush1.bf16.msra.mxu0 %v11089_v56 }
 0x7e5   : > { %8935 = vmatprep.subr.bf16.mxu0 %v12978_v3 }
 0x7e7   : > { %3646 = vmatmul.mubr.f32.vlgmr.msra.gmra.mrb[6].mxu0 %v3229_v14  ;;  %v12987_v14 = vand.u32 4294901760, %v10995_v60  ;;  %v12994_v60 = vld [vmem:[#allocation42_spill] sm:$0xff] }
 0x7e8   : > { %8937 = vmatpush1.bf16.msra.mxu0 %v8936_v24  ;;  %3788 = vmatprep.mubr.f32.mxu0 %v11121_v33  ;;  %v12995_v22 = vand.u32 4294901760, %v12994_v60 }
 0x7e9   : > { %8938 = vmatprep.subr.bf16.mxu0 %v12978_v3  ;;  %v8945_v34 = vpack.c.bf16 %v12987_v14, %v12986_v12  ;;  %v4381_v12 = vld [vmem:[#allocation23 + $0x18] sm:$0xff]  ;;  %v4419_v14 = vand.u32 4294901760, %v4380_v36 }
 0x7ea   : > { %v8954_v39 = vpack.c.bf16 %v12995_v22, %v12993_v59  ;;  %v4422_v43 = vand.u32 4294901760, %v4381_v12  ;;  %v4384_v22 = vld [vmem:[#allocation23 + $0x30] sm:$0xff] }
 0x7eb   : > { %v4431_v50 = vand.u32 4294901760, %v4384_v22 }
 0x7ec   : > { %8940 = vmatpush1.bf16.msra.mxu0 %v8939_v26  ;;  %v4379_v26 = vld [vmem:[#allocation23 + $0x8] sm:$0xff]  ;;  %v11438_v60 = vsub.f32 %v4381_v12, %v4422_v43  ;;  %v11443_v5 = vpack.c.bf16 %v4422_v43, %v4419_v14  ;;  %v4397_v12 = vld [vmem:[#allocation23 + $0x98] sm:$0xff] }
 0x7ed   : > { %8941 = vmatprep.subr.bf16.mxu0 %v12978_v3  ;;  %v11459_v31 = vsub.f32 %v4384_v22, %v4431_v50  ;;  %v4398_v22 = vld [vmem:[#allocation23 + $0xa0] sm:$0xff] }
 0x7f0   : > { %8943 = vmatpush1.bf16.msra.mxu0 %v8942_v53  ;;  %v4416_v53 = vand.u32 4294901760, %v4379_v26 }
 0x7f1   : > { %8944 = vmatprep.subr.bf16.mxu0 %v12978_v3 }
 0x7f2   : > { %v11432_v58 = vsub.f32 %v4379_v26, %v4416_v53  ;;  %v11436_v59 = vpack.c.bf16 %v4416_v53, %v4413_v37  ;;  %v4396_v53 = vld [vmem:[#allocation23 + $0x90] sm:$0xff] }
 0x7f4   : > { %8946 = vmatpush1.bf16.msra.mxu0 %v8945_v34  ;;  %v4382_v34 = vld [vmem:[#allocation23 + $0x20] sm:$0xff]  ;;  %v9098_v61 = vpack.c.bf16 %v11432_v58, %v11430_v49 }
 0x7f5   : > { %8947 = vmatprep.subr.bf16.mxu0 %v12978_v3 }
 0x7f6   : > { %9099 = vmatpush1.bf16.msra.mxu1 %v9098_v61 }
 0x7f7   : > { %9100 = vmatprep.subr.bf16.mxu1 %v12978_v3 }
 0x7f8   : > { %8949 = vmatpush1.bf16.msra.mxu0 %v8948_v45  ;;  %v4425_v45 = vand.u32 4294901760, %v4382_v34 }
 0x7f9   : > { %8950 = vmatprep.subr.bf16.mxu0 %v12978_v3 }
 0x7fa   : > { %v11445_v11 = vsub.f32 %v4382_v34, %v4425_v45  ;;  %v11454_v8 = vpack.c.bf16 %v4428_v44, %v4425_v45  ;;  %v4467_v34 = vand.u32 4294901760, %v4396_v53 }
 0x7fc   : > { %8952 = vmatpush1.bf16.msra.mxu0 %v8951_v28  ;;  %v11434_v28 = vsub.f32 %v4380_v36, %v4419_v14 }
 0x7fd   : > { %8953 = vmatprep.subr.bf16.mxu0 %v12978_v3 }
 0x7fe   : > { %v9101_v6 = vpack.c.bf16 %v11438_v60, %v11434_v28 }
 0x800   : > { %8955 = vmatpush1.bf16.msra.mxu0 %v8954_v39  ;;  %v4385_v39 = vld [vmem:[#allocation23 + $0x38] sm:$0xff]  ;;  %9102 = vmatpush1.bf16.msra.mxu1 %v9101_v6  ;;  %v11522_v6 = vsub.f32 %v4396_v53, %v4467_v34 }
 0x801   : > { %8956 = vmatprep.subr.bf16.mxu0 %v12978_v3  ;;  %v4434_v20 = vand.u32 4294901760, %v4385_v39  ;;  %9103 = vmatprep.subr.bf16.mxu1 %v12978_v3 }
 0x803   : > { %v11465_v1 = vpack.c.bf16 %v4434_v20, %v4431_v50 }
 0x804   : > { %8958 = vmatpush1.bf16.msra.mxu0 %v8957_v30  ;;  %v11447_v30 = vsub.f32 %v4383_v38, %v4428_v44  ;;  %v4470_v44 = vand.u32 4294901760, %v4397_v12 }
 0x805   : > { %8959 = vmatprep.subr.bf16.mxu0 %v12978_v3 }
 0x806   : > { %v9104_v57 = vpack.c.bf16 %v11447_v30, %v11445_v11 }
 0x808   : > { %8961 = vmatpush1.bf16.msra.mxu0 %v8960_v51  ;;  %v4386_v51 = vld [vmem:[#allocation23 + $0x40] sm:$0xff]  ;;  %9105 = vmatpush1.bf16.msra.mxu1 %v9104_v57  ;;  %v11531_v57 = vpack.c.bf16 %v4470_v44, %v4467_v34 }
 0x809   : > { %8962 = vmatprep.subr.bf16.mxu0 %v12978_v3  ;;  %v4437_v9 = vand.u32 4294901760, %v4386_v51  ;;  %9106 = vmatprep.subr.bf16.mxu1 %v12978_v3 }
 0x80c   : > { %8964 = vmatpush1.bf16.msra.mxu0 %v8963_v7  ;;  %v11461_v7 = vsub.f32 %v4385_v39, %v4434_v20  ;;  %v4399_v39 = vld [vmem:[#allocation23 + $0xa8] sm:$0xff]  ;;  %v11527_v20 = vsub.f32 %v4397_v12, %v4470_v44 }
 0x80d   : > { %8965 = vmatprep.subr.bf16.mxu0 %v12978_v3 }
 0x810   : > { %8967 = vmatpush1.bf16.msra.mxu0 %v8966_v23  ;;  %v4388_v23 = vld [vmem:[#allocation23 + $0x50] sm:$0xff] }
 0x811   : > { %8968 = vmatprep.subr.bf16.mxu0 %v12978_v3  ;;  %v4443_v52 = vand.u32 4294901760, %v4388_v23 }
 0x814   : > { %8970 = vmatpush1.bf16.msra.mxu0 %v8969_v47  ;;  %v9107_v47 = vpack.c.bf16 %v11461_v7, %v11459_v31 }
 0x815   : > { %8971 = vmatprep.subr.bf16.mxu0 %v12978_v3 }
 0x816   : > { %9108 = vmatpush1.bf16.msra.mxu1 %v9107_v47  ;;  %v7498_v47 = vld [vmem:[#allocation21] ss:$0 sm:$0xff] }
 0x817   : > { %3790 = vmatmul.mubr.f32.vlgmr.msra.gmra.mrb[6].mxu0 %v11245_v63  ;;  %9109 = vmatprep.subr.bf16.mxu1 %v12978_v3 }
 0x818   : > { %8973 = vmatpush1.bf16.msra.mxu0 %v10957_v35  ;;  %3884 = vmatprep.mubr.f32.mxu0 %v11121_v33  ;;  %v3892_v35 = vld [vmem:[%s12814_s13] sm:$0xff] }
 0x819   : > { %8974 = vmatprep.subr.bf16.mxu0 %v12978_v3 }
 0x81c   : > { %8976 = vmatpush1.bf16.msra.mxu0 %v10974_v42  ;;  %v3893_v42 = vld [vmem:[%s12814_s13 + $0x8] sm:$0xff] }
 0x81d   : > { %8977 = vmatprep.subr.bf16.mxu0 %v12978_v3 }
 0x820   : > { %8979 = vmatpush1.bf16.msra.mxu0 %v11008_v4  ;;  %v3891_v4 = vld [vmem:[#allocation7 + $0x1] ss:$2 sm:$0xff] }
 0x821   : > { %8980 = vmatprep.subr.bf16.mxu0 %v12978_v3 }
 0x824   : > { %8982 = vmatpush1.bf16.msra.mxu0 %v11035_v27  ;;  %v3905_v27 = vand.u32 4294901760, %v3892_v35 }
 0x825   : > { %8983 = vmatprep.subr.bf16.mxu0 %v12978_v3 }
 0x828   : > { %8985 = vmatpush1.bf16.msra.mxu0 %v11045_v15  ;;  %v3908_v15 = vand.u32 4294901760, %v3893_v42 }
 0x829   : > { %8986 = vmatprep.subr.bf16.mxu0 %v12978_v3 }
 0x82a   : > { %v9008_v33 = vpack.c.bf16 %v3908_v15, %v3905_v27 }
 0x82c   : > { %8988 = vmatpush1.bf16.msra.mxu0 %v11049_v17  ;;  %v3902_v17 = vsel %vm1423_vm8, %v3891_v4, 0  ;;  %v4446_v4 = vand.u32 4294901760, %v4389_v13 }
 0x82d   : > { %8989 = vmatprep.subr.bf16.mxu0 %v12978_v3  ;;  %v3971_v62 = vand.u32 4294901760, %v3902_v17 }
 0x830   : > { %8991 = vmatpush1.bf16.msra.mxu0 %v11053_v18  ;;  %v3983_v18 = vsub.f32 %v3892_v35, %v3905_v27  ;;  %v11470_v35 = vsub.f32 %v4386_v51, %v4437_v9  ;;  %v4390_v27 = vld [vmem:[#allocation23 + $0x60] sm:$0xff]  ;;  %v4473_v51 = vand.u32 4294901760, %v4398_v22 }
 0x831   : > { %8992 = vmatprep.subr.bf16.mxu0 %v12978_v3 }
 0x832   : > { %v3984_v0 = vand.u32 4294901760, %v3983_v18 }
 0x834   : > { %8994 = vmatpush1.bf16.msra.mxu0 %v11057_v46  ;;  %v3990_v46 = vsub.f32 %v3893_v42, %v3908_v15  ;;  %v3985_v41 = vsub.f32 %v3983_v18, %v3984_v0  ;;  %v11472_v42 = vsub.f32 %v4387_v29, %v4440_v32  ;;  %v4391_v15 = vld [vmem:[#allocation23 + $0x68] sm:$0xff]  ;;  %v4476_v29 = vand.u32 4294901760, %v4399_v39 }
 0x835   : > { %8995 = vmatprep.subr.bf16.mxu0 %v12978_v3 }
 0x836   : > { %v3991_v2 = vand.u32 4294901760, %v3990_v46 }
 0x838   : > { %8997 = vmatpush1.bf16.msra.mxu0 %v11061_v48  ;;  %v3972_v48 = vsub.f32 %v3902_v17, %v3971_v62  ;;  %v3992_v10 = vsub.f32 %v3990_v46, %v3991_v2  ;;  %v11476_v17 = vpack.c.bf16 %v4440_v32, %v4437_v9  ;;  %v9125_v9 = vpack.c.bf16 %v11527_v20, %v11522_v6 }
 0x839   : > { %8998 = vmatprep.subr.bf16.mxu0 %v12978_v3  ;;  %v11536_v32 = vsub.f32 %v4398_v22, %v4473_v51 }
 0x83a   : > { %v3993_v25 = vand.u32 4294901760, %v3992_v10 }
 0x83c   : > { %9000 = vmatpush1.bf16.msra.mxu0 %v11065_v19  ;;  %v3973_v19 = vand.u32 4294901760, %v3972_v48 }
 0x83d   : > { %9001 = vmatprep.subr.bf16.mxu0 %v12978_v3 }
 0x83e   : > { %v3974_v21 = vsub.f32 %v3972_v48, %v3973_v19 }
 0x840   : > { %9003 = vmatpush1.bf16.msra.mxu0 %v11076_v40  ;;  %v3986_v40 = vand.u32 4294901760, %v3985_v41  ;;  %v3975_v54 = vand.u32 4294901760, %v3974_v21  ;;  %v11487_v41 = vpack.c.bf16 %v4446_v4, %v4443_v52 }
 0x841   : > { %9004 = vmatprep.subr.bf16.mxu0 %v12978_v3 }
 0x842   : > { %v9011_v24 = vpack.c.bf16 %v3993_v25, %v3986_v40 }
 0x844   : > { %9006 = vmatpush1.bf16.msra.mxu0 %v11089_v56  ;;  %v9014_v56 = vpack.c.bf16 %v3990_v46, %v3983_v18  ;;  %v11478_v18 = vsub.f32 %v4388_v23, %v4443_v52  ;;  %v9110_v46 = vpack.c.bf16 %v11472_v42, %v11470_v35  ;;  %v11538_v23 = vsub.f32 %v4399_v39, %v4476_v29  ;;  %v7497_v52 = vld [vmem:[#allocation20] ss:$0 sm:$0xff] }
 0x845   : > { %9007 = vmatprep.subr.bf16.mxu0 %v12978_v3 }
 0x846   : > { %9111 = vmatpush1.bf16.msra.mxu1 %v9110_v46 }
 0x847   : > { %3886 = vmatmul.mubr.f32.vlgmr.msra.gmra.mrb[6].mxu0 %v11245_v63  ;;  %v9020_v63 = vpack.c.bf16 %v3991_v2, %v3984_v0  ;;  %v4449_v0 = vand.u32 4294901760, %v4390_v27  ;;  %v4452_v2 = vand.u32 4294901760, %v4391_v15  ;;  %9112 = vmatprep.subr.bf16.mxu1 %v12978_v3 }
 0x848   : > { %9009 = vmatpush3.bf16.msra.mxu0 %v9008_v33  ;;  %8279 = vmatprep.mubr.msk.f32.mxu0 %vm10296_vm11, %v13011_v16 }
 0x849   : > { %9010 = vmatprep.subr.bf16.mxu0 %v12978_v3  ;;  %v11492_v40 = vsub.f32 %v4390_v27, %v4449_v0  ;;  %v11494_v25 = vsub.f32 %v4391_v15, %v4452_v2  ;;  %v4401_v27 = vld [vmem:[#allocation23 + $0xb8] sm:$0xff] }
 0x84a   : > { %v4482_v46 = vand.u32 4294901760, %v4401_v27 }
 0x84b   : > { %v9116_v55 = vpack.c.bf16 %v11494_v25, %v11492_v40 }
 0x84f   : > { %8280 = vmatmul.mubr.f32.vlgmr.msra.gmra.mrb[6].mxu0 %v3975_v54  ;;  %v4395_v54 = vld [vmem:[#allocation23 + $0x88] sm:$0xff] }
 0x850   : > { %9012 = vmatpush3.bf16.msra.mxu0 %v9011_v24  ;;  %8286 = vmatprep.mubr.msk.f32.mxu0 %vm10296_vm11, %v13011_v16  ;;  %v4394_v24 = vld [vmem:[#allocation23 + $0x80] sm:$0xff]  ;;  %v4464_v37 = vand.u32 4294901760, %v4395_v54 }
 0x851   : > { %9013 = vmatprep.subr.bf16.mxu0 %v12978_v3  ;;  %v4461_v36 = vand.u32 4294901760, %v4394_v24 }
 0x852   : > { %v11516_v45 = vsub.f32 %v4395_v54, %v4464_v37 }
 0x853   : > { %v11514_v43 = vsub.f32 %v4394_v24, %v4461_v36  ;;  %v11520_v61 = vpack.c.bf16 %v4464_v37, %v4461_v36  ;;  %v11547_v24 = vpack.c.bf16 %v4476_v29, %v4473_v51 }
 0x855   : > { %v9122_v50 = vpack.c.bf16 %v11516_v45, %v11514_v43 }
 0x857   : > { %8287 = vmatmul.mubr.f32.vlgmr.msra.gmra.mrb[6].mxu0 %v3971_v62 }
 0x858   : > { %9015 = vmatpush3.bf16.msra.mxu0 %v9014_v56  ;;  %8293 = vmatprep.mubr.msk.f32.mxu0 %vm10296_vm11, %v13011_v16  ;;  %v11498_v56 = vpack.c.bf16 %v4452_v2, %v4449_v0  ;;  %v9660_v0 = vadd.f32 %v7498_v47, %v7497_v52 }
 0x859   : > { %9016 = vmatprep.subr.bf16.mxu0 %v12978_v3 }
 0x85f   : > { %8294 = vmatmul.mubr.f32.vlgmr.msra.gmra.mrb[6].mxu0 %v3972_v48  ;;  %v4392_v48 = vld [vmem:[#allocation23 + $0x70] sm:$0xff] }
 0x860   : > { %9018 = vmatpush3.bf16.msra.mxu0 %v9008_v33  ;;  %8300 = vmatprep.mubr.msk.f32.mxu0 %vm10296_vm11, %v13011_v16  ;;  %v4455_v10 = vand.u32 4294901760, %v4392_v48 }
 0x861   : > { %9019 = vmatprep.subr.bf16.mxu0 %v12978_v3 }
 0x867   : > { %8301 = vmatmul.mubr.f32.vlgmr.msra.gmra.mrb[6].mxu0 %v3973_v19 }
 0x868   : > { %9021 = vmatpush3.bf16.msra.mxu0 %v9020_v63  ;;  %8307 = vmatprep.mubr.msk.f32.mxu0 %vm10296_vm11, %v13011_v16  ;;  %v11500_v63 = vsub.f32 %v4392_v48, %v4455_v10  ;;  %v4679_v48 = vsub.f32 %v4401_v27, %v4482_v46  ;;  %v4526_v27 = vand.u32 4294901760, %v11432_v58 }
 0x869   : > { %9022 = vmatprep.subr.bf16.mxu0 %v12978_v3 }
 0x86f   : > { %8308 = vmatmul.mubr.f32.vlgmr.msra.gmra.mrb[6].mxu0 %v3971_v62 }
 0x870   : > { %9024 = vmatpush3.bf16.msra.mxu0 %v9008_v33  ;;  %8314 = vmatprep.mubr.msk.f32.mxu0 %vm10296_vm11, %v13011_v16  ;;  %v4393_v33 = vld [vmem:[#allocation23 + $0x78] sm:$0xff] }
 0x871   : > { %9025 = vmatprep.subr.bf16.mxu0 %v12978_v3  ;;  %v4458_v21 = vand.u32 4294901760, %v4393_v33 }
 0x873   : > { %v11505_v26 = vsub.f32 %v4393_v33, %v4458_v21  ;;  %v11509_v14 = vpack.c.bf16 %v4458_v21, %v4455_v10 }
 0x875   : > { %v9119_v38 = vpack.c.bf16 %v11505_v26, %v11500_v63 }
 0x877   : > { %8315 = vmatmul.mubr.f32.vlgmr.msra.gmra.mrb[6].mxu0 %v3971_v62  ;;  %v11483_v62 = vsub.f32 %v4389_v13, %v4446_v4  ;;  %v9128_v13 = vpack.c.bf16 %v11538_v23, %v11536_v32  ;;  %v4400_v4 = vld [vmem:[#allocation23 + $0xb0] sm:$0xff] }
 0x878   : > { %9027 = vmatpush1.bf16.msra.mxu0 %v11436_v59  ;;  %v4479_v15 = vand.u32 4294901760, %v4400_v4 }
 0x879   : > { %9028 = vmatprep.subr.bf16.mxu0 %v12978_v3  ;;  %v9113_v19 = vpack.c.bf16 %v11483_v62, %v11478_v18 }
 0x87a   : > { %v4672_v2 = vsub.f32 %v4400_v4, %v4479_v15  ;;  %v4519_v4 = vand.u32 4294901760, %v11430_v49 }
 0x87b   : > { %9114 = vmatpush1.bf16.msra.mxu1 %v9113_v19 }
 0x87c   : > { %9030 = vmatpush1.bf16.msra.mxu0 %v11443_v5  ;;  %9115 = vmatprep.subr.bf16.mxu1 %v12978_v3  ;;  %v9131_v10 = vpack.c.bf16 %v4679_v48, %v4672_v2  ;;  %v4673_v39 = vand.u32 4294901760, %v4672_v2 }
 0x87d   : > { %9031 = vmatprep.subr.bf16.mxu0 %v12978_v3 }
 0x87e   : > { %v4674_v51 = vsub.f32 %v4672_v2, %v4673_v39  ;;  %v4527_v2 = vsub.f32 %v11432_v58, %v4526_v27  ;;  %v13012_v58 = vand.u32 4294901760, %v11459_v31 }
 0x87f   : > { %9117 = vmatpush1.bf16.msra.mxu1 %v9116_v55  ;;  %v11553_v55 = vpack.c.bf16 %v4482_v46, %v4479_v15 }
 0x880   : > { %9033 = vmatpush1.bf16.msra.mxu0 %v11454_v8  ;;  %9118 = vmatprep.subr.bf16.mxu1 %v12978_v3 }
 0x881   : > { %9034 = vmatprep.subr.bf16.mxu0 %v12978_v3 }
 0x883   : > { %9120 = vmatpush1.bf16.msra.mxu1 %v9119_v38 }
 0x884   : > { %9036 = vmatpush1.bf16.msra.mxu0 %v11465_v1  ;;  %9121 = vmatprep.subr.bf16.mxu1 %v12978_v3 }
 0x885   : > { %9037 = vmatprep.subr.bf16.mxu0 %v12978_v3 }
 0x887   : > { %9123 = vmatpush1.bf16.msra.mxu1 %v9122_v50  ;;  %v4680_v50 = vand.u32 4294901760, %v4679_v48 }
 0x888   : > { %9039 = vmatpush1.bf16.msra.mxu0 %v11476_v17  ;;  %9124 = vmatprep.subr.bf16.mxu1 %v12978_v3 }
 0x889   : > { %9040 = vmatprep.subr.bf16.mxu0 %v12978_v3  ;;  %v4681_v29 = vsub.f32 %v4679_v48, %v4680_v50  ;;  %v11564_v47 = vpack.c.bf16 %v4680_v50, %v4673_v39 }
 0x88b   : > { %9126 = vmatpush1.bf16.msra.mxu1 %v9125_v9  ;;  %v4675_v9 = vand.u32 4294901760, %v4674_v51  ;;  %v12883_v51 = vand.u32 4294901760, %v11459_v31 }
 0x88c   : > { %9042 = vmatpush1.bf16.msra.mxu0 %v11487_v41  ;;  %9127 = vmatprep.subr.bf16.mxu1 %v12978_v3 }
 0x88d   : > { %9043 = vmatprep.subr.bf16.mxu0 %v12978_v3 }
 0x88f   : > { %9129 = vmatpush1.bf16.msra.mxu1 %v9128_v13  ;;  %v4682_v13 = vand.u32 4294901760, %v4681_v29  ;;  %v12874_v29 = vand.u32 4294901760, %v11461_v7 }
 0x890   : > { %9045 = vmatpush1.bf16.msra.mxu0 %v11498_v56  ;;  %9130 = vmatprep.subr.bf16.mxu1 %v12978_v3 }
 0x891   : > { %9046 = vmatprep.subr.bf16.mxu0 %v12978_v3  ;;  %v11562_v52 = vpack.c.bf16 %v4682_v13, %v4675_v9 }
 0x893   : > { %9132 = vmatpush1.bf16.msra.mxu1 %v9131_v10  ;;  %v4540_v10 = vand.u32 4294901760, %v11438_v60 }
 0x894   : > { %9048 = vmatpush1.bf16.msra.mxu0 %v11509_v14  ;;  %9133 = vmatprep.subr.bf16.mxu1 %v12978_v3 }
 0x895   : > { %9049 = vmatprep.subr.bf16.mxu0 %v12978_v3 }
 0x898   : > { %9051 = vmatpush1.bf16.msra.mxu0 %v11520_v61 }
 0x899   : > { %9052 = vmatprep.subr.bf16.mxu0 %v12978_v3 }
 0x89c   : > { %9054 = vmatpush1.bf16.msra.mxu0 %v11531_v57 }
 0x89d   : > { %9055 = vmatprep.subr.bf16.mxu0 %v12978_v3 }
 0x8a0   : > { %9057 = vmatpush1.bf16.msra.mxu0 %v11547_v24 }
 0x8a1   : > { %9058 = vmatprep.subr.bf16.mxu0 %v12978_v3 }
 0x8a4   : > { %9060 = vmatpush1.bf16.msra.mxu0 %v11553_v55 }
 0x8a5   : > { %9061 = vmatprep.subr.bf16.mxu0 %v12978_v3 }
 0x94a   : > { %v4359_v33 = vpop.f32.mrb[6].mxu0 }
 0x94b   : > { %v9661_v19 = vadd.f32 %v9660_v0, %v4359_v33  ;;  %v8316_v21 = vpop.f32.mrb[7].mxu0  ;;  %v4520_v0 = vsub.f32 %v11430_v49, %v4519_v4  ;;  %v4533_v33 = vand.u32 4294901760, %v11434_v28 }
 0x94d   : > { %v4364_v54 = vmax.f32 %v9661_v19, 0.0 }
 0x94f   : > { %4367 = vst.msk [vmem:[#allocation8 + $0x1] sm:$0xff] %vm3089_vm13, %v4364_v54  ;;  %v4521_v54 = vand.u32 4294901760, %v4520_v0  ;;  %v4562_v0 = vsub.f32 %v11459_v31, %v12883_v51  ;;  %v13018_v31 = vand.u32 4294901760, %v11492_v40 }
 0x956   : > { %v4370_v36 = vld [vmem:[#allocation8 + $0x1] ss:$2 sm:$0xf]  ;;  %v4372_v37 = vld [vmem:[#allocation8 + $0x2] ss:$2 sm:$0xf] }
 0x957   : > { %4374 = vrot.lane.b32.xlu1 %v4370_v36, %s10297_s26  ;;  %v4410_v53 = vsel %vm3089_vm13, %v4372_v37, 0  ;;  %v4368_v46 = vld [vmem:[#allocation8] ss:$2 sm:$0xf]  ;;  %v4528_v36 = vand.u32 4294901760, %v4527_v2  ;;  %v4534_v37 = vsub.f32 %v11434_v28, %v4533_v33  ;;  %v4569_v2 = vsub.f32 %v11461_v7, %v12874_v29  ;;  %s777_s26 = sand.u32 1, %s10267_s25  }
 0x958   : > { %v11559_v12 = vand.u32 4294901760, %v4410_v53  ;;  %v13013_v28 = vand.u32 4294901760, %v11461_v7  ;;  %v13019_v7 = vand.u32 4294901760, %v11494_v25  ;;  %s7489_s27 = sshll.u32 %s777_s26, 2  ;;  %s7295_s6 = scalar_lea.sflag [#allocation11], %s777_s26 }
 0x959   : > { %v9062_v50 = vpack.c.bf16 %v4528_v36, %v4521_v54  ;;  %v4535_v9 = vand.u32 4294901760, %v4534_v37  ;;  %v12875_v54 = vand.u32 4294901760, %v11472_v42  ;;  %s779_s4 = scalar_lea.vmem [#allocation26], %s7489_s27 }
 0x95a   : > { %v4501_v34 = vsub.f32 %v4410_v53, %v11559_v12  ;;  %v4541_v53 = vsub.f32 %v11438_v60, %v4540_v10  ;;  %v9179_v60 = vpack.c.bf16 %v13013_v28, %v13012_v58  ;;  %v5184_v58 = vld [vmem:[%s12818_s17 + $0x38] sm:$0xff]  ;;  %s7308_s21 = sshll.u32 %s779_s4, 4  ;;  %s12761_s21 = int_to_ptr.vmem [resolvable:$true] %s7308_s21 }
 0x95b   : > { %s10189_s10 = scalar_lea.vmem %s12761_s21, 64  ;;  %p10196_p5 = scmp.lt.s32.totalorder %s12761_s21, %s10194_s14 }
 0x95c   : > { %4822 = vmatprep.mubr.f32.mxu1 %v4501_v34  ;;  %v4502_v38 = vand.u32 4294901760, %v4501_v34  ;;  %v4542_v13 = vand.u32 4294901760, %v4541_v53  ;;  %p10190_p13 = scmp.ne.s32.totalorder %s12761_s21, %s10189_s10  ;;  %p10197_p9 = scmp.lt.s32.totalorder %s10195_s20, %s10189_s10 }
 0x95e   : > { %v4503_v44 = vsub.f32 %v4501_v34, %v4502_v38  ;;  %v4547_v34 = vand.u32 4294901760, %v11445_v11  ;;  %v9065_v36 = vpack.c.bf16 %v4542_v13, %v4535_v9  ;;  %v12877_v13 = vand.u32 4294901760, %v11478_v18  ;;  %p10191_p0 = pnand %p10190_p13, %p13062_p1  ;;  %p10198_p12 = por %p10197_p9, %p10196_p5 }
 0x960   : > { %v4504_v22 = vand.u32 4294901760, %v4503_v44  ;;  %v4554_v44 = vand.u32 4294901760, %v11447_v30  ;;  %p10192_p6 = pneg %p10191_p0 }
 0x962   : > { %4505 = vmatprep.mubr.f32.mxu0 %v4504_v22  ;;  %v9176_v49 = vpack.c.bf16 %v4554_v44, %v4547_v34  ;;  %p10199_p10 = pnand %p10198_p12, %p10192_p6 }
 0x9c9   : > { %v4375_v15 = vpop.permute.xlu1 %4374 }
 0x9ca   : > { %v4377_v48 = vsel %vm3089_vm13, %v4368_v46, %v4375_v15  ;;  %v4548_v15 = vsub.f32 %v11445_v11, %v4547_v34  ;;  %v13015_v11 = vand.u32 4294901760, %v11472_v42 }
 0x9cb   : > { %v11577_v19 = vand.u32 4294901760, %v4377_v48 }
 0x9cc   : > { %v4549_v37 = vand.u32 4294901760, %v4548_v15  ;;  %v12876_v15 = vand.u32 4294901760, %v11483_v62 }
 0x9cd   : > { %v11580_v21 = vsub.f32 %v4377_v48, %v11577_v19  ;;  %v12880_v48 = vand.u32 4294901760, %v11470_v35 }
 0x9cf   : > { %v4508_v22 = vand.u32 4294901760, %v11580_v21  ;;  %4825 = vmatmul.mubr.f32.vlgmr.msra.gmra.mrb[4].mxu1 %v11580_v21  ;;  %v4576_v29 = vsub.f32 %v11470_v35, %v12880_v48 }
 0x9d0   : > { %9135 = vmatpush1.bf16.msra.mxu1 %v11436_v59  ;;  %4921 = vmatprep.mubr.f32.mxu1 %v4502_v38  ;;  %v4555_v38 = vsub.f32 %v11447_v30, %v4554_v44  ;;  %v13016_v30 = vand.u32 4294901760, %v11478_v18  ;;  %v5197_v44 = vld [vmem:[%s12818_s17 + $0xa0] sm:$0xff] }
 0x9d1   : > { %v4509_v39 = vsub.f32 %v11580_v21, %v4508_v22  ;;  %9136 = vmatprep.subr.bf16.mxu1 %v12978_v3 }
 0x9d2   : > { %v4556_v53 = vand.u32 4294901760, %v4555_v38 }
 0x9d3   : > { %v4510_v46 = vand.u32 4294901760, %v4509_v39  ;;  %v4563_v39 = vand.u32 4294901760, %v4562_v0  ;;  %v4577_v0 = vand.u32 4294901760, %v4576_v29 }
 0x9d4   : > { %9138 = vmatpush1.bf16.msra.mxu1 %v11443_v5  ;;  %v9068_v9 = vpack.c.bf16 %v4556_v53, %v4549_v37  ;;  %v12879_v37 = vand.u32 4294901760, %v11492_v40  ;;  %v12878_v53 = vand.u32 4294901760, %v11494_v25 }
 0x9d5   : > { %4511 = vmatmul.mubr.f32.vlgmr.msra.gmra.mrb[8].mxu0 %v4510_v46  ;;  %9139 = vmatprep.subr.bf16.mxu1 %v12978_v3  ;;  %v4570_v46 = vand.u32 4294901760, %v4569_v2 }
 0x9d6   : > { %9063 = vmatpush1.bf16.msra.mxu0 %v9062_v50  ;;  %4701 = vmatprep.mubr.f32.mxu0 %v11559_v12  ;;  %v4583_v50 = vsub.f32 %v11472_v42, %v12875_v54  ;;  %v4590_v54 = vsub.f32 %v11478_v18, %v12877_v13  ;;  %v4611_v13 = vsub.f32 %v11494_v25, %v12878_v53  ;;  %v13021_v42 = vand.u32 4294901760, %v11505_v26 }
 0x9d7   : > { %9064 = vmatprep.subr.bf16.mxu0 %v12978_v3  ;;  %v9071_v38 = vpack.c.bf16 %v4570_v46, %v4563_v39  ;;  %v12881_v39 = vand.u32 4294901760, %v11500_v63  ;;  %v12882_v46 = vand.u32 4294901760, %v11505_v26  ;;  %v13022_v18 = vand.u32 4294901760, %v11516_v45 }
 0x9d8   : > { %9141 = vmatpush1.bf16.msra.mxu1 %v11454_v8  ;;  %v4584_v2 = vand.u32 4294901760, %v4583_v50  ;;  %v4591_v50 = vand.u32 4294901760, %v4590_v54  ;;  %v13024_v25 = vand.u32 4294901760, %v11527_v20 }
 0x9d9   : > { %9142 = vmatprep.subr.bf16.mxu1 %v12978_v3  ;;  %v4625_v54 = vsub.f32 %v11505_v26, %v12882_v46  ;;  %v5195_v26 = vld [vmem:[%s12818_s17 + $0x90] sm:$0xff] }
 0x9da   : > { %9066 = vmatpush1.bf16.msra.mxu0 %v9065_v36  ;;  %v4597_v36 = vsub.f32 %v11483_v62, %v12876_v15  ;;  %v9074_v29 = vpack.c.bf16 %v4584_v2, %v4577_v0  ;;  %v4604_v15 = vsub.f32 %v11492_v40, %v12879_v37  ;;  %v4631_v0 = vand.u32 4294901760, %v11514_v43 }
 0x9db   : > { %9067 = vmatprep.subr.bf16.mxu0 %v12978_v3  ;;  %v12886_v2 = vand.u32 4294901760, %v11516_v45  ;;  %v4612_v37 = vand.u32 4294901760, %v4611_v13  ;;  %v12885_v13 = vand.u32 4294901760, %v11522_v6  ;;  %v13023_v40 = vand.u32 4294901760, %v11522_v6 }
 0x9dc   : > { %9144 = vmatpush1.bf16.msra.mxu1 %v11465_v1  ;;  %v4605_v53 = vand.u32 4294901760, %v4604_v15  ;;  %v4632_v46 = vsub.f32 %v11514_v43, %v4631_v0  ;;  %v12884_v15 = vand.u32 4294901760, %v11527_v20 }
 0x9dd   : > { %9145 = vmatprep.subr.bf16.mxu1 %v12978_v3  ;;  %v4639_v51 = vsub.f32 %v11516_v45, %v12886_v2  ;;  %v9197_v34 = vpack.c.bf16 %v13024_v25, %v13023_v40  ;;  %v5287_v45 = vand.u32 4294901760, %v5195_v26 }
 0x9de   : > { %9069 = vmatpush1.bf16.msra.mxu0 %v9068_v9  ;;  %v4598_v9 = vand.u32 4294901760, %v4597_v36 }
 0x9df   : > { %9070 = vmatprep.subr.bf16.mxu0 %v12978_v3 }
 0x9e0   : > { %9147 = vmatpush1.bf16.msra.mxu1 %v11476_v17  ;;  %v9077_v36 = vpack.c.bf16 %v4598_v9, %v4591_v50  ;;  %v4633_v9 = vand.u32 4294901760, %v4632_v46 }
 0x9e1   : > { %9148 = vmatprep.subr.bf16.mxu1 %v12978_v3 }
 0x9e2   : > { %9072 = vmatpush1.bf16.msra.mxu0 %v9071_v38  ;;  %v4618_v38 = vsub.f32 %v11500_v63, %v12881_v39  ;;  %v4626_v39 = vand.u32 4294901760, %v4625_v54  ;;  %v4646_v54 = vsub.f32 %v11522_v6, %v12885_v13  ;;  %v5179_v6 = vld [vmem:[%s12818_s17 + $0x10] sm:$0xff] }
 0x9e3   : > { %9073 = vmatprep.subr.bf16.mxu0 %v12978_v3 }
 0x9e4   : > { %9150 = vmatpush1.bf16.msra.mxu1 %v11487_v41  ;;  %v4619_v48 = vand.u32 4294901760, %v4618_v38  ;;  %v4640_v38 = vand.u32 4294901760, %v4639_v51 }
 0x9e5   : > { %9151 = vmatprep.subr.bf16.mxu1 %v12978_v3 }
 0x9e6   : > { %9075 = vmatpush1.bf16.msra.mxu0 %v9074_v29  ;;  %v9080_v29 = vpack.c.bf16 %v4612_v37, %v4605_v53  ;;  %v9083_v50 = vpack.c.bf16 %v4626_v39, %v4619_v48  ;;  %v4653_v37 = vsub.f32 %v11527_v20, %v12884_v15  ;;  %v4659_v53 = vand.u32 4294901760, %v11536_v32  ;;  %v5180_v20 = vld [vmem:[%s12818_s17 + $0x18] sm:$0xff] }
 0x9e7   : > { %9076 = vmatprep.subr.bf16.mxu0 %v12978_v3  ;;  %v9086_v51 = vpack.c.bf16 %v4640_v38, %v4633_v9  ;;  %v4647_v48 = vand.u32 4294901760, %v4646_v54  ;;  %v5182_v9 = vld [vmem:[%s12818_s17 + $0x28] sm:$0xff] }
 0x9e8   : > { %9153 = vmatpush1.bf16.msra.mxu1 %v11498_v56  ;;  %v4654_v39 = vand.u32 4294901760, %v4653_v37  ;;  %v4660_v46 = vsub.f32 %v11536_v32, %v4659_v53 }
 0x9e9   : > { %9154 = vmatprep.subr.bf16.mxu1 %v12978_v3 }
 0x9ea   : > { %9078 = vmatpush1.bf16.msra.mxu0 %v9077_v36  ;;  %v4666_v36 = vand.u32 4294901760, %v11538_v23  ;;  %v9089_v15 = vpack.c.bf16 %v4654_v39, %v4647_v48  ;;  %v4661_v13 = vand.u32 4294901760, %v4660_v46  ;;  %v5293_v46 = vand.u32 4294901760, %v5197_v44 }
 0x9eb   : > { %9079 = vmatprep.subr.bf16.mxu0 %v12978_v3 }
 0x9ec   : > { %9156 = vmatpush1.bf16.msra.mxu1 %v11509_v14 }
 0x9ed   : > { %9157 = vmatprep.subr.bf16.mxu1 %v12978_v3 }
 0x9ee   : > { %9081 = vmatpush1.bf16.msra.mxu0 %v9080_v29  ;;  %v4667_v29 = vsub.f32 %v11538_v23, %v4666_v36  ;;  %v9170_v23 = vpack.c.bf16 %v4526_v27, %v4519_v4  ;;  %v13017_v27 = vand.u32 4294901760, %v11483_v62  ;;  %v9194_v62 = vpack.c.bf16 %v13022_v18, %v4631_v0 }
 0x9ef   : > { %9082 = vmatprep.subr.bf16.mxu0 %v12978_v3  ;;  %v11815_v0 = vsub.f32 %v5195_v26, %v5287_v45 }
 0x9f0   : > { %9159 = vmatpush1.bf16.msra.mxu1 %v11520_v61  ;;  %v4668_v2 = vand.u32 4294901760, %v4667_v29  ;;  %v11851_v29 = vld [vmem:[%s12818_s17 + $0xb8] sm:$0xff] }
 0x9f1   : > { %9160 = vmatprep.subr.bf16.mxu1 %v12978_v3 }
 0x9f2   : > { %9084 = vmatpush1.bf16.msra.mxu0 %v9083_v50  ;;  %v9092_v32 = vpack.c.bf16 %v4668_v2, %v4661_v13  ;;  %v9173_v2 = vpack.c.bf16 %v4540_v10, %v4533_v33  ;;  %v9185_v33 = vpack.c.bf16 %v13017_v27, %v13016_v30  ;;  %v9188_v10 = vpack.c.bf16 %v13019_v7, %v13018_v31  ;;  %v5181_v50 = vld [vmem:[%s12818_s17 + $0x20] sm:$0xff] }
 0x9f3   : > { %9085 = vmatprep.subr.bf16.mxu0 %v12978_v3 }
 0x9f4   : > { %9162 = vmatpush1.bf16.msra.mxu1 %v11531_v57 }
 0x9f5   : > { %9163 = vmatprep.subr.bf16.mxu1 %v12978_v3 }
 0x9f6   : > { %9087 = vmatpush1.bf16.msra.mxu0 %v9086_v51 }
 0x9f7   : > { %9088 = vmatprep.subr.bf16.mxu0 %v12978_v3 }
 0x9f8   : > { %9165 = vmatpush1.bf16.msra.mxu1 %v11547_v24 }
 0x9f9   : > { %9166 = vmatprep.subr.bf16.mxu1 %v12978_v3 }
 0x9fa   : > { %9090 = vmatpush1.bf16.msra.mxu0 %v9089_v15  ;;  %v5242_v15 = vand.u32 4294901760, %v5180_v20 }
 0x9fb   : > { %9091 = vmatprep.subr.bf16.mxu0 %v12978_v3 }
 0x9fc   : > { %9168 = vmatpush1.bf16.msra.mxu1 %v11553_v55  ;;  %v11846_v39 = vsub.f32 %v5180_v20, %v5242_v15  ;;  %v5204_v20 = vld [vmem:[%s12818_s17 + $0xd8] sm:$0xff] }
 0x9fd   : > { %9169 = vmatprep.subr.bf16.mxu1 %v12978_v3 }
 0x9fe   : > { %9093 = vmatpush1.bf16.msra.mxu0 %v9092_v32 }
 0x9ff   : > { %4925 = vmatmul.mubr.f32.vlgmr.msra.gmra.mrb[4].mxu1 %v4508_v22  ;;  %9094 = vmatprep.subr.bf16.mxu0 %v12978_v3 }
 0xa00   : > { %9171 = vmatpush1.bf16.msra.mxu1 %v9170_v23  ;;  %5067 = vmatprep.mubr.f32.mxu1 %v11559_v12  ;;  %v5245_v23 = vand.u32 4294901760, %v5181_v50 }
 0xa01   : > { %9172 = vmatprep.subr.bf16.mxu1 %v12978_v3 }
 0xa02   : > { %9096 = vmatpush1.bf16.msra.mxu0 %v11562_v52  ;;  %v13014_v52 = vand.u32 4294901760, %v11470_v35  ;;  %v13020_v35 = vand.u32 4294901760, %v11500_v63  ;;  %v9200_v63 = vpack.c.bf16 %v4666_v36, %v4659_v53  ;;  %v11839_v36 = vld [vmem:[%s12818_s17 + $0xb0] sm:$0xff]  ;;  %v11872_v30 = vsub.f32 %v5181_v50, %v5245_v23  ;;  %v5188_v50 = vld [vmem:[%s12818_s17 + $0x58] sm:$0xff] }
 0xa04   : > { %9174 = vmatpush1.bf16.msra.mxu1 %v9173_v2  ;;  %v9182_v4 = vpack.c.bf16 %v13015_v11, %v13014_v52  ;;  %v9191_v21 = vpack.c.bf16 %v13021_v42, %v13020_v35  ;;  %v5299_v11 = vand.u32 4294901760, %v11839_v36 }
 0xa05   : > { %4703 = vmatmul.mubr.f32.vlgmr.msra.gmra.mrb[8].mxu0 %v11577_v19  ;;  %9175 = vmatprep.subr.bf16.mxu1 %v12978_v3 }
 0xa06   : > { %v11879_v31 = vsub.f32 %v11839_v36, %v5299_v11  ;;  %v5266_v36 = vand.u32 4294901760, %v5188_v50 }
 0xa08   : > { %9177 = vmatpush1.bf16.msra.mxu1 %v9176_v49  ;;  %v5183_v49 = vld [vmem:[%s12818_s17 + $0x30] sm:$0xff] }
 0xa09   : > { %9178 = vmatprep.subr.bf16.mxu1 %v12978_v3  ;;  %v5251_v7 = vand.u32 4294901760, %v5183_v49 }
 0xa0c   : > { %9180 = vmatpush1.bf16.msra.mxu1 %v9179_v60  ;;  %v11865_v60 = vsub.f32 %v5197_v44, %v5293_v46 }
 0xa0d   : > { %9181 = vmatprep.subr.bf16.mxu1 %v12978_v3 }
 0xa10   : > { %9183 = vmatpush1.bf16.msra.mxu1 %v9182_v4 }
 0xa11   : > { %9184 = vmatprep.subr.bf16.mxu1 %v12978_v3 }
 0xa14   : > { %9186 = vmatpush1.bf16.msra.mxu1 %v9185_v33  ;;  %v5302_v33 = vand.u32 4294901760, %v11851_v29 }
 0xa15   : > { %9187 = vmatprep.subr.bf16.mxu1 %v12978_v3 }
 0xa18   : > { %9189 = vmatpush1.bf16.msra.mxu1 %v9188_v10  ;;  %v5254_v10 = vand.u32 4294901760, %v5184_v58 }
 0xa19   : > { %9190 = vmatprep.subr.bf16.mxu1 %v12978_v3 }
 0xa1a   : > { %v11893_v40 = vsub.f32 %v5184_v58, %v5254_v10 }
 0xa1c   : > { %9192 = vmatpush1.bf16.msra.mxu1 %v9191_v21  ;;  %v11886_v21 = vsub.f32 %v11851_v29, %v5302_v33  ;;  %v11945_v29 = vpack.c.bf16 %v5254_v10, %v5251_v7 }
 0xa1d   : > { %9193 = vmatprep.subr.bf16.mxu1 %v12978_v3 }
 0xa1e   : > { %v9317_v25 = vpack.c.bf16 %v11886_v21, %v11879_v31  ;;  %13026 = vst [vmem:[#allocation42_spill] sm:$0xff] %v11945_v29 }
 0xa20   : > { %9195 = vmatpush1.bf16.msra.mxu1 %v9194_v62  ;;  %v11891_v62 = vsub.f32 %v5183_v49, %v5251_v7  ;;  %v5206_v49 = vld [vmem:[%s12818_s17 + $0xe8] sm:$0xff] }
 0xa21   : > { %9196 = vmatprep.subr.bf16.mxu1 %v12978_v3  ;;  %v5190_v7 = vld [vmem:[%s12818_s17 + $0x68] sm:$0xff] }
 0xa24   : > { %9198 = vmatpush1.bf16.msra.mxu1 %v9197_v34  ;;  %v9319_v34 = vpack.c.bf16 %v11893_v40, %v11891_v62 }
 0xa25   : > { %9199 = vmatprep.subr.bf16.mxu1 %v12978_v3 }
 0xa28   : > { %9201 = vmatpush1.bf16.msra.mxu1 %v9200_v63  ;;  %v5201_v63 = vld [vmem:[%s12818_s17 + $0xc0] sm:$0xff] }
 0xa29   : > { %9202 = vmatprep.subr.bf16.mxu1 %v12978_v3 }
 0xa2c   : > { %9204 = vmatpush1.bf16.msra.mxu1 %v11564_v47  ;;  %v5239_v47 = vand.u32 4294901760, %v5179_v6 }
 0xa2d   : > { %9205 = vmatprep.subr.bf16.mxu1 %v12978_v3 }
 0xa2e   : > { %v11830_v54 = vsub.f32 %v5179_v6, %v5239_v47  ;;  %v11867_v52 = vpack.c.bf16 %v5242_v15, %v5239_v47  ;;  %v5203_v6 = vld [vmem:[%s12818_s17 + $0xd0] sm:$0xff]  ;;  %v5314_v15 = vand.u32 4294901760, %v5204_v20 }
 0xa2f   : > { %5069 = vmatmul.mubr.f32.vlgmr.msra.gmra.mrb[4].mxu1 %v11577_v19  ;;  %v5311_v44 = vand.u32 4294901760, %v5203_v6 }
 0xa30   : > { %9207 = vmatpush1.bf16.msra.mxu1 %v11436_v59  ;;  %5163 = vmatprep.mubr.f32.mxu1 %v11559_v12  ;;  %v5193_v59 = vld [vmem:[%s12818_s17 + $0x80] sm:$0xff]  ;;  %v9311_v28 = vpack.c.bf16 %v11846_v39, %v11830_v54 }
 0xa31   : > { %9208 = vmatprep.subr.bf16.mxu1 %v12978_v3 }
 0xa34   : > { %9210 = vmatpush1.bf16.msra.mxu1 %v11443_v5  ;;  %v5194_v5 = vld [vmem:[%s12818_s17 + $0x88] sm:$0xff] }
 0xa35   : > { %9211 = vmatprep.subr.bf16.mxu1 %v12978_v3 }
 0xa38   : > { %9213 = vmatpush1.bf16.msra.mxu1 %v11454_v8  ;;  %v5177_v8 = vld [vmem:[%s12818_s17] sm:$0xff] }
 0xa39   : > { %9214 = vmatprep.subr.bf16.mxu1 %v12978_v3 }
 0xa3c   : > { %9216 = vmatpush1.bf16.msra.mxu1 %v11465_v1  ;;  %v5281_v1 = vand.u32 4294901760, %v5193_v59 }
 0xa3d   : > { %9217 = vmatprep.subr.bf16.mxu1 %v12978_v3 }
 0xa40   : > { %9219 = vmatpush1.bf16.msra.mxu1 %v11476_v17  ;;  %v5284_v17 = vand.u32 4294901760, %v5194_v5 }
 0xa41   : > { %9220 = vmatprep.subr.bf16.mxu1 %v12978_v3 }
 0xa42   : > { %v11832_v37 = vpack.c.bf16 %v5284_v17, %v5281_v1 }
 0xa44   : > { %9222 = vmatpush1.bf16.msra.mxu1 %v11487_v41  ;;  %v5178_v41 = vld [vmem:[%s12818_s17 + $0x8] sm:$0xff]  ;;  %9242 = vmatprep.subr.bf16.mxu0 %v11832_v37 }
 0xa45   : > { %9223 = vmatprep.subr.bf16.mxu1 %v12978_v3  ;;  %v5236_v43 = vand.u32 4294901760, %v5178_v41 }
 0xa47   : > { %v11813_v22 = vsub.f32 %v5178_v41, %v5236_v43 }
 0xa48   : > { %9225 = vmatpush1.bf16.msra.mxu1 %v11498_v56  ;;  %v5233_v56 = vand.u32 4294901760, %v5177_v8 }
 0xa49   : > { %9226 = vmatprep.subr.bf16.mxu1 %v12978_v3 }
 0xa4a   : > { %v11808_v12 = vsub.f32 %v5177_v8, %v5233_v56  ;;  %v11834_v53 = vpack.c.bf16 %v5236_v43, %v5233_v56 }
 0xa4c   : > { %9228 = vmatpush1.bf16.msra.mxu1 %v11509_v14  ;;  %v5196_v14 = vld [vmem:[%s12818_s17 + $0x98] sm:$0xff]  ;;  %v9307_v51 = vpack.c.bf16 %v11813_v22, %v11808_v12  ;;  %9244 = vmatpush3.bf16.msra.mxu0 %v11834_v53 }
 0xa4d   : > { %9229 = vmatprep.subr.bf16.mxu1 %v12978_v3 }
 0xa50   : > { %9231 = vmatpush1.bf16.msra.mxu1 %v11520_v61  ;;  %v5290_v61 = vand.u32 4294901760, %v5196_v14 }
 0xa51   : > { %9232 = vmatprep.subr.bf16.mxu1 %v12978_v3 }
 0xa52   : > { %v11817_v13 = vsub.f32 %v5196_v14, %v5290_v61  ;;  %v11854_v2 = vpack.c.bf16 %v5290_v61, %v5287_v45 }
 0xa54   : > { %9234 = vmatpush1.bf16.msra.mxu1 %v11531_v57  ;;  %v11804_v57 = vsub.f32 %v5193_v59, %v5281_v1  ;;  %v9309_v48 = vpack.c.bf16 %v11817_v13, %v11815_v0  ;;  %9246 = vmatprep.subr.bf16.mxu0 %v11854_v2  ;;  %v5202_v59 = vld [vmem:[%s12818_s17 + $0xc8] sm:$0xff]  ;;  %v5185_v1 = vld [vmem:[%s12818_s17 + $0x40] sm:$0xff] }
 0xa55   : > { %9235 = vmatprep.subr.bf16.mxu1 %v12978_v3  ;;  %9248 = vmatpush3.bf16.msra.mxu0 %v11867_v52  ;;  %v5308_v8 = vand.u32 4294901760, %v5202_v59  ;;  %v5257_v41 = vand.u32 4294901760, %v5185_v1 }
 0xa57   : > { %v11914_v14 = vsub.f32 %v5202_v59, %v5308_v8  ;;  %v11918_v45 = vsub.f32 %v5185_v1, %v5257_v41  ;;  %v5207_v1 = vld [vmem:[%s12818_s17 + $0xf0] sm:$0xff] }
 0xa58   : > { %9237 = vmatpush1.bf16.msra.mxu1 %v11547_v24  ;;  %v11806_v24 = vsub.f32 %v5194_v5, %v5284_v17  ;;  %v5305_v5 = vand.u32 4294901760, %v5201_v63  ;;  %v5186_v17 = vld [vmem:[%s12818_s17 + $0x48] sm:$0xff] }
 0xa59   : > { %9238 = vmatprep.subr.bf16.mxu1 %v12978_v3  ;;  %v5260_v56 = vand.u32 4294901760, %v5186_v17 }
 0xa5a   : > { %v9305_v38 = vpack.c.bf16 %v11806_v24, %v11804_v57  ;;  %v11912_v26 = vsub.f32 %v5201_v63, %v5305_v5 }
 0xa5b   : > { %v11920_v61 = vsub.f32 %v5186_v17, %v5260_v56  ;;  %v5208_v17 = vld [vmem:[%s12818_s17 + $0xf8] sm:$0xff] }
 0xa5c   : > { %9240 = vmatpush1.bf16.msra.mxu1 %v11553_v55  ;;  %v5198_v55 = vld [vmem:[%s12818_s17 + $0xa8] sm:$0xff]  ;;  %v9321_v47 = vpack.c.bf16 %v11914_v14, %v11912_v26 }
 0xa5d   : > { %9306 = vmatprep.subr.bf16.mxu1 %v9305_v38  ;;  %v5296_v32 = vand.u32 4294901760, %v5198_v55 }
 0xa5f   : > { %5165 = vmatmul.mubr.f32.vlgmr.msra.gmra.mrb[4].mxu1 %v11577_v19  ;;  %v5248_v19 = vand.u32 4294901760, %v5182_v9  ;;  %v11870_v4 = vsub.f32 %v5198_v55, %v5296_v32  ;;  %v11881_v35 = vpack.c.bf16 %v5296_v32, %v5293_v46  ;;  %v5187_v55 = vld [vmem:[%s12818_s17 + $0x50] sm:$0xff]  ;;  %v11943_v46 = vsub.f32 %v5204_v20, %v5314_v15 }
 0xa60   : > { %9308 = vmatpush3.bf16.msra.mxu1 %v9307_v51  ;;  %v5263_v38 = vand.u32 4294901760, %v5187_v55  ;;  %v11939_v51 = vpack.c.bf16 %v5302_v33, %v5299_v11  ;;  %v5320_v11 = vand.u32 4294901760, %v5206_v49  ;;  %v5189_v33 = vld [vmem:[%s12818_s17 + $0x60] sm:$0xff] }
 0xa61   : > { %9310 = vmatprep.subr.bf16.mxu1 %v9309_v48  ;;  %v11874_v27 = vsub.f32 %v5182_v9, %v5248_v19  ;;  %v9313_v42 = vpack.c.bf16 %v11870_v4, %v11865_v60  ;;  %9250 = vmatprep.subr.bf16.mxu0 %v11881_v35  ;;  %v11916_v43 = vpack.c.bf16 %v5248_v19, %v5245_v23  ;;  %v5205_v19 = vld [vmem:[%s12818_s17 + $0xe0] sm:$0xff] }
 0xa62   : > { %v9323_v9 = vpack.c.bf16 %v11920_v61, %v11918_v45  ;;  %13025 = vst [vmem:[#allocation41_spill] sm:$0xff] %v11939_v51  ;;  %v11941_v48 = vsub.f32 %v5203_v6, %v5311_v44  ;;  %v11947_v32 = vsub.f32 %v5187_v55, %v5263_v38  ;;  %v11949_v23 = vsub.f32 %v5188_v50, %v5266_v36  ;;  %v5191_v6 = vld [vmem:[%s12818_s17 + $0x70] sm:$0xff] }
 0xa63   : > { %v9315_v18 = vpack.c.bf16 %v11874_v27, %v11872_v30  ;;  %9252 = vmatpush3.bf16.msra.mxu0 %v11916_v43  ;;  %v11975_v59 = vsub.f32 %v5206_v49, %v5320_v11  ;;  %v5326_v55 = vand.u32 4294901760, %v5208_v17  ;;  %v5275_v50 = vand.u32 4294901760, %v5191_v6 }
 0xa64   : > { %9312 = vmatpush3.bf16.msra.mxu1 %v9311_v28  ;;  %9254 = vmatprep.subr.bf16.mxu0 %v11939_v51  ;;  %v9325_v58 = vpack.c.bf16 %v11943_v46, %v11941_v48  ;;  %v5317_v28 = vand.u32 4294901760, %v5205_v19  ;;  %v9327_v10 = vpack.c.bf16 %v11949_v23, %v11947_v32 }
 0xa65   : > { %9314 = vmatprep.subr.bf16.mxu1 %v9313_v42  ;;  %v5269_v42 = vand.u32 4294901760, %v5189_v33 }
 0xa66   : > { %v11973_v63 = vsub.f32 %v5205_v19, %v5317_v28  ;;  %v12001_v19 = vpack.c.bf16 %v5266_v36, %v5263_v38 }
 0xa67   : > { %9256 = vmatpush3.bf16.msra.mxu0 %v11945_v29 }
 0xa68   : > { %9316 = vmatpush3.bf16.msra.mxu1 %v9315_v18  ;;  %v5272_v18 = vand.u32 4294901760, %v5190_v7  ;;  %v9329_v20 = vpack.c.bf16 %v11975_v59, %v11973_v63  ;;  %13030 = vst [vmem:[#allocation46_spill] sm:$0xff] %v12001_v19 }
 0xa69   : > { %9318 = vmatprep.subr.bf16.mxu1 %v9317_v25  ;;  %v11969_v25 = vpack.c.bf16 %v5308_v8, %v5305_v5  ;;  %v11986_v5 = vsub.f32 %v5189_v33, %v5269_v42  ;;  %v12010_v33 = vsub.f32 %v5191_v6, %v5275_v50 }
 0xa6a   : > { %v11988_v8 = vsub.f32 %v5190_v7, %v5272_v18  ;;  %v12019_v36 = vpack.c.bf16 %v5272_v18, %v5269_v42 }
 0xa6b   : > { %13027 = vst [vmem:[#allocation43_spill] sm:$0xff] %v11969_v25  ;;  %9258 = vmatprep.subr.bf16.mxu0 %v11969_v25 }
 0xa6c   : > { %9320 = vmatpush3.bf16.msra.mxu1 %v9319_v34  ;;  %v11971_v34 = vpack.c.bf16 %v5260_v56, %v5257_v41  ;;  %v11990_v41 = vpack.c.bf16 %v5314_v15, %v5311_v44  ;;  %v5192_v56 = vld [vmem:[%s12818_s17 + $0x78] sm:$0xff]  ;;  %v12003_v15 = vpack.c.bf16 %v5320_v11, %v5317_v28  ;;  %13032 = vst [vmem:[#allocation48_spill] sm:$0xff] %v12019_v36  ;;  %v5459_v28 = vand.u32 4294901760, %v11804_v57 }
 0xa6d   : > { %9322 = vmatprep.subr.bf16.mxu1 %v9321_v47  ;;  %v5323_v47 = vand.u32 4294901760, %v5207_v1  ;;  %v5278_v44 = vand.u32 4294901760, %v5192_v56  ;;  %v5466_v11 = vand.u32 4294901760, %v11806_v24 }
 0xa6e   : > { %13028 = vst [vmem:[#allocation44_spill] sm:$0xff] %v11971_v34  ;;  %13029 = vst [vmem:[#allocation45_spill] sm:$0xff] %v11990_v41  ;;  %9260 = vmatpush3.bf16.msra.mxu0 %v11971_v34  ;;  %v5460_v6 = vsub.f32 %v11804_v57, %v5459_v28  ;;  %v5410_v57 = vand.u32 4294901760, %v11920_v61 }
 0xa6f   : > { %13031 = vst [vmem:[#allocation47_spill] sm:$0xff] %v12003_v15  ;;  %9262 = vmatprep.subr.bf16.mxu0 %v11990_v41  ;;  %v12006_v49 = vsub.f32 %v5207_v1, %v5323_v47  ;;  %v12012_v7 = vsub.f32 %v5192_v56, %v5278_v44  ;;  %v9369_v1 = vpack.c.bf16 %v5466_v11, %v5459_v28  ;;  %v5417_v28 = vand.u32 4294901760, %v11947_v32 }
 0xa70   : > { %9324 = vmatpush3.bf16.msra.mxu1 %v9323_v9  ;;  %v9331_v9 = vpack.c.bf16 %v11988_v8, %v11986_v5  ;;  %v12028_v56 = vpack.c.bf16 %v5278_v44, %v5275_v50  ;;  %v5467_v42 = vsub.f32 %v11806_v24, %v5466_v11  ;;  %v5461_v18 = vand.u32 4294901760, %v5460_v6 }
 0xa71   : > { %9326 = vmatprep.subr.bf16.mxu1 %v9325_v58  ;;  %v12008_v58 = vsub.f32 %v5208_v17, %v5326_v55  ;;  %v9335_v38 = vpack.c.bf16 %v12012_v7, %v12010_v33  ;;  %v12025_v17 = vpack.c.bf16 %v5326_v55, %v5323_v47  ;;  %v5403_v47 = vand.u32 4294901760, %v11918_v45 }
 0xa72   : > { %9264 = vmatpush3.bf16.msra.mxu0 %v12001_v19  ;;  %13034 = vst [vmem:[#allocation50_spill] sm:$0xff] %v12028_v56  ;;  %v5529_v24 = vand.u32 4294901760, %v11941_v48  ;;  %v5536_v44 = vand.u32 4294901760, %v11943_v46  ;;  %v5424_v11 = vand.u32 4294901760, %v11949_v23  ;;  %v5543_v19 = vand.u32 4294901760, %v11973_v63 }
 0xa73   : > { %9266 = vmatprep.subr.bf16.mxu0 %v12003_v15  ;;  %13033 = vst [vmem:[#allocation49_spill] sm:$0xff] %v12025_v17  ;;  %v12039_v50 = vpack.c.bf16 %v5410_v57, %v5403_v47  ;;  %v5550_v41 = vand.u32 4294901760, %v11975_v59  ;;  %v5557_v25 = vand.u32 4294901760, %v12006_v49 }
 0xa74   : > { %9328 = vmatpush3.bf16.msra.mxu1 %v9327_v10  ;;  %v9333_v10 = vpack.c.bf16 %v12008_v58, %v12006_v49  ;;  %v12046_v6 = vpack.c.bf16 %v5536_v44, %v5529_v24 }
 0xa75   : > { %9330 = vmatprep.subr.bf16.mxu1 %v9329_v20  ;;  %v5468_v20 = vand.u32 4294901760, %v5467_v42 }
 0xa76   : > { %9268 = vmatpush3.bf16.msra.mxu0 %v12019_v36 }
 0xa77   : > { %9270 = vmatprep.subr.bf16.mxu0 %v12025_v17 }
 0xa78   : > { %9332 = vmatpush3.bf16.msra.mxu1 %v9331_v9  ;;  %v9273_v9 = vpack.c.bf16 %v5468_v20, %v5461_v18  ;;  %v5404_v18 = vsub.f32 %v11918_v45, %v5403_v47  ;;  %v12050_v20 = vpack.c.bf16 %v5424_v11, %v5417_v28  ;;  %v12059_v45 = vpack.c.bf16 %v5550_v41, %v5543_v19 }
 0xa79   : > { %9334 = vmatprep.subr.bf16.mxu1 %v9333_v10  ;;  %v5515_v10 = vand.u32 4294901760, %v11912_v26  ;;  %v5530_v47 = vsub.f32 %v11941_v48, %v5529_v24  ;;  %v5445_v48 = vand.u32 4294901760, %v12010_v33 }
 0xa7a   : > { %9272 = vmatpush3.bf16.msra.mxu0 %v12028_v56  ;;  %v5411_v56 = vsub.f32 %v11920_v61, %v5410_v57  ;;  %v5405_v15 = vand.u32 4294901760, %v5404_v18  ;;  %v5537_v61 = vsub.f32 %v11943_v46, %v5536_v44  ;;  %v5452_v46 = vand.u32 4294901760, %v12012_v7 }
 0xa7b   : > { %9274 = vmatprep.subr.bf16.mxu0 %v9273_v9 }
 0xa7c   : > { %9336 = vmatpush3.bf16.msra.mxu1 %v9335_v38  ;;  %v5522_v38 = vand.u32 4294901760, %v11914_v14  ;;  %v5538_v18 = vand.u32 4294901760, %v5537_v61 }
 0xa7d   : > { %9370 = vmatprep.subr.bf16.mxu1 %v9369_v1  ;;  %v5516_v1 = vsub.f32 %v11912_v26, %v5515_v10  ;;  %v5412_v26 = vand.u32 4294901760, %v5411_v56  ;;  %v5531_v56 = vand.u32 4294901760, %v5530_v47 }
 0xa7e   : > { %v12037_v55 = vpack.c.bf16 %v5522_v38, %v5515_v10  ;;  %v5523_v42 = vsub.f32 %v11914_v14, %v5522_v38  ;;  %v5431_v10 = vand.u32 4294901760, %v11986_v5  ;;  %v5438_v14 = vand.u32 4294901760, %v11988_v8 }
 0xa7f   : > { %v5517_v9 = vand.u32 4294901760, %v5516_v1  ;;  %v12063_v57 = vpack.c.bf16 %v5412_v26, %v5405_v15  ;;  %v12073_v15 = vpack.c.bf16 %v5538_v18, %v5531_v56 }
 0xa80   : > { %v5524_v36 = vand.u32 4294901760, %v5523_v42  ;;  %v12065_v1 = vpack.c.bf16 %v5438_v14, %v5431_v10  ;;  %v5418_v42 = vsub.f32 %v11947_v32, %v5417_v28  ;;  %v5544_v32 = vsub.f32 %v11973_v63, %v5543_v19 }
 0xa81   : > { %v12081_v28 = vpack.c.bf16 %v5452_v46, %v5445_v48  ;;  %v5439_v26 = vsub.f32 %v11988_v8, %v5438_v14 }
 0xa82   : > { %v12057_v38 = vpack.c.bf16 %v5524_v36, %v5517_v9  ;;  %v5564_v36 = vand.u32 4294901760, %v12008_v58  ;;  %v5419_v9 = vand.u32 4294901760, %v5418_v42  ;;  %v5545_v47 = vand.u32 4294901760, %v5544_v32 }
 0xa83   : > { %v5558_v42 = vsub.f32 %v12006_v49, %v5557_v25  ;;  %v5440_v18 = vand.u32 4294901760, %v5439_v26 }
 0xa84   : > { %v12075_v24 = vpack.c.bf16 %v5564_v36, %v5557_v25  ;;  %v7499_v25 = vld [vmem:[#allocation24] ss:$0 sm:$0xff] }
 0xa85   : > { %v5559_v63 = vand.u32 4294901760, %v5558_v42 }
 0xad8   : > { %v4704_v17 = vpop.f32.mrb[8].mxu0 }
 0xad9   : > { %v4706_v34 = vpop.f32.mrb[9].mxu0  ;;  %v9662_v49 = vadd.f32 %v7499_v25, %v4704_v17 }
 0xada   : > { %v5425_v34 = vsub.f32 %v11949_v23, %v5424_v11  ;;  %v5551_v23 = vsub.f32 %v11975_v59, %v5550_v41  ;;  %v5432_v11 = vsub.f32 %v11986_v5, %v5431_v10  ;;  %v5453_v5 = vsub.f32 %v12012_v7, %v5452_v46 }
 0xadb   : > { %v5480_v7 = vand.u32 4294901760, %v11817_v13 }
 0xadc   : > { %v5426_v29 = vand.u32 4294901760, %v5425_v34  ;;  %v5552_v61 = vand.u32 4294901760, %v5551_v23  ;;  %v5565_v34 = vsub.f32 %v12008_v58, %v5564_v36  ;;  %v5433_v56 = vand.u32 4294901760, %v5432_v11 }
 0xadd   : > { %v5454_v10 = vand.u32 4294901760, %v5453_v5  ;;  %v5347_v23 = vand.u32 4294901760, %v11808_v12 }
 0xade   : > { %v12079_v44 = vpack.c.bf16 %v5426_v29, %v5419_v9  ;;  %v12087_v51 = vpack.c.bf16 %v5552_v61, %v5545_v47  ;;  %v5566_v59 = vand.u32 4294901760, %v5565_v34  ;;  %v5446_v29 = vsub.f32 %v12010_v33, %v5445_v48 }
 0xadf   : > { %v12090_v41 = vpack.c.bf16 %v5440_v18, %v5433_v56  ;;  %v5354_v33 = vand.u32 4294901760, %v11813_v22  ;;  %v5473_v48 = vand.u32 4294901760, %v11815_v0  ;;  %v5348_v46 = vsub.f32 %v11808_v12, %v5347_v23 }
 0xae0   : > { %v12093_v19 = vpack.c.bf16 %v5566_v59, %v5559_v63  ;;  %v5447_v8 = vand.u32 4294901760, %v5446_v29  ;;  %v5481_v61 = vsub.f32 %v11817_v13, %v5480_v7  ;;  %v5361_v56 = vand.u32 4294901760, %v11830_v54 }
 0xae1   : > { %v5355_v11 = vsub.f32 %v11813_v22, %v5354_v33  ;;  %v5474_v17 = vsub.f32 %v11815_v0, %v5473_v48  ;;  %v5368_v18 = vand.u32 4294901760, %v11846_v39  ;;  %v9371_v63 = vpack.c.bf16 %v5354_v33, %v5347_v23 }
 0xae2   : > { %v12095_v14 = vpack.c.bf16 %v5454_v10, %v5447_v8  ;;  %v5349_v59 = vand.u32 4294901760, %v5348_v46  ;;  %v5487_v12 = vand.u32 4294901760, %v11865_v60  ;;  %v5494_v13 = vand.u32 4294901760, %v11870_v4 }
 0xae3   : > { %v5356_v29 = vand.u32 4294901760, %v5355_v11  ;;  %v5362_v5 = vsub.f32 %v11830_v54, %v5361_v56  ;;  %v9373_v8 = vpack.c.bf16 %v5480_v7, %v5473_v48  ;;  %v5475_v10 = vand.u32 4294901760, %v5474_v17 }
 0xae4   : > { %v5482_v25 = vand.u32 4294901760, %v5481_v61  ;;  %v5382_v33 = vand.u32 4294901760, %v11874_v27  ;;  %v5488_v54 = vsub.f32 %v11865_v60, %v5487_v12  ;;  %v5495_v48 = vsub.f32 %v11870_v4, %v5494_v13 }
 0xae5   : > { %v9275_v23 = vpack.c.bf16 %v5356_v29, %v5349_v59  ;;  %v9377_v46 = vpack.c.bf16 %v5494_v13, %v5487_v12  ;;  %v5363_v11 = vand.u32 4294901760, %v5362_v5  ;;  %v5501_v60 = vand.u32 4294901760, %v11879_v31 }
 0xae6   : > { %v5508_v4 = vand.u32 4294901760, %v11886_v21  ;;  %v5496_v59 = vand.u32 4294901760, %v5495_v48  ;;  %v5389_v5 = vand.u32 4294901760, %v11891_v62 }
 0xae7   : > { %v5502_v29 = vsub.f32 %v11879_v31, %v5501_v60 }
 0xae8   : > { %v5509_v12 = vsub.f32 %v11886_v21, %v5508_v4  ;;  %v5390_v31 = vsub.f32 %v11891_v62, %v5389_v5 }
 0xaea   : > { %v5391_v48 = vand.u32 4294901760, %v5390_v31 }
 0xb32   : > { %v5166_v58 = vpop.f32.mrb[4].mxu1 }
 0xb33   : > { %v9663_v36 = vadd.f32 %v9662_v49, %v5166_v58  ;;  %v5168_v9 = vpop.f32.mrb[5].mxu1  ;;  %v5369_v49 = vsub.f32 %v11846_v39, %v5368_v18  ;;  %v9375_v58 = vpack.c.bf16 %v5368_v18, %v5361_v56  ;;  %v5383_v18 = vsub.f32 %v11874_v27, %v5382_v33 }
 0xb35   : > { %v5170_v32 = vmax.f32 %v9663_v36, 0.0  ;;  %v5384_v27 = vand.u32 4294901760, %v5383_v18 }
 0xb37   : > { %5173 = vst [vmem:[#allocation6 + $0x1] sm:$0xf] %v5170_v32  ;;  %v5375_v32 = vand.u32 4294901760, %v11872_v30 }
 0xb39   : > { %v5376_v56 = vsub.f32 %v11872_v30, %v5375_v32  ;;  %v9379_v13 = vpack.c.bf16 %v5382_v33, %v5375_v32  ;;  %v5510_v32 = vand.u32 4294901760, %v5509_v12  ;;  %v12264_v12 = vld [vmem:[%s12818_s17 + $0x168] sm:$0xff] }
 0xb3b   : > { %v5377_v30 = vand.u32 4294901760, %v5376_v56 }
 0xb3e   : > { %v5175_v26 = vld [vmem:[#allocation6 + $0x1] sm:$0xf] }
 0xb3f   : > { %v5174_v47 = vld [vmem:[#allocation6] sm:$0xf]  ;;  %v12105_v42 = vand.u32 4294901760, %v5175_v26 }
 0xb40   : > { %v12107_v34 = vand.u32 4294901760, %v5174_v47 }
 0xb41   : > { %v12113_v22 = vsub.f32 %v5175_v26, %v12105_v42  ;;  %v9277_v26 = vpack.c.bf16 %v5482_v25, %v5475_v10  ;;  %v9381_v25 = vpack.c.bf16 %v5508_v4, %v5501_v60 }
 0xb42   : > { %v12116_v0 = vsub.f32 %v5174_v47, %v12107_v34  ;;  %v5370_v47 = vand.u32 4294901760, %v5369_v49 }
 0xb43   : > { %5706 = vmatprep.mubr.f32.mxu1 %v12113_v22  ;;  %v5330_v36 = vand.u32 4294901760, %v12113_v22 }
 0xb44   : > { %v12912_v9 = vand.u32 4294901760, %v12116_v0  ;;  %5709 = vmatmul.mubr.f32.vlgmr.msra.gmra.mrb[6].mxu1 %v12116_v0  ;;  %v9279_v10 = vpack.c.bf16 %v5370_v47, %v5363_v11 }
 0xb45   : > { %9372 = vmatpush3.bf16.msra.mxu1 %v9371_v63  ;;  %5983 = vmatprep.mubr.f32.mxu1 %v12105_v42  ;;  %v5331_v39 = vsub.f32 %v12113_v22, %v5330_v36  ;;  %v5489_v63 = vand.u32 4294901760, %v5488_v54  ;;  %v9283_v54 = vpack.c.bf16 %v5384_v27, %v5377_v30  ;;  %v12242_v22 = vld [vmem:[%s12818_s17 + $0x158] sm:$0xff] }
 0xb46   : > { %v5337_v7 = vsub.f32 %v12116_v0, %v12912_v9  ;;  %9374 = vmatprep.subr.bf16.mxu1 %v9373_v8  ;;  %v5396_v8 = vand.u32 4294901760, %v11893_v40 }
 0xb47   : > { %v5332_v17 = vand.u32 4294901760, %v5331_v39  ;;  %v9281_v49 = vpack.c.bf16 %v5496_v59, %v5489_v63  ;;  %v6128_v59 = vand.u32 4294901760, %v12242_v22 }
 0xb48   : > { %v5338_v61 = vand.u32 4294901760, %v5337_v7  ;;  %v5397_v21 = vsub.f32 %v11893_v40, %v5396_v8  ;;  %v9383_v33 = vpack.c.bf16 %v5396_v8, %v5389_v5  ;;  %v5209_v40 = vld [vmem:[%s12818_s17 + $0x100] sm:$0xff] }
 0xb49   : > { %9376 = vmatpush3.bf16.msra.mxu1 %v9375_v58  ;;  %5333 = vmatprep.mubr.f32.mxu0 %v5332_v17  ;;  %v5503_v58 = vand.u32 4294901760, %v5502_v29  ;;  %v12237_v17 = vld [vmem:[%s12818_s17 + $0x150] sm:$0xff]  ;;  %v12259_v29 = vld [vmem:[%s12818_s17 + $0x160] sm:$0xff] }
 0xb4a   : > { %5339 = vmatmul.mubr.f32.vlgmr.msra.gmra.mrb[10].mxu0 %v5338_v61  ;;  %9378 = vmatprep.subr.bf16.mxu1 %v9377_v46  ;;  %v5398_v39 = vand.u32 4294901760, %v5397_v21  ;;  %v6125_v63 = vand.u32 4294901760, %v12237_v17  ;;  %v12917_v31 = vand.u32 4294901760, %v12259_v29  ;;  %v12913_v21 = vand.u32 4294901760, %v12264_v12 }
 0xb4b   : > { %9276 = vmatpush3.bf16.msra.mxu0 %v9275_v23  ;;  %5569 = vmatprep.mubr.f32.mxu0 %v12105_v42  ;;  %v9285_v23 = vpack.c.bf16 %v5510_v32, %v5503_v58  ;;  %v12292_v58 = vld [vmem:[%s12818_s17 + $0x178] sm:$0xff] }
 0xb4c   : > { %9278 = vmatprep.subr.bf16.mxu0 %v9277_v26  ;;  %v9287_v62 = vpack.c.bf16 %v5398_v39, %v5391_v48  ;;  %v12215_v26 = vld [vmem:[%s12818_s17 + $0x140] sm:$0xff]  ;;  %v12279_v27 = vpack.c.bf16 %v6128_v59, %v6125_v63 }
 0xb4d   : > { %9380 = vmatpush3.bf16.msra.mxu1 %v9379_v13  ;;  %v6119_v60 = vand.u32 4294901760, %v12215_v26  ;;  %v13037_v48 = vld [vmem:[#allocation43_spill] sm:$0xff] }
 0xb4e   : > { %9382 = vmatprep.subr.bf16.mxu1 %v9381_v25 }
 0xb4f   : > { %9280 = vmatpush3.bf16.msra.mxu0 %v9279_v10  ;;  %v13035_v10 = vld [vmem:[#allocation41_spill] sm:$0xff] }
 0xb50   : > { %9282 = vmatprep.subr.bf16.mxu0 %v9281_v49  ;;  %v12287_v49 = vld [vmem:[%s12818_s17 + $0x170] sm:$0xff] }
 0xb51   : > { %9384 = vmatpush3.bf16.msra.mxu1 %v9383_v33 }
 0xb52   : > { %9386 = vmatprep.subr.bf16.mxu1 %v12037_v55  ;;  %v5210_v55 = vld [vmem:[%s12818_s17 + $0x108] sm:$0xff] }
 0xb53   : > { %9284 = vmatpush3.bf16.msra.mxu0 %v9283_v54  ;;  %v13036_v54 = vld [vmem:[#allocation42_spill] sm:$0xff] }
 0xb54   : > { %9286 = vmatprep.subr.bf16.mxu0 %v9285_v23 }
 0xb55   : > { %9388 = vmatpush3.bf16.msra.mxu1 %v12039_v50  ;;  %v6095_v50 = vand.u32 4294901760, %v5209_v40 }
 0xb56   : > { %9390 = vmatprep.subr.bf16.mxu1 %v12046_v6  ;;  %v6098_v6 = vand.u32 4294901760, %v5210_v55 }
 0xb57   : > { %9288 = vmatpush3.bf16.msra.mxu0 %v9287_v62  ;;  %v12245_v61 = vsub.f32 %v5209_v40, %v6095_v50 }
 0xb58   : > { %9290 = vmatprep.subr.bf16.mxu0 %v12057_v38  ;;  %v5212_v38 = vld [vmem:[%s12818_s17 + $0x118] sm:$0xff]  ;;  %v12247_v56 = vsub.f32 %v5210_v55, %v6098_v6 }
 0xb59   : > { %9392 = vmatpush3.bf16.msra.mxu1 %v12050_v20  ;;  %v5211_v20 = vld [vmem:[%s12818_s17 + $0x110] sm:$0xff]  ;;  %v12910_v25 = vand.u32 4294901760, %v12245_v61 }
 0xb5a   : > { %9394 = vmatprep.subr.bf16.mxu1 %v12059_v45  ;;  %v12172_v45 = vpack.c.bf16 %v6098_v6, %v6095_v50  ;;  %v12907_v30 = vand.u32 4294901760, %v12247_v56  ;;  %v12317_v50 = vpack.c.bf16 %v12913_v21, %v12917_v31  ;;  %v6137_v6 = vand.u32 4294901760, %v12287_v49 }
 0xb5b   : > { %9292 = vmatpush3.bf16.msra.mxu0 %v12063_v57  ;;  %v6101_v57 = vand.u32 4294901760, %v5211_v20  ;;  %v6189_v39 = vsub.f32 %v12245_v61, %v12910_v25 }
 0xb5c   : > { %9294 = vmatprep.subr.bf16.mxu0 %v12073_v15  ;;  %v5213_v15 = vld [vmem:[%s12818_s17 + $0x120] sm:$0xff]  ;;  %v6196_v23 = vsub.f32 %v12247_v56, %v12907_v30 }
 0xb5d   : > { %9396 = vmatpush3.bf16.msra.mxu1 %v12065_v1  ;;  %v6104_v1 = vand.u32 4294901760, %v5212_v38  ;;  %v12269_v5 = vsub.f32 %v5211_v20, %v6101_v57  ;;  %v12911_v20 = vand.u32 4294901760, %v12292_v58 }
 0xb5e   : > { %9398 = vmatprep.subr.bf16.mxu1 %v12075_v24  ;;  %v12181_v24 = vld [vmem:[%s12818_s17 + $0x128] sm:$0xff] }
 0xb5f   : > { %9296 = vmatpush3.bf16.msra.mxu0 %v12079_v44  ;;  %v6107_v44 = vand.u32 4294901760, %v5213_v15  ;;  %v12271_v8 = vsub.f32 %v5212_v38, %v6104_v1  ;;  %v12909_v62 = vand.u32 4294901760, %v12269_v5 }
 0xb60   : > { %9298 = vmatprep.subr.bf16.mxu0 %v12087_v51  ;;  %v12187_v51 = vpack.c.bf16 %v6104_v1, %v6101_v57  ;;  %v13038_v1 = vld [vmem:[#allocation44_spill] sm:$0xff] }
 0xb61   : > { %9400 = vmatpush3.bf16.msra.mxu1 %v12081_v28  ;;  %v6110_v28 = vand.u32 4294901760, %v12181_v24  ;;  %v12297_v33 = vsub.f32 %v5213_v15, %v6107_v44  ;;  %v12908_v40 = vand.u32 4294901760, %v12271_v8  ;;  %v13039_v15 = vld [vmem:[#allocation45_spill] sm:$0xff] }
 0xb62   : > { %9433 = vmatprep.subr.bf16.mxu1 %v12978_v3 }
 0xb63   : > { %9300 = vmatpush3.bf16.msra.mxu0 %v12090_v41  ;;  %v12196_v41 = vld [vmem:[%s12818_s17 + $0x130] sm:$0xff]  ;;  %v12206_v7 = vpack.c.bf16 %v6110_v28, %v6107_v44  ;;  %v12310_v55 = vsub.f32 %v12181_v24, %v6110_v28  ;;  %v6190_v24 = vand.u32 4294901760, %v6189_v39  ;;  %v6197_v44 = vand.u32 4294901760, %v6196_v23 }
 0xb64   : > { %5985 = vmatmul.mubr.f32.vlgmr.msra.gmra.mrb[8].mxu1 %v12107_v34  ;;  %9302 = vmatprep.subr.bf16.mxu0 %v12093_v19  ;;  %v12201_v19 = vld [vmem:[%s12818_s17 + $0x138] sm:$0xff]  ;;  %v6113_v46 = vand.u32 4294901760, %v12196_v41  ;;  %v6203_v28 = vsub.f32 %v12269_v5, %v12909_v62  ;;  %v13041_v62 = vld [vmem:[#allocation47_spill] sm:$0xff] }
 0xb65   : > { %9435 = vmatpush3.bf16.msra.mxu1 %v12172_v45  ;;  %8349 = vmatprep.mubr.msk.f32.mxu1 %vm10296_vm11, %v13011_v16  ;;  %v6116_v11 = vand.u32 4294901760, %v12201_v19  ;;  %v12914_v39 = vand.u32 4294901760, %v12310_v55  ;;  %v9458_v25 = vpack.c.bf16 %v6197_v44, %v6190_v24  ;;  %v12369_v24 = vsub.f32 %v12237_v17, %v6125_v63  ;;  %v13042_v44 = vld [vmem:[#allocation48_spill] sm:$0xff] }
 0xb66   : > { %9436 = vmatprep.subr.bf16.mxu1 %v12978_v3  ;;  %v12324_v57 = vsub.f32 %v12196_v41, %v6113_v46  ;;  %v12342_v41 = vpack.c.bf16 %v12911_v20, %v6137_v6  ;;  %v6204_v20 = vand.u32 4294901760, %v6203_v28  ;;  %v12375_v28 = vsub.f32 %v12242_v22, %v6128_v59  ;;  %v13045_v59 = vld [vmem:[#allocation50_spill] sm:$0xff] }
 0xb67   : > { %9304 = vmatpush3.bf16.msra.mxu0 %v12095_v14  ;;  %v12220_v14 = vld [vmem:[%s12818_s17 + $0x148] sm:$0xff]  ;;  %v12229_v47 = vpack.c.bf16 %v6116_v11, %v6113_v46  ;;  %v12337_v30 = vsub.f32 %v12201_v19, %v6116_v11  ;;  %v12915_v46 = vand.u32 4294901760, %v12297_v33  ;;  %v13040_v19 = vld [vmem:[#allocation46_spill] sm:$0xff] }
 0xb68   : > { %9338 = vmatprep.subr.bf16.mxu0 %v11832_v37  ;;  %v6122_v4 = vand.u32 4294901760, %v12220_v14 }
 0xb69   : > { %9438 = vmatpush3.bf16.msra.mxu1 %v12187_v51  ;;  %v6217_v21 = vsub.f32 %v12297_v33, %v12915_v46 }
 0xb6a   : > { %5571 = vmatmul.mubr.f32.vlgmr.msra.gmra.mrb[12].mxu0 %v12107_v34  ;;  %9439 = vmatprep.subr.bf16.mxu1 %v12978_v3  ;;  %v12251_v18 = vpack.c.bf16 %v6122_v4, %v6119_v60  ;;  %v12355_v11 = vsub.f32 %v12220_v14, %v6122_v4  ;;  %v12918_v14 = vand.u32 4294901760, %v12337_v30 }
 0xb6b   : > { %9340 = vmatpush3.bf16.msra.mxu0 %v11834_v53  ;;  %5813 = vmatprep.mubr.f32.mxu0 %v5330_v36  ;;  %v5176_v36 = vld [vmem:[#allocation6 + $0x2] sm:$0xf] }
 0xb6c   : > { %9342 = vmatprep.subr.bf16.mxu0 %v11854_v2  ;;  %v12266_v13 = vand.u32 4294901760, %v5176_v36  ;;  %v6238_v22 = vsub.f32 %v12337_v30, %v12918_v14 }
 0xb6d   : > { %9441 = vmatpush3.bf16.msra.mxu1 %v12206_v7 }
 0xb6e   : > { %9442 = vmatprep.subr.bf16.mxu1 %v12978_v3  ;;  %v12295_v32 = vsub.f32 %v5176_v36, %v12266_v13  ;;  %v6210_v36 = vsub.f32 %v12271_v8, %v12908_v40  ;;  %v12351_v40 = vsub.f32 %v12215_v26, %v6119_v60  ;;  %v6224_v26 = vsub.f32 %v12310_v55, %v12914_v39 }
 0xb6f   : > { %9344 = vmatpush3.bf16.msra.mxu0 %v11867_v52  ;;  %v12919_v60 = vand.u32 4294901760, %v12324_v57  ;;  %v6239_v14 = vand.u32 4294901760, %v6238_v22 }
 0xb70   : > { %9346 = vmatprep.subr.bf16.mxu0 %v11881_v35  ;;  %v12916_v38 = vand.u32 4294901760, %v12295_v32  ;;  %v6211_v9 = vand.u32 4294901760, %v6210_v36  ;;  %v13043_v36 = vld [vmem:[#allocation49_spill] sm:$0xff]  ;;  %v6244_v46 = vand.u32 4294901760, %v12351_v40  ;;  %v6225_v31 = vand.u32 4294901760, %v6224_v26 }
 0xb71   : > { %9444 = vmatpush3.bf16.msra.mxu1 %v12229_v47  ;;  %v6231_v17 = vsub.f32 %v12324_v57, %v12919_v60  ;;  %v6265_v26 = vand.u32 4294901760, %v12375_v28  ;;  %v13047_v60 = vand.u32 4294901760, %v12116_v0 }
 0xb72   : > { %9445 = vmatprep.subr.bf16.mxu1 %v12978_v3  ;;  %v6178_v23 = vsub.f32 %v12295_v32, %v12916_v38  ;;  %v9461_v39 = vpack.c.bf16 %v6211_v9, %v6204_v20  ;;  %v6218_v38 = vand.u32 4294901760, %v6217_v21  ;;  %v13044_v9 = vand.u32 4294901760, %v12259_v29 }
 0xb73   : > { %9348 = vmatpush3.bf16.msra.mxu0 %v11916_v43  ;;  %v6258_v20 = vand.u32 4294901760, %v12369_v24  ;;  %v6266_v0 = vsub.f32 %v12375_v28, %v6265_v26 }
 0xb74   : > { %9350 = vmatprep.subr.bf16.mxu0 %v13035_v10  ;;  %v6179_v4 = vand.u32 4294901760, %v6178_v23  ;;  %v12920_v23 = vand.u32 4294901760, %v12355_v11  ;;  %v12392_v63 = vsub.f32 %v12259_v29, %v13044_v9  ;;  %v9464_v9 = vpack.c.bf16 %v6225_v31, %v6218_v38 }
 0xb75   : > { %9447 = vmatpush3.bf16.msra.mxu1 %v12251_v18  ;;  %v6259_v31 = vsub.f32 %v12369_v24, %v6258_v20  ;;  %v13048_v38 = vand.u32 4294901760, %v12292_v58 }
 0xb76   : > { %9448 = vmatprep.subr.bf16.mxu1 %v12978_v3  ;;  %v6252_v21 = vsub.f32 %v12355_v11, %v12920_v23  ;;  %v12413_v23 = vsub.f32 %v12287_v49, %v6137_v6 }
 0xb77   : > { %9352 = vmatpush3.bf16.msra.mxu0 %v13036_v54  ;;  %v12427_v49 = vsub.f32 %v12292_v58, %v13048_v38  ;;  %v13053_v38 = vand.u32 4294901760, %v12271_v8 }
 0xb78   : > { %9354 = vmatprep.subr.bf16.mxu0 %v13037_v48 }
 0xb79   : > { %9450 = vmatpush3.bf16.msra.mxu1 %v12279_v27  ;;  %v6293_v22 = vand.u32 4294901760, %v12427_v49 }
 0xb7a   : > { %9451 = vmatprep.subr.bf16.mxu1 %v12978_v3 }
 0xb7b   : > { %9356 = vmatpush3.bf16.msra.mxu0 %v13038_v1 }
 0xb7c   : > { %9358 = vmatprep.subr.bf16.mxu0 %v13039_v15 }
 0xb7d   : > { %9453 = vmatpush3.bf16.msra.mxu1 %v12317_v50 }
 0xb7e   : > { %9454 = vmatprep.subr.bf16.mxu1 %v12978_v3 }
 0xb7f   : > { %9360 = vmatpush3.bf16.msra.mxu0 %v13040_v19 }
 0xb80   : > { %9362 = vmatprep.subr.bf16.mxu0 %v13041_v62 }
 0xb81   : > { %9456 = vmatpush3.bf16.msra.mxu1 %v12342_v41 }
 0xb82   : > { %9457 = vmatprep.subr.bf16.mxu1 %v12978_v3 }
 0xb83   : > { %9364 = vmatpush3.bf16.msra.mxu0 %v13042_v44 }
 0xb84   : > { %8350 = vmatmul.mubr.f32.vlgmr.msra.gmra.mrb[10].mxu1 %v6179_v4  ;;  %9366 = vmatprep.subr.bf16.mxu0 %v13043_v36  ;;  %v13046_v4 = vand.u32 4294901760, %v12264_v12 }
 0xb85   : > { %9459 = vmatpush3.bf16.msra.mxu1 %v9458_v25  ;;  %8384 = vmatprep.mubr.msk.f32.mxu1 %vm10296_vm11, %v13011_v16  ;;  %v6245_v25 = vsub.f32 %v12351_v40, %v6244_v46 }
 0xb86   : > { %9460 = vmatprep.subr.bf16.mxu1 %v12978_v3  ;;  %v12407_v29 = vsub.f32 %v12264_v12, %v13046_v4  ;;  %v6253_v4 = vand.u32 4294901760, %v6252_v21 }
 0xb87   : > { %9368 = vmatpush3.bf16.msra.mxu0 %v13045_v59  ;;  %v6246_v12 = vand.u32 4294901760, %v6245_v25 }
 0xb88   : > { %9402 = vmatprep.subr.bf16.mxu0 %v11832_v37  ;;  %v6232_v37 = vand.u32 4294901760, %v6231_v17  ;;  %v6286_v17 = vand.u32 4294901760, %v12413_v23 }
 0xb89   : > { %9462 = vmatpush3.bf16.msra.mxu1 %v9461_v39  ;;  %v9470_v6 = vpack.c.bf16 %v6253_v4, %v6246_v12  ;;  %v6260_v39 = vand.u32 4294901760, %v6259_v31  ;;  %v13051_v31 = vand.u32 4294901760, %v12295_v32 }
 0xb8a   : > { %5817 = vmatmul.mubr.f32.vlgmr.msra.gmra.mrb[14].mxu0 %v13047_v60  ;;  %9463 = vmatprep.subr.bf16.mxu1 %v12978_v3  ;;  %v6267_v60 = vand.u32 4294901760, %v6266_v0  ;;  %v6287_v21 = vsub.f32 %v12413_v23, %v6286_v17  ;;  %v13052_v0 = vand.u32 4294901760, %v12269_v5 }
 0xb8b   : > { %9404 = vmatpush3.bf16.msra.mxu0 %v11834_v53  ;;  %6087 = vmatprep.mubr.f32.mxu0 %v12105_v42  ;;  %v9467_v53 = vpack.c.bf16 %v6239_v14, %v6232_v37  ;;  %v6272_v42 = vand.u32 4294901760, %v12392_v63 }
 0xb8c   : > { %9406 = vmatprep.subr.bf16.mxu0 %v11854_v2  ;;  %v6279_v2 = vand.u32 4294901760, %v12407_v29 }
 0xb8d   : > { %9465 = vmatpush3.bf16.msra.mxu1 %v9464_v9  ;;  %v6273_v58 = vsub.f32 %v12392_v63, %v6272_v42  ;;  %v6294_v9 = vsub.f32 %v12427_v49, %v6293_v22 }
 0xb8e   : > { %9466 = vmatprep.subr.bf16.mxu1 %v12978_v3  ;;  %v6280_v14 = vsub.f32 %v12407_v29, %v6279_v2 }
 0xb8f   : > { %9408 = vmatpush3.bf16.msra.mxu0 %v11867_v52  ;;  %v9473_v52 = vpack.c.bf16 %v6267_v60, %v6260_v39  ;;  %v6295_v37 = vand.u32 4294901760, %v6294_v9  ;;  %v13058_v39 = vand.u32 4294901760, %v12355_v11 }
 0xb90   : > { %9410 = vmatprep.subr.bf16.mxu0 %v11881_v35  ;;  %v6274_v35 = vand.u32 4294901760, %v6273_v58  ;;  %v6281_v25 = vand.u32 4294901760, %v6280_v14 }
 0xb91   : > { %9468 = vmatpush3.bf16.msra.mxu1 %v9467_v53  ;;  %v9533_v53 = vpack.c.bf16 %v13053_v38, %v13052_v0  ;;  %v9542_v60 = vpack.c.bf16 %v13058_v39, %v6244_v46 }
 0xb92   : > { %9469 = vmatprep.subr.bf16.mxu1 %v12978_v3 }
 0xb93   : > { %9412 = vmatpush3.bf16.msra.mxu0 %v11916_v43  ;;  %v9476_v43 = vpack.c.bf16 %v6281_v25, %v6274_v35 }
 0xb94   : > { %9414 = vmatprep.subr.bf16.mxu0 %v13035_v10  ;;  %v6288_v10 = vand.u32 4294901760, %v6287_v21 }
 0xb95   : > { %9471 = vmatpush3.bf16.msra.mxu1 %v9470_v6 }
 0xb96   : > { %9472 = vmatprep.subr.bf16.mxu1 %v12978_v3  ;;  %v9479_v12 = vpack.c.bf16 %v6295_v37, %v6288_v10 }
 0xb97   : > { %9416 = vmatpush3.bf16.msra.mxu0 %v13036_v54  ;;  %v9482_v54 = vpack.c.bf16 %v12247_v56, %v12245_v61 }
 0xb98   : > { %9418 = vmatprep.subr.bf16.mxu0 %v13037_v48  ;;  %v9485_v48 = vpack.c.bf16 %v12271_v8, %v12269_v5  ;;  %v13057_v5 = vand.u32 4294901760, %v12337_v30 }
 0xb99   : > { %9474 = vmatpush3.bf16.msra.mxu1 %v9473_v52 }
 0xb9a   : > { %9475 = vmatprep.subr.bf16.mxu1 %v12978_v3 }
 0xb9b   : > { %9420 = vmatpush3.bf16.msra.mxu0 %v13038_v1  ;;  %v9491_v1 = vpack.c.bf16 %v12337_v30, %v12324_v57  ;;  %v9548_v30 = vpack.c.bf16 %v6279_v2, %v6272_v42  ;;  %v6740_v42 = vld [vmem:[%s12820_s19 + $0x20] sm:$0xff]  ;;  %v6741_v2 = vld [vmem:[%s12820_s19 + $0x28] sm:$0xff] }
 0xb9c   : > { %9422 = vmatprep.subr.bf16.mxu0 %v13039_v15  ;;  %v9494_v15 = vpack.c.bf16 %v12355_v11, %v12351_v40  ;;  %v9551_v40 = vpack.c.bf16 %v6293_v22, %v6286_v17  ;;  %v6742_v17 = vld [vmem:[%s12820_s19 + $0x30] sm:$0xff]  ;;  %v6743_v22 = vld [vmem:[%s12820_s19 + $0x38] sm:$0xff]  ;;  %v6770_v21 = vand.u32 4294901760, %v6741_v2 }
 0xb9d   : > { %9477 = vmatpush3.bf16.msra.mxu1 %v9476_v43  ;;  %v6773_v43 = vand.u32 4294901760, %v6742_v17  ;;  %v6776_v10 = vand.u32 4294901760, %v6743_v22 }
 0xb9e   : > { %9478 = vmatprep.subr.bf16.mxu1 %v12978_v3 }
 0xb9f   : > { %9424 = vmatpush3.bf16.msra.mxu0 %v13040_v19  ;;  %v9497_v19 = vpack.c.bf16 %v12375_v28, %v12369_v24  ;;  %v6739_v28 = vld [vmem:[%s12820_s19 + $0x18] sm:$0xff]  ;;  %v12655_v0 = vsub.f32 %v6743_v22, %v6776_v10 }
 0xba0   : > { %9426 = vmatprep.subr.bf16.mxu0 %v13041_v62  ;;  %v9488_v62 = vpack.c.bf16 %v12310_v55, %v12297_v33 }
 0xba1   : > { %9480 = vmatpush3.bf16.msra.mxu1 %v9479_v12 }
 0xba2   : > { %9481 = vmatprep.subr.bf16.mxu1 %v12978_v3 }
 0xba3   : > { %9428 = vmatpush3.bf16.msra.mxu0 %v13042_v44  ;;  %v9503_v44 = vpack.c.bf16 %v12427_v49, %v12413_v23  ;;  %v6764_v49 = vand.u32 4294901760, %v6739_v28 }
 0xba4   : > { %8385 = vmatmul.mubr.f32.vlgmr.msra.gmra.mrb[10].mxu1 %v12266_v13  ;;  %9430 = vmatprep.subr.bf16.mxu0 %v13043_v36  ;;  %v13049_v36 = vand.u32 4294901760, %v12245_v61  ;;  %v13054_v61 = vand.u32 4294901760, %v12297_v33  ;;  %v9545_v33 = vpack.c.bf16 %v6265_v26, %v6258_v20 }
 0xba5   : > { %9483 = vmatpush3.bf16.msra.mxu1 %v9482_v54  ;;  %8419 = vmatprep.mubr.msk.f32.mxu1 %vm10296_vm11, %v13011_v16 }
 0xba6   : > { %9484 = vmatprep.subr.bf16.mxu1 %v12978_v3 }
 0xba7   : > { %9432 = vmatpush3.bf16.msra.mxu0 %v13045_v59  ;;  %v13050_v59 = vand.u32 4294901760, %v12247_v56  ;;  %v13055_v56 = vand.u32 4294901760, %v12310_v55 }
 0xba9   : > { %9486 = vmatpush3.bf16.msra.mxu1 %v9485_v48  ;;  %v9530_v4 = vpack.c.bf16 %v13050_v59, %v13049_v36  ;;  %v9536_v6 = vpack.c.bf16 %v13055_v56, %v13054_v61 }
 0xbaa   : > { %6089 = vmatmul.mubr.f32.vlgmr.msra.gmra.mrb[16].mxu0 %v12107_v34  ;;  %9487 = vmatprep.subr.bf16.mxu1 %v12978_v3  ;;  %v9500_v34 = vpack.c.bf16 %v12407_v29, %v12392_v63 }
 0xbad   : > { %9489 = vmatpush3.bf16.msra.mxu1 %v9488_v62 }
 0xbae   : > { %9490 = vmatprep.subr.bf16.mxu1 %v12978_v3 }
 0xbb1   : > { %9492 = vmatpush3.bf16.msra.mxu1 %v9491_v1 }
 0xbb2   : > { %9493 = vmatprep.subr.bf16.mxu1 %v12978_v3 }
 0xbb5   : > { %9495 = vmatpush3.bf16.msra.mxu1 %v9494_v15  ;;  %v12640_v15 = vsub.f32 %v6741_v2, %v6770_v21 }
 0xbb6   : > { %9496 = vmatprep.subr.bf16.mxu1 %v12978_v3 }
 0xbb9   : > { %9498 = vmatpush3.bf16.msra.mxu1 %v9497_v19 }
 0xbba   : > { %9499 = vmatprep.subr.bf16.mxu1 %v12978_v3 }
 0xbbd   : > { %9501 = vmatpush3.bf16.msra.mxu1 %v9500_v34  ;;  %v12644_v34 = vpack.c.bf16 %v6776_v10, %v6773_v43 }
 0xbbe   : > { %9502 = vmatprep.subr.bf16.mxu1 %v12978_v3 }
 0xbc1   : > { %9504 = vmatpush3.bf16.msra.mxu1 %v9503_v44 }
 0xbc2   : > { %9505 = vmatprep.subr.bf16.mxu1 %v12978_v3 }
 0xbc4   : > { %8420 = vmatmul.mubr.f32.vlgmr.msra.gmra.mrb[10].mxu1 %v12295_v32  ;;  %v13056_v32 = vand.u32 4294901760, %v12324_v57 }
 0xbc5   : > { %9507 = vmatpush3.bf16.msra.mxu1 %v12172_v45  ;;  %8454 = vmatprep.mubr.msk.f32.mxu1 %vm10296_vm11, %v13011_v16 }
 0xbc6   : > { %9508 = vmatprep.subr.bf16.mxu1 %v12978_v3  ;;  %v9539_v8 = vpack.c.bf16 %v13057_v5, %v13056_v32 }
 0xbc9   : > { %9510 = vmatpush3.bf16.msra.mxu1 %v12187_v51 }
 0xbca   : > { %9511 = vmatprep.subr.bf16.mxu1 %v12978_v3 }
 0xbcd   : > { %9513 = vmatpush3.bf16.msra.mxu1 %v12206_v7 }
 0xbce   : > { %9514 = vmatprep.subr.bf16.mxu1 %v12978_v3 }
 0xbd1   : > { %9516 = vmatpush3.bf16.msra.mxu1 %v12229_v47 }
 0xbd2   : > { %9517 = vmatprep.subr.bf16.mxu1 %v12978_v3 }
 0xbd5   : > { %9519 = vmatpush3.bf16.msra.mxu1 %v12251_v18 }
 0xbd6   : > { %9520 = vmatprep.subr.bf16.mxu1 %v12978_v3 }
 0xbd9   : > { %9522 = vmatpush3.bf16.msra.mxu1 %v12279_v27 }
 0xbda   : > { %9523 = vmatprep.subr.bf16.mxu1 %v12978_v3 }
 0xbdd   : > { %9525 = vmatpush3.bf16.msra.mxu1 %v12317_v50 }
 0xbde   : > { %9526 = vmatprep.subr.bf16.mxu1 %v12978_v3 }
 0xbe1   : > { %9528 = vmatpush3.bf16.msra.mxu1 %v12342_v41 }
 0xbe2   : > { %9529 = vmatprep.subr.bf16.mxu1 %v12978_v3 }
 0xbe4   : > { %8455 = vmatmul.mubr.f32.vlgmr.msra.gmra.mrb[10].mxu1 %v13051_v31  ;;  %v12653_v31 = vsub.f32 %v6742_v17, %v6773_v43 }
 0xbe5   : > { %9531 = vmatpush3.bf16.msra.mxu1 %v9530_v4  ;;  %8489 = vmatprep.mubr.msk.f32.mxu1 %vm10296_vm11, %v13011_v16 }
 0xbe6   : > { %9532 = vmatprep.subr.bf16.mxu1 %v12978_v3  ;;  %v6882_v39 = vand.u32 4294901760, %v12653_v31 }
 0xbe9   : > { %9534 = vmatpush3.bf16.msra.mxu1 %v9533_v53  ;;  %v6875_v53 = vand.u32 4294901760, %v12640_v15 }
 0xbea   : > { %9535 = vmatprep.subr.bf16.mxu1 %v12978_v3 }
 0xbed   : > { %9537 = vmatpush3.bf16.msra.mxu1 %v9536_v6 }
 0xbee   : > { %9538 = vmatprep.subr.bf16.mxu1 %v12978_v3 }
 0xbf1   : > { %9540 = vmatpush3.bf16.msra.mxu1 %v9539_v8  ;;  %v6876_v8 = vsub.f32 %v12640_v15, %v6875_v53 }
 0xbf2   : > { %9541 = vmatprep.subr.bf16.mxu1 %v12978_v3 }
 0xbf5   : > { %9543 = vmatpush3.bf16.msra.mxu1 %v9542_v60  ;;  %v6889_v60 = vand.u32 4294901760, %v12655_v0 }
 0xbf6   : > { %9544 = vmatprep.subr.bf16.mxu1 %v12978_v3 }
 0xbf9   : > { %9546 = vmatpush3.bf16.msra.mxu1 %v9545_v33 }
 0xbfa   : > { %9547 = vmatprep.subr.bf16.mxu1 %v12978_v3 }
 0xbfd   : > { %9549 = vmatpush3.bf16.msra.mxu1 %v9548_v30 }
 0xbfe   : > { %9550 = vmatprep.subr.bf16.mxu1 %v12978_v3 }
 0xc01   : > { %9552 = vmatpush3.bf16.msra.mxu1 %v9551_v40 }
 0xc02   : > { %9553 = vmatprep.subr.bf16.mxu1 %v12978_v3 }
 0xc04   : > { %8490 = vmatmul.mubr.f32.vlgmr.msra.gmra.mrb[10].mxu1 %v12266_v13 }
 0xc05   : > { %9555 = vmatpush3.bf16.msra.mxu1 %v12172_v45  ;;  %8524 = vmatprep.mubr.msk.f32.mxu1 %vm10296_vm11, %v13011_v16 }
 0xc06   : > { %9556 = vmatprep.subr.bf16.mxu1 %v12978_v3 }
 0xc09   : > { %9558 = vmatpush3.bf16.msra.mxu1 %v12187_v51  ;;  %v6736_v51 = vld [vmem:[%s12820_s19] sm:$0xff] }
 0xc0a   : > { %9559 = vmatprep.subr.bf16.mxu1 %v12978_v3  ;;  %v6755_v46 = vand.u32 4294901760, %v6736_v51 }
 0xc0c   : > { %v12589_v20 = vsub.f32 %v6736_v51, %v6755_v46  ;;  %v6890_v51 = vsub.f32 %v12655_v0, %v6889_v60 }
 0xc0d   : > { %9561 = vmatpush3.bf16.msra.mxu1 %v12206_v7  ;;  %v6737_v7 = vld [vmem:[%s12820_s19 + $0x8] sm:$0xff] }
 0xc0e   : > { %9562 = vmatprep.subr.bf16.mxu1 %v12978_v3  ;;  %v6758_v11 = vand.u32 4294901760, %v6737_v7  ;;  %v6840_v52 = vand.u32 4294901760, %v12589_v20 }
 0xc10   : > { %v12594_v26 = vpack.c.bf16 %v6758_v11, %v6755_v46  ;;  %v6841_v37 = vsub.f32 %v12589_v20, %v6840_v52 }
 0xc11   : > { %9564 = vmatpush3.bf16.msra.mxu1 %v12229_v47  ;;  %v6735_v47 = vld [vmem:[#allocation8 + $0x1] ss:$2 sm:$0xf] }
 0xc12   : > { %9565 = vmatprep.subr.bf16.mxu1 %v12978_v3  ;;  %v6752_v63 = vsel %vm3089_vm13, %v6735_v47, 0  ;;  %v6842_v44 = vand.u32 4294901760, %v6841_v37 }
 0xc13   : > { %v12603_v58 = vand.u32 4294901760, %v6752_v63 }
 0xc15   : > { %9567 = vmatpush3.bf16.msra.mxu1 %v12251_v18  ;;  %v12625_v9 = vsub.f32 %v6752_v63, %v12603_v58 }
 0xc16   : > { %9568 = vmatprep.subr.bf16.mxu1 %v12978_v3 }
 0xc17   : > { %v7759_v45 = vpop.f32.mrb[6].mxu1  ;;  %v6829_v19 = vand.u32 4294901760, %v12625_v9 }
 0xc18   : > { %v7760_v55 = vpop.f32.mrb[7].mxu1 }
 0xc19   : > { %v12568_v57 = vadd.f32 %v7760_v55, %v7759_v45  ;;  %9570 = vmatpush3.bf16.msra.mxu1 %v12279_v27  ;;  %v6738_v27 = vld [vmem:[%s12820_s19 + $0x10] sm:$0xff]  ;;  %v6830_v61 = vsub.f32 %v12625_v9, %v6829_v19  ;;  %v6877_v45 = vand.u32 4294901760, %v6876_v8  ;;  %v6883_v55 = vsub.f32 %v12653_v31, %v6882_v39 }
 0xc1a   : > { %9571 = vmatprep.subr.bf16.mxu1 %v12978_v3  ;;  %v6761_v29 = vand.u32 4294901760, %v6738_v27 }
 0xc1b   : > { %v6831_v33 = vand.u32 4294901760, %v6830_v61 }
 0xc1c   : > { %v12606_v14 = vsub.f32 %v6738_v27, %v6761_v29  ;;  %v12619_v25 = vpack.c.bf16 %v6764_v49, %v6761_v29  ;;  %v7500_v27 = vld [vmem:[%s12819_s18] ss:$0 sm:$0xff] }
 0xc1d   : > { %9573 = vmatpush3.bf16.msra.mxu1 %v12317_v50  ;;  %v7689_v18 = vpop.f32.mrb[10].mxu0  ;;  %v12591_v50 = vsub.f32 %v6737_v7, %v6758_v11  ;;  %v6884_v11 = vand.u32 4294901760, %v6883_v55 }
 0xc1e   : > { %v7690_v24 = vpop.f32.mrb[11].mxu0  ;;  %9574 = vmatprep.subr.bf16.mxu1 %v12978_v3  ;;  %v6854_v54 = vand.u32 4294901760, %v12606_v14 }
 0xc1f   : > { %v12586_v23 = vadd.f32 %v7690_v24, %v7689_v18  ;;  %v6847_v35 = vand.u32 4294901760, %v12591_v50  ;;  %v6891_v24 = vand.u32 4294901760, %v6890_v51  ;;  %v9602_v17 = vpack.c.bf16 %v12591_v50, %v12589_v20 }
 0xc20   : > { %v6855_v59 = vsub.f32 %v12606_v14, %v6854_v54 }
 0xc21   : > { %9576 = vmatpush3.bf16.msra.mxu1 %v12342_v41  ;;  %v12608_v41 = vsub.f32 %v6739_v28, %v6764_v49  ;;  %v6848_v12 = vsub.f32 %v12591_v50, %v6847_v35  ;;  %v9599_v63 = vpack.c.bf16 %v6891_v24, %v6884_v11  ;;  %v5341_v49 = vadd.f32 %v12586_v23, %v7500_v27 }
 0xc22   : > { %9577 = vmatprep.subr.bf16.mxu1 %v12978_v3  ;;  %v6856_v6 = vand.u32 4294901760, %v6855_v59  ;;  %v9635_v50 = vpack.c.bf16 %v6889_v60, %v6882_v39 }
 0xc23   : > { %v6861_v48 = vand.u32 4294901760, %v12608_v41  ;;  %v6849_v36 = vand.u32 4294901760, %v6848_v12  ;;  %v9626_v12 = vpack.c.bf16 %v6847_v35, %v6840_v52 }
 0xc24   : > { %8525 = vmatmul.mubr.f32.vlgmr.msra.gmra.mrb[10].mxu1 %v12266_v13  ;;  %v6767_v13 = vand.u32 4294901760, %v6740_v42 }
 0xc25   : > { %9579 = vmatpush3.bf16.msra.mxu1 %v12594_v26  ;;  %8543 = vmatprep.mubr.msk.f32.mxu1 %vm10296_vm11, %v13011_v16  ;;  %v6862_v4 = vsub.f32 %v12608_v41, %v6861_v48  ;;  %v9590_v56 = vpack.c.bf16 %v6849_v36, %v6842_v44  ;;  %v9629_v36 = vpack.c.bf16 %v6861_v48, %v6854_v54 }
 0xc26   : > { %9580 = vmatprep.subr.bf16.mxu1 %v12978_v3  ;;  %v12636_v62 = vpack.c.bf16 %v6770_v21, %v6767_v13  ;;  %v12638_v1 = vsub.f32 %v6740_v42, %v6767_v13  ;;  %v9605_v13 = vpack.c.bf16 %v12608_v41, %v12606_v14 }
 0xc27   : > { %v6863_v32 = vand.u32 4294901760, %v6862_v4 }
 0xc28   : > { %v6868_v38 = vand.u32 4294901760, %v12638_v1  ;;  %v9608_v23 = vpack.c.bf16 %v12640_v15, %v12638_v1 }
 0xc29   : > { %9582 = vmatpush3.bf16.msra.mxu1 %v12619_v25  ;;  %v9593_v30 = vpack.c.bf16 %v6863_v32, %v6856_v6 }
 0xc2a   : > { %9583 = vmatprep.subr.bf16.mxu1 %v12978_v3  ;;  %v6869_v5 = vsub.f32 %v12638_v1, %v6868_v38  ;;  %v9632_v20 = vpack.c.bf16 %v6875_v53, %v6868_v38 }
 0xc2c   : > { %v6870_v40 = vand.u32 4294901760, %v6869_v5 }
 0xc2d   : > { %9585 = vmatpush3.bf16.msra.mxu1 %v12636_v62 }
 0xc2e   : > { %9586 = vmatprep.subr.bf16.mxu1 %v12978_v3  ;;  %v9596_v46 = vpack.c.bf16 %v6877_v45, %v6870_v40 }
 0xc31   : > { %9588 = vmatpush3.bf16.msra.mxu1 %v12644_v34 }
 0xc32   : > { %9589 = vmatprep.subr.bf16.mxu1 %v12978_v3 }
 0xc34   : > { %8544 = vmatmul.mubr.f32.vlgmr.msra.gmra.mrb[10].mxu1 %v6831_v33 }
 0xc35   : > { %9591 = vmatpush3.bf16.msra.mxu1 %v9590_v56  ;;  %8562 = vmatprep.mubr.msk.f32.mxu1 %vm10296_vm11, %v13011_v16 }
 0xc36   : > { %9592 = vmatprep.subr.bf16.mxu1 %v12978_v3 }
 0xc37   : > { %v7829_v7 = vpop.f32.mrb[8].mxu1 }
 0xc38   : > { %v7830_v47 = vpop.f32.mrb[9].mxu1 }
 0xc39   : > { %v7831_v18 = vadd.f32 %v7830_v47, %v7829_v7  ;;  %9594 = vmatpush3.bf16.msra.mxu1 %v9593_v30 }
 0xc3a   : > { %9595 = vmatprep.subr.bf16.mxu1 %v12978_v3 }
 0xc3d   : > { %v7724_v28 = vpop.f32.mrb[12].mxu0  ;;  %9597 = vmatpush3.bf16.msra.mxu1 %v9596_v46 }
 0xc3e   : > { %v7725_v29 = vpop.f32.mrb[13].mxu0  ;;  %9598 = vmatprep.subr.bf16.mxu1 %v12978_v3 }
 0xc3f   : > { %v7726_v42 = vadd.f32 %v7725_v29, %v7724_v28 }
 0xc41   : > { %v5573_v2 = vadd.f32 %v7726_v42, %v5341_v49  ;;  %9600 = vmatpush3.bf16.msra.mxu1 %v9599_v63 }
 0xc42   : > { %9601 = vmatprep.subr.bf16.mxu1 %v12978_v3 }
 0xc43   : > { %v5711_v22 = vadd.f32 %v12568_v57, %v5573_v2  ;;  %v9611_v57 = vpack.c.bf16 %v12655_v0, %v12653_v31 }
 0xc44   : > { %8563 = vmatmul.mubr.f32.vlgmr.msra.gmra.mrb[10].mxu1 %v12603_v58 }
 0xc45   : > { %9603 = vmatpush3.bf16.msra.mxu1 %v9602_v17  ;;  %8581 = vmatprep.mubr.msk.f32.mxu1 %vm10296_vm11, %v13011_v16 }
 0xc46   : > { %9604 = vmatprep.subr.bf16.mxu1 %v12978_v3 }
 0xc49   : > { %9606 = vmatpush3.bf16.msra.mxu1 %v9605_v13 }
 0xc4a   : > { %9607 = vmatprep.subr.bf16.mxu1 %v12978_v3 }
 0xc4d   : > { %9609 = vmatpush3.bf16.msra.mxu1 %v9608_v23 }
 0xc4e   : > { %9610 = vmatprep.subr.bf16.mxu1 %v12978_v3 }
 0xc51   : > { %9612 = vmatpush3.bf16.msra.mxu1 %v9611_v57 }
 0xc52   : > { %9613 = vmatprep.subr.bf16.mxu1 %v12978_v3 }
 0xc54   : > { %8582 = vmatmul.mubr.f32.vlgmr.msra.gmra.mrb[10].mxu1 %v12625_v9 }
 0xc55   : > { %9615 = vmatpush3.bf16.msra.mxu1 %v12594_v26  ;;  %8600 = vmatprep.mubr.msk.f32.mxu1 %vm10296_vm11, %v13011_v16 }
 0xc56   : > { %9616 = vmatprep.subr.bf16.mxu1 %v12978_v3 }
 0xc59   : > { %9618 = vmatpush3.bf16.msra.mxu1 %v12619_v25 }
 0xc5a   : > { %9619 = vmatprep.subr.bf16.mxu1 %v12978_v3 }
 0xc5d   : > { %v7794_v21 = vpop.f32.mrb[14].mxu0  ;;  %9621 = vmatpush3.bf16.msra.mxu1 %v12636_v62 }
 0xc5e   : > { %v7795_v43 = vpop.f32.mrb[15].mxu0  ;;  %9622 = vmatprep.subr.bf16.mxu1 %v12978_v3 }
 0xc5f   : > { %v7796_v10 = vadd.f32 %v7795_v43, %v7794_v21 }
 0xc61   : > { %v5819_v37 = vadd.f32 %v7796_v10, %v5711_v22  ;;  %9624 = vmatpush3.bf16.msra.mxu1 %v12644_v34 }
 0xc62   : > { %9625 = vmatprep.subr.bf16.mxu1 %v12978_v3 }
 0xc63   : > { %v5987_v44 = vadd.f32 %v7831_v18, %v5819_v37 }
 0xc64   : > { %8601 = vmatmul.mubr.f32.vlgmr.msra.gmra.mrb[10].mxu1 %v6829_v19 }
 0xc65   : > { %9627 = vmatpush3.bf16.msra.mxu1 %v9626_v12  ;;  %8619 = vmatprep.mubr.msk.f32.mxu1 %vm10296_vm11, %v13011_v16 }
 0xc66   : > { %9628 = vmatprep.subr.bf16.mxu1 %v12978_v3 }
 0xc69   : > { %9630 = vmatpush3.bf16.msra.mxu1 %v9629_v36 }
 0xc6a   : > { %9631 = vmatprep.subr.bf16.mxu1 %v12978_v3 }
 0xc6d   : > { %9633 = vmatpush3.bf16.msra.mxu1 %v9632_v20 }
 0xc6e   : > { %9634 = vmatprep.subr.bf16.mxu1 %v12978_v3 }
 0xc71   : > { %9636 = vmatpush3.bf16.msra.mxu1 %v9635_v50 }
 0xc72   : > { %9637 = vmatprep.subr.bf16.mxu1 %v12978_v3 }
 0xc74   : > { %8620 = vmatmul.mubr.f32.vlgmr.msra.gmra.mrb[10].mxu1 %v12603_v58 }
 0xc75   : > { %9639 = vmatpush3.bf16.msra.mxu1 %v12594_v26  ;;  %8638 = vmatprep.mubr.msk.f32.mxu1 %vm10296_vm11, %v13011_v16  ;;  %v7501_v16 = vld [vmem:[%s13059_s5] ss:$0 sm:$0xff] }
 0xc76   : > { %9640 = vmatprep.subr.bf16.mxu1 %v12978_v3 }
 0xc79   : > { %9642 = vmatpush3.bf16.msra.mxu1 %v12619_v25 }
 0xc7a   : > { %9643 = vmatprep.subr.bf16.mxu1 %v12978_v3 }
 0xc7d   : > { %v7864_v14 = vpop.f32.mrb[16].mxu0  ;;  %9645 = vmatpush3.bf16.msra.mxu1 %v12636_v62 }
 0xc7e   : > { %v7865_v41 = vpop.f32.mrb[17].mxu0  ;;  %9646 = vmatprep.subr.bf16.mxu1 %v12978_v3 }
 0xc7f   : > { %v7866_v52 = vadd.f32 %v7865_v41, %v7864_v14 }
 0xc81   : > { %v6091_v35 = vadd.f32 %v7866_v52, %v5987_v44  ;;  %9648 = vmatpush3.bf16.msra.mxu1 %v12644_v34 }
 0xc83   : > { %v9664_v26 = vadd.f32 %v7501_v16, %v6091_v35 }
 0xc84   : > { %8639 = vmatmul.mubr.f32.vlgmr.msra.gmra.mrb[10].mxu1 %v12603_v58 }
 0xd57   : > { %v7287_v25 = vpop.f32.mrb[10].mxu1 }
 0xd58   : > { %v9665_v9 = vadd.f32 %v9664_v26, %v7287_v25  ;;  %v8640_v3 = vpop.f32.mrb[11].mxu1 }
 0xd5a   : > { %v7292_v54 = vmax.f32 %v9665_v9, 0.0 }
 0xd5c   : > { %7293 = vst [vmem:[%s779_s4] sm:$0xf] %v7292_v54 }
 0xd5d   : > { %10202 = shalt.err (!%p10199_p10)
}
 0xd5e   : > { %s10203_s26 = scalar_lea.hbm %s12759_s7, 64  ;;  %s10207_s30 = scalar_lea.hbm %s13061_s1, 128 }
 0xd5f   : > { %p10204_p2 = scmp.ne.s32.totalorder %s12759_s7, %s10203_s26  ;;  %p10208_p7 = scmp.lt.u32.totalorder %s12759_s7, %s13061_s1 }
 0xd60   : > { %p10209_p8 = scmp.lt.u32.totalorder %s10207_s30, %s10203_s26  ;;  %p10211_p13 = scmp.lt.u32.totalorder %s10203_s26, %s12759_s7 }
 0xd61   : > { %p10205_p3 = pnand %p10204_p2, %p13062_p1 }
 0xd62   : > { %p10210_p11 = por %p10209_p8, %p10208_p7 }
 0xd63   : > { %p10206_p4 = pneg %p10205_p3 }
 0xd64   : > { %p10212_p0 = por %p10211_p13, %p10210_p11 }
 0xd66   : > { %p10213_p6 = pnand %p10212_p0, %p10206_p4 }
 0xd68   : > { %10216 = shalt.err (!%p10213_p6)
}
 0xd69   : > { %9796 = dma.vmem_to_hbm [thread:$0]  (%p13062_p1), %s12761_s21, 64, %s12759_s7, %s7295_s6  }
 0xd6a PF: > { %s13063_s4 = sld [smem:[#allocation36_spill]]  ;;  %s13064_s2 = sld [smem:[#allocation34_spill]] }
 0xd6b   : > { %s13065_s0 = sld [smem:[#allocation40_spill]] }
 0xd70   : > { %p9853_p5 = scmp.ge.s32.totalorder %s13063_s4, 2  ;;  %s7320_s10 = sand.u32 1, %s13064_s2  }
 0xd71   : > { %p13066_p9 = scmp.ne.s32.totalorder %s13065_s0, 0  ;;  %s7321_s3 = scalar_lea.sflag [#allocation11], %s7320_s10 }
 0xd73   : > { %p9830_p12 = pnand %p9853_p5, %p13066_p9 }
 0xd75   : > { %10258 = dma.done.wait (!%p9830_p12), %s7321_s3, 64  }
 0xd76   : > { %10260 = vsyncadd (!%p9830_p12), %s7321_s3, 4294967232  ;;  %s13067_s27 = sld [smem:[#allocation37_spill]]  ;;  %s13068_s14 = sld [smem:[#allocation35_spill]] }
 0xd77   : > { %s13069_s26 = sld [smem:[#allocation38_spill]]  ;;  %s13070_s2 = smov %s10267_s25 }
 0xd7c   : > { %p37_p10 = scmp.ge.s32.totalorder %s13067_s27, 4   ;;  %s13071_s25 = smov %s13068_s14 }
 0xd7e   :  { %39 = sbr.rel (!%p37_p10) target bundleno = 23 (0x17), region = 184 }
 0xd85   :  { %7326 = vsyncpa [#allocation10], 1 }
 0xd86   :  { %7328 = vsyncpa [#allocation10 + $0x1], 1 }
 0xd87   :  { %7329 = vsyncpa [#allocation13], 1 }
 0xd88   :  { %7330 = vsyncpa [#allocation16], 1 }
 0xd89   :  { %7331 = vsyncpa [#allocation19], 1 }
 0xd8a   :  { %7332 = vsyncpa [#allocation22], 1 }
 0xd8b   :  { %7333 = vsyncpa [#allocation25], 1 }
 0xd8c   :  { %7334 = vsyncpa [#allocation11], 1 }
 0xd8d   :  { %7336 = vsyncpa [#allocation11 + $0x1], 1 }

</bundles_post_ra>
